<compile_context>
chip_gen: v7x
topology: tpu7x:2x2x1
jax: 0.10.0
libtpu: 0.0.40
codegen_flags: <defaults>
</compile_context>

<pallas_src>
import numpy as np
import jax
import jax.numpy as jnp
from jax.experimental import pallas as pl
from jax.experimental.pallas import tpu as pltpu


# ------------------------------ fixed geometry -------------------------------
H = W = 28                 # FashionMNIST spatial size (classifier is hidden*7*7)
HP1, WP1 = 32, 32          # stage-A padded geometry: 28 + 1 (left) + 3 (right)
HP2, WP2 = 16, 16          # stage-B padded geometry: 14 + 1 + 1
PB1 = HP1 * WP1            # 1024 per-batch flat size (multiple of 128 -> aligned slices)
PB2 = HP2 * WP2            # 256
HO1 = WO1 = 14             # after pool 1
HO2 = WO2 = 7              # after pool 2


# ------------------------------ fused Pallas kernel --------------------------

def _build_fused_kernel(batch):
    def shift(x, s):
        # y[:, j] = x[:, (j + s) mod n].  Wrapped values only ever land on
        # positions that are masked or never selected downstream.
        n = x.shape[1]
        k = (-s) % n
        if k == 0:
            return x
        return pltpu.roll(x, shift=k, axis=1)

    def conv3x3_relu(x, w_ref, b_ref, wp, mask):
        # x: (Cin, N) zero-padded flat activations; w_ref: (Cout, 9*Cin) in
        # tap-major order; b_ref: (Cout, 1).  One im2col matmul on the MXU.
        taps = []
        for kh in range(3):
            for kw in range(3):
                taps.append(shift(x, (kh - 1) * wp + (kw - 1)))
        pat = jnp.concatenate(taps, axis=0)                       # (9*Cin, N)
        y = jnp.dot(w_ref[...], pat,
                    preferred_element_type=jnp.float32) + b_ref[...]
        y = jnp.maximum(y, 0.0)
        return y * mask if mask is not None else y

    def window_max(x, wp):
        # max over the 2x2 window anchored at every flat position
        return jnp.maximum(jnp.maximum(x, shift(x, 1)),
                           jnp.maximum(shift(x, wp), shift(x, wp + 1)))

    def kernel(x_ref, w1_ref, b1_ref, w2_ref, b2_ref, w3_ref, b3_ref,
               w4_ref, b4_ref, mask1_ref, mask2_ref, pool1_ref, wcls_ref,
               bcls_ref, o_ref):
        mask1 = mask1_ref[...]              # (1, batch*PB1): interior of 28x28
        mask2 = mask2_ref[...]              # (1, batch*PB2): interior of 14x14

        # ---------------- block_1 ----------------
        a1 = conv3x3_relu(x_ref[...], w1_ref, b1_ref, WP1, mask1)
        a2 = conv3x3_relu(a1, w2_ref, b2_ref, WP1, None)
        c1 = window_max(a2, WP1)
        sel1 = pool1_ref[...]               # (PB1, PB2) 0/1: downsample + re-pad
        p1 = jnp.concatenate(
            [jnp.dot(c1[:, b * PB1:(b + 1) * PB1], sel1,
                     preferred_element_type=jnp.float32) for b in range(batch)],
            axis=1)                          # (hidden, batch*PB2), borders already 0

        # ---------------- block_2 ----------------
        a3 = conv3x3_relu(p1, w3_ref, b3_ref, WP2, mask2)
        a4 = conv3x3_relu(a3, w4_ref, b4_ref, WP2, None)
        c2 = window_max(a4, WP2)            # (hidden, batch*PB2)

        # ------- classifier: pool-2 selection + NCHW flatten + Linear,
        # ------- all folded into the precomputed wcls matrix -------
        hidden = c2.shape[0]
        rows = []
        for b in range(batch):
            chunk = c2[:, b * PB2:(b + 1) * PB2]                # (hidden, PB2)
            rows.append(jnp.concatenate(
                [chunk[c:c + 1, :] for c in range(hidden)], axis=1))  # (1, hidden*PB2)
        xcls = jnp.concatenate(rows, axis=0)                    # (batch, hidden*PB2)
        o_ref[...] = (jnp.dot(xcls, wcls_ref[...],
                              preferred_element_type=jnp.float32) + bcls_ref[...])

    return kernel


# ------------------------------ host-side constants --------------------------

def _interior_mask(batch, hp, wp, hv, wv):
    m = np.zeros((hp, wp), np.float32)
    m[1:1 + hv, 1:1 + wv] = 1.0
    return jnp.asarray(np.tile(m.reshape(1, -1), (1, batch)))


def _pool1_select():
    # (PB1, PB2): picks the 2x2-window anchor of stage A and drops it at the
    # zero-padded interior position of stage B; unselected columns stay zero,
    # so the result is already a correctly zero-padded conv input.
    s = np.zeros((PB1, PB2), np.float32)
    for h2 in range(HO1):
        for w2 in range(WO1):
            s[(1 + 2 * h2) * WP1 + (1 + 2 * w2),
              (1 + h2) * WP2 + (1 + w2)] = 1.0
    return jnp.asarray(s)


def _pool2_select_np():
    # (PB2, 49): picks the 2x2-window anchors of stage B in (h, w) order.
    s = np.zeros((PB2, HO2 * WO2), np.float32)
    for h3 in range(HO2):
        for w3 in range(WO2):
            s[(1 + 2 * h3) * WP2 + (1 + 2 * w3), h3 * WO2 + w3] = 1.0
    return s


# ------------------------------ forward wrapper -------------------------------

def fashion_mnist_forward(params, x_nchw):
    batch, cin, h, w = x_nchw.shape
    assert (h, w) == (H, W)
    hidden = params["w1"].shape[0]
    out_dim = params["wf"].shape[0]

    # One-time layout glue (tiny; in production this weight repacking would be
    # hoisted out and done once at load time).
    xp = jnp.pad(x_nchw.astype(jnp.float32),
                 ((0, 0), (0, 0), (1, HP1 - 1 - h), (1, WP1 - 1 - w)))
    x0 = jnp.transpose(xp, (1, 0, 2, 3)).reshape(cin, batch * PB1)

    def conv_w(wt):   # OIHW -> (Cout, (kh*3 + kw)*Cin + ci): matches im2col tap order
        return jnp.transpose(wt, (0, 2, 3, 1)).reshape(wt.shape[0], 9 * wt.shape[1])

    def conv_b(bt):
        return bt.reshape(-1, 1).astype(jnp.float32)

    mask1 = _interior_mask(batch, HP1, WP1, H, W)
    mask2 = _interior_mask(batch, HP2, WP2, HO1, WO1)
    sel1 = _pool1_select()

    # Fold pool-2 selection + PyTorch NCHW flatten into the Linear weight:
    # wf is (out, hidden*7*7) with feature index c*49 + h3*7 + w3.
    wf_r = jnp.transpose(
        params["wf"].astype(jnp.float32).reshape(out_dim, hidden, HO2 * WO2),
        (1, 2, 0))                                             # (hidden, 49, out)
    wcls = jnp.einsum("pj,cjo->cpo", jnp.asarray(_pool2_select_np()),
                      wf_r).reshape(hidden * PB2, out_dim)
    bcls = params["bf"].reshape(1, out_dim).astype(jnp.float32)

    args = (x0,
            conv_w(params["w1"]), conv_b(params["b1"]),
            conv_w(params["w2"]), conv_b(params["b2"]),
            conv_w(params["w3"]), conv_b(params["b3"]),
            conv_w(params["w4"]), conv_b(params["b4"]),
            mask1, mask2, sel1, wcls, bcls)

    return pl.pallas_call(
        _build_fused_kernel(batch),
        out_shape=jax.ShapeDtypeStruct((batch, out_dim), jnp.float32),
        in_specs=[pl.BlockSpec(memory_space=pltpu.MemorySpace.VMEM)] * len(args),
        out_specs=pl.BlockSpec(memory_space=pltpu.MemorySpace.VMEM),
    )(*args)


# ------------------------------ params & reference ----------------------------

def init_params(key, input_channels, hidden_units, output_shape):
    ks = jax.random.split(key, 10)

    def cw(k, cin, cout):   # PyTorch OIHW layout
        return 0.1 * jax.random.normal(k, (cout, cin, 3, 3), jnp.float32)

    return {
        "w1": cw(ks[0], input_channels, hidden_units),
        "b1": 0.01 * jax.random.normal(ks[1], (hidden_units,), jnp.float32),
        "w2": cw(ks[2], hidden_units, hidden_units),
        "b2": 0.01 * jax.random.normal(ks[3], (hidden_units,), jnp.float32),
        "w3": cw(ks[4], hidden_units, hidden_units),
        "b3": 0.01 * jax.random.normal(ks[5], (hidden_units,), jnp.float32),
        "w4": cw(ks[6], hidden_units, hidden_units),
        "b4": 0.01 * jax.random.normal(ks[7], (hidden_units,), jnp.float32),
        "wf": 0.1 * jax.random.normal(
            ks[8], (output_shape, hidden_units * 7 * 7), jnp.float32),
        "bf": 0.01 * jax.random.normal(ks[9], (output_shape,), jnp.float32),
    }


def reference_forward(params, x_nchw):
    x = x_nchw.astype(jnp.float32)

    def conv(x, wt, bt):
        y = jax.lax.conv_general_dilated(
            x, wt, window_strides=(1, 1), padding=((1, 1), (1, 1)),
            dimension_numbers=("NCHW", "OIHW", "NCHW"))
        return jax.nn.relu(y + bt.reshape(1, -1, 1, 1))

    def pool(x):
        return jax.lax.reduce_window(x, -jnp.inf, jax.lax.max,
                                     (1, 1, 2, 2), (1, 1, 2, 2), "VALID")

    x = conv(x, params["w1"], params["b1"])
    x = conv(x, params["w2"], params["b2"])
    x = pool(x)
    x = conv(x, params["w3"], params["b3"])
    x = conv(x, params["w4"], params["b4"])
    x = pool(x)
    feat = x.reshape(x.shape[0], -1)     # NCHW flatten == PyTorch nn.Flatten
    return feat @ params["wf"].T + params["bf"]


# ------------------------------ main ------------------------------------------

if __name__ == "__main__":
    B, C_IN, HIDDEN, OUT = 2, 1, 8, 10

    key = jax.random.PRNGKey(0)
    k_params, k_x = jax.random.split(key)
    params = init_params(k_params, C_IN, HIDDEN, OUT)
    x = jax.random.normal(k_x, (B, C_IN, H, W), jnp.float32)

    fwd = jax.jit(fashion_mnist_forward)
    out = jax.block_until_ready(fwd(params, x))

    ref = jax.block_until_ready(reference_forward(params, x))
    assert out.shape == (B, OUT), out.shape
    max_err = float(jnp.max(jnp.abs(out - ref)))
    assert jnp.allclose(out, ref, rtol=5e-3, atol=5e-3), max_err

    print("KERNEL_OK")
</pallas_src>

<mosaic_0001>
module attributes {stable_mosaic.version = 11 : i64} {
  func.func @kernel(%arg0: memref<1x2048xf32, #tpu.memory_space<vmem>>, %arg1: memref<8x9xf32, #tpu.memory_space<vmem>>, %arg2: memref<8x1xf32, #tpu.memory_space<vmem>>, %arg3: memref<8x72xf32, #tpu.memory_space<vmem>>, %arg4: memref<8x1xf32, #tpu.memory_space<vmem>>, %arg5: memref<8x72xf32, #tpu.memory_space<vmem>>, %arg6: memref<8x1xf32, #tpu.memory_space<vmem>>, %arg7: memref<8x72xf32, #tpu.memory_space<vmem>>, %arg8: memref<8x1xf32, #tpu.memory_space<vmem>>, %arg9: memref<1x2048xf32, #tpu.memory_space<vmem>>, %arg10: memref<1x512xf32, #tpu.memory_space<vmem>>, %arg11: memref<1024x256xf32, #tpu.memory_space<vmem>>, %arg12: memref<2048x10xf32, #tpu.memory_space<vmem>>, %arg13: memref<1x10xf32, #tpu.memory_space<vmem>>, %arg14: memref<2x10xf32, #tpu.memory_space<vmem>>) attributes {dimension_semantics = [], scalar_prefetch = 0 : i64, scratch_operands = 0 : i64, tpu.core_type = #tpu.core_type<tc>} {
    %c0 = arith.constant 0 : index
    %c0_0 = arith.constant 0 : index
    %0 = vector.load %arg9[%c0, %c0_0] : memref<1x2048xf32, #tpu.memory_space<vmem>>, vector<1x2048xf32>
    %c0_1 = arith.constant 0 : index
    %c0_2 = arith.constant 0 : index
    %1 = vector.load %arg10[%c0_1, %c0_2] : memref<1x512xf32, #tpu.memory_space<vmem>>, vector<1x512xf32>
    %c0_3 = arith.constant 0 : index
    %c0_4 = arith.constant 0 : index
    %2 = vector.load %arg0[%c0_3, %c0_4] : memref<1x2048xf32, #tpu.memory_space<vmem>>, vector<1x2048xf32>
    %c33_i32 = arith.constant 33 : i32
    %3 = tpu.dynamic_rotate %2 by %c33_i32 dim 1 : vector<1x2048xf32>, i32 -> vector<1x2048xf32>
    %c32_i32 = arith.constant 32 : i32
    %4 = tpu.dynamic_rotate %2 by %c32_i32 dim 1 : vector<1x2048xf32>, i32 -> vector<1x2048xf32>
    %c31_i32 = arith.constant 31 : i32
    %5 = tpu.dynamic_rotate %2 by %c31_i32 dim 1 : vector<1x2048xf32>, i32 -> vector<1x2048xf32>
    %c1_i32 = arith.constant 1 : i32
    %6 = tpu.dynamic_rotate %2 by %c1_i32 dim 1 : vector<1x2048xf32>, i32 -> vector<1x2048xf32>
    %c2047_i32 = arith.constant 2047 : i32
    %7 = tpu.dynamic_rotate %2 by %c2047_i32 dim 1 : vector<1x2048xf32>, i32 -> vector<1x2048xf32>
    %c2017_i32 = arith.constant 2017 : i32
    %8 = tpu.dynamic_rotate %2 by %c2017_i32 dim 1 : vector<1x2048xf32>, i32 -> vector<1x2048xf32>
    %c2016_i32 = arith.constant 2016 : i32
    %9 = tpu.dynamic_rotate %2 by %c2016_i32 dim 1 : vector<1x2048xf32>, i32 -> vector<1x2048xf32>
    %c2015_i32 = arith.constant 2015 : i32
    %10 = tpu.dynamic_rotate %2 by %c2015_i32 dim 1 : vector<1x2048xf32>, i32 -> vector<1x2048xf32>
    %11 = tpu.concatenate %3, %4, %5, %6, %2, %7, %8, %9, %10 in 0 : vector<1x2048xf32>, vector<1x2048xf32>, vector<1x2048xf32>, vector<1x2048xf32>, vector<1x2048xf32>, vector<1x2048xf32>, vector<1x2048xf32>, vector<1x2048xf32>, vector<1x2048xf32> -> vector<9x2048xf32>
    %c0_5 = arith.constant 0 : index
    %c0_6 = arith.constant 0 : index
    %12 = vector.load %arg1[%c0_5, %c0_6] : memref<8x9xf32, #tpu.memory_space<vmem>>, vector<8x9xf32>
    %cst = arith.constant dense<0.000000e+00> : vector<8x2048xf32>
    %13 = tpu.matmul %12, %11, %cst {dimension_numbers = #tpu.dot_dimension_numbers<[1], [0], [0], [1], [0, 0, 1, 1], [], []>} : vector<8x9xf32>, vector<9x2048xf32>, vector<8x2048xf32> -> vector<8x2048xf32>
    %c0_7 = arith.constant 0 : index
    %c0_8 = arith.constant 0 : index
    %14 = vector.load %arg2[%c0_7, %c0_8] : memref<8x1xf32, #tpu.memory_space<vmem>>, vector<8x1xf32>
    %15 = vector.broadcast %14 : vector<8x1xf32> to vector<8x2048xf32>
    %16 = arith.addf %13, %15 : vector<8x2048xf32>
    %cst_9 = arith.constant 0.000000e+00 : f32
    %17 = vector.broadcast %cst_9 : f32 to vector<8x2048xf32>
    %18 = arith.maximumf %16, %17 : vector<8x2048xf32>
    %19 = vector.broadcast %0 : vector<1x2048xf32> to vector<8x2048xf32>
    %20 = arith.mulf %18, %19 : vector<8x2048xf32>
    %c33_i32_10 = arith.constant 33 : i32
    %21 = tpu.dynamic_rotate %20 by %c33_i32_10 dim 1 : vector<8x2048xf32>, i32 -> vector<8x2048xf32>
    %c32_i32_11 = arith.constant 32 : i32
    %22 = tpu.dynamic_rotate %20 by %c32_i32_11 dim 1 : vector<8x2048xf32>, i32 -> vector<8x2048xf32>
    %c31_i32_12 = arith.constant 31 : i32
    %23 = tpu.dynamic_rotate %20 by %c31_i32_12 dim 1 : vector<8x2048xf32>, i32 -> vector<8x2048xf32>
    %c1_i32_13 = arith.constant 1 : i32
    %24 = tpu.dynamic_rotate %20 by %c1_i32_13 dim 1 : vector<8x2048xf32>, i32 -> vector<8x2048xf32>
    %c2047_i32_14 = arith.constant 2047 : i32
    %25 = tpu.dynamic_rotate %20 by %c2047_i32_14 dim 1 : vector<8x2048xf32>, i32 -> vector<8x2048xf32>
    %c2017_i32_15 = arith.constant 2017 : i32
    %26 = tpu.dynamic_rotate %20 by %c2017_i32_15 dim 1 : vector<8x2048xf32>, i32 -> vector<8x2048xf32>
    %c2016_i32_16 = arith.constant 2016 : i32
    %27 = tpu.dynamic_rotate %20 by %c2016_i32_16 dim 1 : vector<8x2048xf32>, i32 -> vector<8x2048xf32>
    %c2015_i32_17 = arith.constant 2015 : i32
    %28 = tpu.dynamic_rotate %20 by %c2015_i32_17 dim 1 : vector<8x2048xf32>, i32 -> vector<8x2048xf32>
    %29 = tpu.concatenate %21, %22, %23, %24, %20, %25, %26, %27, %28 in 0 : vector<8x2048xf32>, vector<8x2048xf32>, vector<8x2048xf32>, vector<8x2048xf32>, vector<8x2048xf32>, vector<8x2048xf32>, vector<8x2048xf32>, vector<8x2048xf32>, vector<8x2048xf32> -> vector<72x2048xf32>
    %c0_18 = arith.constant 0 : index
    %c0_19 = arith.constant 0 : index
    %30 = vector.load %arg3[%c0_18, %c0_19] : memref<8x72xf32, #tpu.memory_space<vmem>>, vector<8x72xf32>
    %cst_20 = arith.constant dense<0.000000e+00> : vector<8x2048xf32>
    %31 = tpu.matmul %30, %29, %cst_20 {dimension_numbers = #tpu.dot_dimension_numbers<[1], [0], [0], [1], [0, 0, 1, 1], [], []>} : vector<8x72xf32>, vector<72x2048xf32>, vector<8x2048xf32> -> vector<8x2048xf32>
    %c0_21 = arith.constant 0 : index
    %c0_22 = arith.constant 0 : index
    %32 = vector.load %arg4[%c0_21, %c0_22] : memref<8x1xf32, #tpu.memory_space<vmem>>, vector<8x1xf32>
    %33 = vector.broadcast %32 : vector<8x1xf32> to vector<8x2048xf32>
    %34 = arith.addf %31, %33 : vector<8x2048xf32>
    %cst_23 = arith.constant 0.000000e+00 : f32
    %35 = vector.broadcast %cst_23 : f32 to vector<8x2048xf32>
    %36 = arith.maximumf %34, %35 : vector<8x2048xf32>
    %c2047_i32_24 = arith.constant 2047 : i32
    %37 = tpu.dynamic_rotate %36 by %c2047_i32_24 dim 1 : vector<8x2048xf32>, i32 -> vector<8x2048xf32>
    %38 = arith.maximumf %36, %37 : vector<8x2048xf32>
    %c2016_i32_25 = arith.constant 2016 : i32
    %39 = tpu.dynamic_rotate %36 by %c2016_i32_25 dim 1 : vector<8x2048xf32>, i32 -> vector<8x2048xf32>
    %c2015_i32_26 = arith.constant 2015 : i32
    %40 = tpu.dynamic_rotate %36 by %c2015_i32_26 dim 1 : vector<8x2048xf32>, i32 -> vector<8x2048xf32>
    %41 = arith.maximumf %39, %40 : vector<8x2048xf32>
    %42 = arith.maximumf %38, %41 : vector<8x2048xf32>
    %c0_27 = arith.constant 0 : index
    %c0_28 = arith.constant 0 : index
    %43 = vector.load %arg11[%c0_27, %c0_28] : memref<1024x256xf32, #tpu.memory_space<vmem>>, vector<1024x256xf32>
    %44 = vector.extract_strided_slice %42 {offsets = [0, 0], sizes = [8, 1024], strides = [1, 1]} : vector<8x2048xf32> to vector<8x1024xf32>
    %cst_29 = arith.constant dense<0.000000e+00> : vector<8x256xf32>
    %45 = tpu.matmul %44, %43, %cst_29 {dimension_numbers = #tpu.dot_dimension_numbers<[1], [0], [0], [1], [0, 0, 1, 1], [], []>} : vector<8x1024xf32>, vector<1024x256xf32>, vector<8x256xf32> -> vector<8x256xf32>
    %46 = vector.extract_strided_slice %42 {offsets = [0, 1024], sizes = [8, 1024], strides = [1, 1]} : vector<8x2048xf32> to vector<8x1024xf32>
    %cst_30 = arith.constant dense<0.000000e+00> : vector<8x256xf32>
    %47 = tpu.matmul %46, %43, %cst_30 {dimension_numbers = #tpu.dot_dimension_numbers<[1], [0], [0], [1], [0, 0, 1, 1], [], []>} : vector<8x1024xf32>, vector<1024x256xf32>, vector<8x256xf32> -> vector<8x256xf32>
    %48 = tpu.concatenate %45, %47 in 1 : vector<8x256xf32>, vector<8x256xf32> -> vector<8x512xf32>
    %c17_i32 = arith.constant 17 : i32
    %49 = tpu.dynamic_rotate %48 by %c17_i32 dim 1 : vector<8x512xf32>, i32 -> vector<8x512xf32>
    %c16_i32 = arith.constant 16 : i32
    %50 = tpu.dynamic_rotate %48 by %c16_i32 dim 1 : vector<8x512xf32>, i32 -> vector<8x512xf32>
    %c15_i32 = arith.constant 15 : i32
    %51 = tpu.dynamic_rotate %48 by %c15_i32 dim 1 : vector<8x512xf32>, i32 -> vector<8x512xf32>
    %c1_i32_31 = arith.constant 1 : i32
    %52 = tpu.dynamic_rotate %48 by %c1_i32_31 dim 1 : vector<8x512xf32>, i32 -> vector<8x512xf32>
    %c511_i32 = arith.constant 511 : i32
    %53 = tpu.dynamic_rotate %48 by %c511_i32 dim 1 : vector<8x512xf32>, i32 -> vector<8x512xf32>
    %c497_i32 = arith.constant 497 : i32
    %54 = tpu.dynamic_rotate %48 by %c497_i32 dim 1 : vector<8x512xf32>, i32 -> vector<8x512xf32>
    %c496_i32 = arith.constant 496 : i32
    %55 = tpu.dynamic_rotate %48 by %c496_i32 dim 1 : vector<8x512xf32>, i32 -> vector<8x512xf32>
    %c495_i32 = arith.constant 495 : i32
    %56 = tpu.dynamic_rotate %48 by %c495_i32 dim 1 : vector<8x512xf32>, i32 -> vector<8x512xf32>
    %57 = tpu.concatenate %49, %50, %51, %52, %48, %53, %54, %55, %56 in 0 : vector<8x512xf32>, vector<8x512xf32>, vector<8x512xf32>, vector<8x512xf32>, vector<8x512xf32>, vector<8x512xf32>, vector<8x512xf32>, vector<8x512xf32>, vector<8x512xf32> -> vector<72x512xf32>
    %c0_32 = arith.constant 0 : index
    %c0_33 = arith.constant 0 : index
    %58 = vector.load %arg5[%c0_32, %c0_33] : memref<8x72xf32, #tpu.memory_space<vmem>>, vector<8x72xf32>
    %cst_34 = arith.constant dense<0.000000e+00> : vector<8x512xf32>
    %59 = tpu.matmul %58, %57, %cst_34 {dimension_numbers = #tpu.dot_dimension_numbers<[1], [0], [0], [1], [0, 0, 1, 1], [], []>} : vector<8x72xf32>, vector<72x512xf32>, vector<8x512xf32> -> vector<8x512xf32>
    %c0_35 = arith.constant 0 : index
    %c0_36 = arith.constant 0 : index
    %60 = vector.load %arg6[%c0_35, %c0_36] : memref<8x1xf32, #tpu.memory_space<vmem>>, vector<8x1xf32>
    %61 = vector.broadcast %60 : vector<8x1xf32> to vector<8x512xf32>
    %62 = arith.addf %59, %61 : vector<8x512xf32>
    %cst_37 = arith.constant 0.000000e+00 : f32
    %63 = vector.broadcast %cst_37 : f32 to vector<8x512xf32>
    %64 = arith.maximumf %62, %63 : vector<8x512xf32>
    %65 = vector.broadcast %1 : vector<1x512xf32> to vector<8x512xf32>
    %66 = arith.mulf %64, %65 : vector<8x512xf32>
    %c17_i32_38 = arith.constant 17 : i32
    %67 = tpu.dynamic_rotate %66 by %c17_i32_38 dim 1 : vector<8x512xf32>, i32 -> vector<8x512xf32>
    %c16_i32_39 = arith.constant 16 : i32
    %68 = tpu.dynamic_rotate %66 by %c16_i32_39 dim 1 : vector<8x512xf32>, i32 -> vector<8x512xf32>
    %c15_i32_40 = arith.constant 15 : i32
    %69 = tpu.dynamic_rotate %66 by %c15_i32_40 dim 1 : vector<8x512xf32>, i32 -> vector<8x512xf32>
    %c1_i32_41 = arith.constant 1 : i32
    %70 = tpu.dynamic_rotate %66 by %c1_i32_41 dim 1 : vector<8x512xf32>, i32 -> vector<8x512xf32>
    %c511_i32_42 = arith.constant 511 : i32
    %71 = tpu.dynamic_rotate %66 by %c511_i32_42 dim 1 : vector<8x512xf32>, i32 -> vector<8x512xf32>
    %c497_i32_43 = arith.constant 497 : i32
    %72 = tpu.dynamic_rotate %66 by %c497_i32_43 dim 1 : vector<8x512xf32>, i32 -> vector<8x512xf32>
    %c496_i32_44 = arith.constant 496 : i32
    %73 = tpu.dynamic_rotate %66 by %c496_i32_44 dim 1 : vector<8x512xf32>, i32 -> vector<8x512xf32>
    %c495_i32_45 = arith.constant 495 : i32
    %74 = tpu.dynamic_rotate %66 by %c495_i32_45 dim 1 : vector<8x512xf32>, i32 -> vector<8x512xf32>
    %75 = tpu.concatenate %67, %68, %69, %70, %66, %71, %72, %73, %74 in 0 : vector<8x512xf32>, vector<8x512xf32>, vector<8x512xf32>, vector<8x512xf32>, vector<8x512xf32>, vector<8x512xf32>, vector<8x512xf32>, vector<8x512xf32>, vector<8x512xf32> -> vector<72x512xf32>
    %c0_46 = arith.constant 0 : index
    %c0_47 = arith.constant 0 : index
    %76 = vector.load %arg7[%c0_46, %c0_47] : memref<8x72xf32, #tpu.memory_space<vmem>>, vector<8x72xf32>
    %cst_48 = arith.constant dense<0.000000e+00> : vector<8x512xf32>
    %77 = tpu.matmul %76, %75, %cst_48 {dimension_numbers = #tpu.dot_dimension_numbers<[1], [0], [0], [1], [0, 0, 1, 1], [], []>} : vector<8x72xf32>, vector<72x512xf32>, vector<8x512xf32> -> vector<8x512xf32>
    %c0_49 = arith.constant 0 : index
    %c0_50 = arith.constant 0 : index
    %78 = vector.load %arg8[%c0_49, %c0_50] : memref<8x1xf32, #tpu.memory_space<vmem>>, vector<8x1xf32>
    %79 = vector.broadcast %78 : vector<8x1xf32> to vector<8x512xf32>
    %80 = arith.addf %77, %79 : vector<8x512xf32>
    %cst_51 = arith.constant 0.000000e+00 : f32
    %81 = vector.broadcast %cst_51 : f32 to vector<8x512xf32>
    %82 = arith.maximumf %80, %81 : vector<8x512xf32>
    %c511_i32_52 = arith.constant 511 : i32
    %83 = tpu.dynamic_rotate %82 by %c511_i32_52 dim 1 : vector<8x512xf32>, i32 -> vector<8x512xf32>
    %84 = arith.maximumf %82, %83 : vector<8x512xf32>
    %c496_i32_53 = arith.constant 496 : i32
    %85 = tpu.dynamic_rotate %82 by %c496_i32_53 dim 1 : vector<8x512xf32>, i32 -> vector<8x512xf32>
    %c495_i32_54 = arith.constant 495 : i32
    %86 = tpu.dynamic_rotate %82 by %c495_i32_54 dim 1 : vector<8x512xf32>, i32 -> vector<8x512xf32>
    %87 = arith.maximumf %85, %86 : vector<8x512xf32>
    %88 = arith.maximumf %84, %87 : vector<8x512xf32>
    %89 = vector.extract_strided_slice %88 {offsets = [0, 0], sizes = [8, 256], strides = [1, 1]} : vector<8x512xf32> to vector<8x256xf32>
    %90 = vector.extract_strided_slice %89 {offsets = [0, 0], sizes = [1, 256], strides = [1, 1]} : vector<8x256xf32> to vector<1x256xf32>
    %91 = vector.extract_strided_slice %89 {offsets = [1, 0], sizes = [1, 256], strides = [1, 1]} : vector<8x256xf32> to vector<1x256xf32>
    %92 = vector.extract_strided_slice %89 {offsets = [2, 0], sizes = [1, 256], strides = [1, 1]} : vector<8x256xf32> to vector<1x256xf32>
    %93 = vector.extract_strided_slice %89 {offsets = [3, 0], sizes = [1, 256], strides = [1, 1]} : vector<8x256xf32> to vector<1x256xf32>
    %94 = vector.extract_strided_slice %89 {offsets = [4, 0], sizes = [1, 256], strides = [1, 1]} : vector<8x256xf32> to vector<1x256xf32>
    %95 = vector.extract_strided_slice %89 {offsets = [5, 0], sizes = [1, 256], strides = [1, 1]} : vector<8x256xf32> to vector<1x256xf32>
    %96 = vector.extract_strided_slice %89 {offsets = [6, 0], sizes = [1, 256], strides = [1, 1]} : vector<8x256xf32> to vector<1x256xf32>
    %97 = vector.extract_strided_slice %89 {offsets = [7, 0], sizes = [1, 256], strides = [1, 1]} : vector<8x256xf32> to vector<1x256xf32>
    %98 = tpu.concatenate %90, %91, %92, %93, %94, %95, %96, %97 in 1 : vector<1x256xf32>, vector<1x256xf32>, vector<1x256xf32>, vector<1x256xf32>, vector<1x256xf32>, vector<1x256xf32>, vector<1x256xf32>, vector<1x256xf32> -> vector<1x2048xf32>
    %99 = vector.extract_strided_slice %88 {offsets = [0, 256], sizes = [8, 256], strides = [1, 1]} : vector<8x512xf32> to vector<8x256xf32>
    %100 = vector.extract_strided_slice %99 {offsets = [0, 0], sizes = [1, 256], strides = [1, 1]} : vector<8x256xf32> to vector<1x256xf32>
    %101 = vector.extract_strided_slice %99 {offsets = [1, 0], sizes = [1, 256], strides = [1, 1]} : vector<8x256xf32> to vector<1x256xf32>
    %102 = vector.extract_strided_slice %99 {offsets = [2, 0], sizes = [1, 256], strides = [1, 1]} : vector<8x256xf32> to vector<1x256xf32>
    %103 = vector.extract_strided_slice %99 {offsets = [3, 0], sizes = [1, 256], strides = [1, 1]} : vector<8x256xf32> to vector<1x256xf32>
    %104 = vector.extract_strided_slice %99 {offsets = [4, 0], sizes = [1, 256], strides = [1, 1]} : vector<8x256xf32> to vector<1x256xf32>
    %105 = vector.extract_strided_slice %99 {offsets = [5, 0], sizes = [1, 256], strides = [1, 1]} : vector<8x256xf32> to vector<1x256xf32>
    %106 = vector.extract_strided_slice %99 {offsets = [6, 0], sizes = [1, 256], strides = [1, 1]} : vector<8x256xf32> to vector<1x256xf32>
    %107 = vector.extract_strided_slice %99 {offsets = [7, 0], sizes = [1, 256], strides = [1, 1]} : vector<8x256xf32> to vector<1x256xf32>
    %108 = tpu.concatenate %100, %101, %102, %103, %104, %105, %106, %107 in 1 : vector<1x256xf32>, vector<1x256xf32>, vector<1x256xf32>, vector<1x256xf32>, vector<1x256xf32>, vector<1x256xf32>, vector<1x256xf32>, vector<1x256xf32> -> vector<1x2048xf32>
    %109 = tpu.concatenate %98, %108 in 0 : vector<1x2048xf32>, vector<1x2048xf32> -> vector<2x2048xf32>
    %c0_55 = arith.constant 0 : index
    %c0_56 = arith.constant 0 : index
    %110 = vector.load %arg12[%c0_55, %c0_56] : memref<2048x10xf32, #tpu.memory_space<vmem>>, vector<2048x10xf32>
    %cst_57 = arith.constant dense<0.000000e+00> : vector<2x10xf32>
    %111 = tpu.matmul %109, %110, %cst_57 {dimension_numbers = #tpu.dot_dimension_numbers<[1], [0], [0], [1], [0, 0, 1, 1], [], []>} : vector<2x2048xf32>, vector<2048x10xf32>, vector<2x10xf32> -> vector<2x10xf32>
    %c0_58 = arith.constant 0 : index
    %c0_59 = arith.constant 0 : index
    %112 = vector.load %arg13[%c0_58, %c0_59] : memref<1x10xf32, #tpu.memory_space<vmem>>, vector<1x10xf32>
    %113 = vector.broadcast %112 : vector<1x10xf32> to vector<2x10xf32>
    %114 = arith.addf %111, %113 : vector<2x10xf32>
    %c0_60 = arith.constant 0 : index
    %c0_61 = arith.constant 0 : index
    %115 = vector.load %arg14[%c0_60, %c0_61] : memref<2x10xf32, #tpu.memory_space<vmem>>, vector<2x10xf32>
    tpu.vector_store %arg14[%c0_60, %c0_61], %114 {strides = array<i32>} : memref<2x10xf32, #tpu.memory_space<vmem>>, vector<2x10xf32>,
    return
  }
}

</mosaic_0001>

<bundles_post_ra>
// kernel: fashion_mnist_forward.1
= control target key start
LH: loop header
LB: loop body
LE: loop exit
PB: predicated region body
PF: predicated region fallthrough
CT: control target
= control target key end

     0   :  { %v55_v0 = vlaneseq  ;;  %s12002_s0 = inlined_call_operand.vmem [shape: f32[1,2048], index: 0, kind: input, shape index: {}]   ;;  %s12003_s1 = inlined_call_operand.vmem [shape: f32[8,9], index: 1, kind: input, shape index: {}]   ;;  %s12004_s2 = inlined_call_operand.vmem [shape: f32[8,1], index: 2, kind: input, shape index: {}]   ;;  %s12005_s3 = inlined_call_operand.vmem [shape: f32[8,72], index: 3, kind: input, shape index: {}]   ;;  %s12006_s4 = inlined_call_operand.vmem [shape: f32[8,1], index: 4, kind: input, shape index: {}]   ;;  %s12007_s5 = inlined_call_operand.vmem [shape: f32[8,72], index: 5, kind: input, shape index: {}]   ;;  %s12008_s6 = inlined_call_operand.vmem [shape: f32[8,1], index: 6, kind: input, shape index: {}]   ;;  %s12009_s7 = inlined_call_operand.vmem [shape: f32[8,72], index: 7, kind: input, shape index: {}]   ;;  %s12010_s8 = inlined_call_operand.vmem [shape: f32[8,1], index: 8, kind: input, shape index: {}]   ;;  %s12011_s9 = inlined_call_operand.vmem [shape: f32[1,2048], index: 9, kind: input, shape index: {}]   ;;  %s12012_s10 = inlined_call_operand.vmem [shape: f32[1,512], index: 10, kind: input, shape index: {}]   ;;  %s12013_s11 = inlined_call_operand.vmem [shape: f32[1024,256], index: 11, kind: input, shape index: {}]   ;;  %s12014_s12 = inlined_call_operand.vmem [shape: f32[2048,10], index: 12, kind: input, shape index: {}]   ;;  %s12015_s13 = inlined_call_operand.vmem [shape: f32[1,10], index: 13, kind: input, shape index: {}]   ;;  %s12016_s14 = inlined_call_operand.hbm [shape: f32[2,10], index: 14, kind: output, shape index: {}]  }
   0x1   :  { %19 = vsyncpa [#allocation3], 0  ;;  %v51_v2 = vld [vmem:[%s12002_s0] sm:$0xff]  ;;  %s7364_s15 = smov 31   ;;  %s7365_s16 = smov 32   ;;  %v52_v22 = vld [vmem:[%s12002_s0 + $0x8] sm:$0xff] }
   0x2   :  { %v56_v1 = vshrl.u32 %v55_v0, 7  ;;  %s7366_s17 = smov 33   ;;  %s7367_s18 = smov 1   ;;  %v12021_v40 = vmov 0.0   ;;  %v7667_v54 = vand.u32 127, %v55_v0  ;;  %vm817_vm4 = vcmask 1040384  }
   0x3   :  { %s7368_s19 = smov 127   ;;  %s7369_s20 = smov 97   ;;  %1130 = vmatprep.mubr.f32.mxu1 %v12021_v40  ;;  %1059 = vmatprep.mubr.f32.mxu0 %v12021_v40  ;;  %vm834_vm6 = vcmask 1041408   ;;  %vm12056_vm9 = vcmask 1042432   ;;  %vm868_vm10 = vcmask 1043456   ;;  %vm12092_vm11 = vcmask 1044480  }
   0x4   :  { %v7461_v3 = vsub.s32 2, %v56_v1  ;;  %v7463_v4 = vsub.s32 3, %v56_v1  ;;  %v7471_v7 = vsub.s32 1, %v56_v1  ;;  %v7473_v8 = vsub.s32 6, %v56_v1  ;;  %s7370_s23 = smov 96   ;;  %s7371_s0 = smov 95  }
   0x5   :  { %v7487_v13 = vsub.s32 4, %v56_v1  ;;  %v7489_v14 = vsub.s32 5, %v56_v1  ;;  %v7493_v15 = vsub.s32 7, %v56_v1  ;;  %v7523_v23 = vsub.s32 0, %v56_v1  ;;  %s7378_s24 = smov 113   ;;  %s7379_s25 = smov 112  }
   0x6   :  { %12140 = vst [vmem:[#allocation5_spill] sm:$0xff] %v7461_v3  ;;  %12141 = vst [vmem:[#allocation6_spill] sm:$0xff] %v7463_v4  ;;  %v7466_v5 = vrot.slane %v51_v2, %v7461_v3  ;;  %v7469_v6 = vrot.slane %v51_v2, %v7463_v4  ;;  %v7478_v10 = vrot.slane %v51_v2, %v7471_v7  ;;  %vm12044_vm0 = vcmp.lt.s32.totalorder %v7667_v54, 32 }
   0x7   :  { %12142 = vst [vmem:[#allocation7_spill] sm:$0xff] %v7471_v7  ;;  %12143 = vst [vmem:[#allocation8_spill] sm:$0xff] %v7473_v8  ;;  %v7481_v11 = vrot.slane %v51_v2, %v7473_v8  ;;  %v7496_v16 = vrot.slane %v51_v2, %v7487_v13  ;;  %v7499_v17 = vrot.slane %v51_v2, %v7489_v14  ;;  %vm12090_vm1 = vcmp.lt.s32.totalorder %v7667_v54, 31 }
   0x8   :  { %v6563_v9 = vpack.i.bf16 %v7469_v6, %v7466_v5  ;;  %12144 = vst [vmem:[#allocation9_spill] sm:$0xff] %v7487_v13  ;;  %12145 = vst [vmem:[#allocation10_spill] sm:$0xff] %v7489_v14  ;;  %v7504_v18 = vrot.slane %v51_v2, %v7493_v15  ;;  %v7526_v24 = vrot.slane %v52_v22, %v7461_v3  ;;  %vm169_vm2 = vcmp.lt.s32.totalorder %v7667_v54, 33 }
   0x9   :  { %v6558_v12 = vpack.i.bf16 %v7481_v11, %v7478_v10  ;;  %12146 = vst [vmem:[#allocation11_spill] sm:$0xff] %v7493_v15  ;;  %12147 = vst [vmem:[#allocation12_spill] sm:$0xff] %v7496_v16  ;;  %v6598_v19 = vpack.i.bf16 %v7496_v16, %v7469_v6  ;;  %v7529_v25 = vrot.slane %v52_v22, %v7463_v4  ;;  %vm316_vm3 = vcmp.lt.s32.totalorder %v7667_v54, 1 }
   0xa   :  { %6564 = vrot.lane.b32.xlu1 %v6563_v9, %s7364_s15  ;;  %6554 = vrot.lane.b32.xlu0 %v6563_v9, %s7365_s16  ;;  %12148 = vst [vmem:[#allocation13_spill] sm:$0xff] %v7499_v17  ;;  %v6593_v20 = vpack.i.bf16 %v7499_v17, %v7504_v18  ;;  %v6608_v21 = vpack.i.bf16 %v7504_v18, %v7466_v5  ;;  %12149 = vst [vmem:[#allocation14_spill] sm:$0xff] %v7523_v23  ;;  %vm365_vm5 = vcmp.lt.s32.totalorder %v7667_v54, 127  ;;  %vm12091_vm12 = vcmask 1045504  }
   0xb   :  { %v7534_v26 = vrot.slane %v52_v22, %v7523_v23  ;;  %v6643_v27 = vpack.i.bf16 %v7529_v25, %v7526_v24  ;;  %v7543_v29 = vrot.slane %v51_v2, %v7523_v23  ;;  %v7546_v30 = vrot.slane %v52_v22, %v7471_v7 }
   0xc   :  { %v7561_v32 = vrot.slane %v52_v22, %v7473_v8  ;;  %v7564_v33 = vrot.slane %v52_v22, %v7493_v15  ;;  %v7571_v35 = vrot.slane %v52_v22, %v7489_v14  ;;  %v7574_v36 = vrot.slane %v52_v22, %v7487_v13 }
   0xd   :  { %12150 = vst [vmem:[#allocation15_spill] sm:$0xff] %v7534_v26  ;;  %v6648_v28 = vpack.i.bf16 %v7481_v11, %v7534_v26  ;;  %12151 = vst [vmem:[#allocation16_spill] sm:$0xff] %v7546_v30  ;;  %v6653_v31 = vpack.i.bf16 %v7543_v29, %v7546_v30  ;;  %v6728_v39 = vpack.i.bf16 %v7478_v10, %v7526_v24  ;;  %vm414_vm7 = vcmp.lt.s32.totalorder %v7667_v54, 97 }
   0xe   :  { %6569 = vrot.lane.b32.xlu1 %v6563_v9, %s7366_s17  ;;  %6559 = vrot.lane.b32.xlu0 %v6558_v12, %s7365_s16  ;;  %v6708_v34 = vpack.i.bf16 %v7564_v33, %v7561_v32  ;;  %12152 = vst [vmem:[#allocation17_spill] sm:$0xff] %v7571_v35  ;;  %12153 = vst [vmem:[#allocation18_spill] sm:$0xff] %v7574_v36  ;;  %v6718_v37 = vpack.i.bf16 %v7496_v16, %v7571_v35  ;;  %vm12066_vm8 = vcmp.lt.s32.totalorder %v7667_v54, 96  ;;  %vm12075_vm14 = vcmask 1046528  }
   0xf   :  { %v6713_v38 = vpack.i.bf16 %v7574_v36, %v7529_v25  ;;  %v6773_v41 = vpack.i.bf16 %v7564_v33, %v7543_v29  ;;  %vm12076_vm13 = vcmp.lt.s32.totalorder %v7667_v54, 95  ;;  %vm7374_vm15 = vmmov 1  }
  0x12   :  { %6579 = vrot.lane.b32.xlu1 %v6563_v9, %s7367_s18  ;;  %6574 = vrot.lane.b32.xlu0 %v6558_v12, %s7364_s15 }
  0x16   :  { %6589 = vrot.lane.b32.xlu1 %v6558_v12, %s7367_s18  ;;  %6584 = vrot.lane.b32.xlu0 %v6558_v12, %s7366_s17 }
  0x1a   :  { %6599 = vrot.lane.b32.xlu1 %v6598_v19, %s7368_s19  ;;  %6594 = vrot.lane.b32.xlu0 %v6593_v20, %s7365_s16 }
  0x1e   :  { %6609 = vrot.lane.b32.xlu1 %v6608_v21, %s7368_s19  ;;  %6604 = vrot.lane.b32.xlu0 %v6593_v20, %s7364_s15 }
  0x22   :  { %6619 = vrot.lane.b32.xlu1 %v6593_v20, %s7366_s17  ;;  %6614 = vrot.lane.b32.xlu0 %v6598_v19, %s7369_s20 }
  0x26   :  { %6629 = vrot.lane.b32.xlu1 %v6608_v21, %s7369_s20  ;;  %6624 = vrot.lane.b32.xlu0 %v6593_v20, %s7367_s18 }
  0x2a   :  { %6639 = vrot.lane.b32.xlu1 %v6608_v21, %s7370_s23  ;;  %6634 = vrot.lane.b32.xlu0 %v6598_v19, %s7370_s23 }
  0x2e   :  { %6649 = vrot.lane.b32.xlu1 %v6648_v28, %s7368_s19  ;;  %6644 = vrot.lane.b32.xlu0 %v6643_v27, %s7365_s16 }
  0x32   :  { %6659 = vrot.lane.b32.xlu1 %v6643_v27, %s7364_s15  ;;  %6654 = vrot.lane.b32.xlu0 %v6653_v31, %s7365_s16 }
  0x36   :  { %6669 = vrot.lane.b32.xlu1 %v6598_v19, %s7371_s0  ;;  %6664 = vrot.lane.b32.xlu0 %v6648_v28, %s7369_s20 }
  0x3a   :  { %6679 = vrot.lane.b32.xlu1 %v6653_v31, %s7364_s15  ;;  %6674 = vrot.lane.b32.xlu0 %v6643_v27, %s7366_s17 }
  0x3e   :  { %6689 = vrot.lane.b32.xlu1 %v6648_v28, %s7370_s23  ;;  %6684 = vrot.lane.b32.xlu0 %v6643_v27, %s7367_s18 }
  0x42   :  { %6699 = vrot.lane.b32.xlu1 %v6653_v31, %s7366_s17  ;;  %6694 = vrot.lane.b32.xlu0 %v6608_v21, %s7371_s0 }
  0x46   :  { %6709 = vrot.lane.b32.xlu1 %v6708_v34, %s7365_s16  ;;  %6704 = vrot.lane.b32.xlu0 %v6653_v31, %s7367_s18 }
  0x4a   :  { %6719 = vrot.lane.b32.xlu1 %v6718_v37, %s7365_s16  ;;  %6714 = vrot.lane.b32.xlu0 %v6713_v38, %s7368_s19 }
  0x4e   :  { %6729 = vrot.lane.b32.xlu1 %v6728_v39, %s7368_s19  ;;  %6724 = vrot.lane.b32.xlu0 %v6708_v34, %s7364_s15 }
  0x52   :  { %6739 = vrot.lane.b32.xlu1 %v6648_v28, %s7371_s0  ;;  %6734 = vrot.lane.b32.xlu0 %v6713_v38, %s7369_s20 }
  0x56   :  { %6749 = vrot.lane.b32.xlu1 %v6718_v37, %s7364_s15  ;;  %6744 = vrot.lane.b32.xlu0 %v6708_v34, %s7366_s17 }
  0x5a   :  { %6759 = vrot.lane.b32.xlu1 %v6728_v39, %s7369_s20  ;;  %6754 = vrot.lane.b32.xlu0 %v6708_v34, %s7367_s18 }
  0x5e   :  { %161 = vrot.lane.b32.xlu1 %v7571_v35, %s7366_s17  ;;  %6764 = vrot.lane.b32.xlu0 %v6713_v38, %s7370_s23 }
  0x62   :  { %6769 = vrot.lane.b32.xlu1 %v6728_v39, %s7370_s23  ;;  %310 = vrot.lane.b32.xlu0 %v7571_v35, %s7367_s18 }
  0x66   :  { %361 = vrot.lane.b32.xlu1 %v7561_v32, %s7368_s19  ;;  %6774 = vrot.lane.b32.xlu0 %v6773_v41, %s7368_s19 }
  0x6a   :  { %6784 = vrot.lane.b32.xlu1 %v6713_v38, %s7371_s0  ;;  %6779 = vrot.lane.b32.xlu0 %v6773_v41, %s7369_s20 }
  0x6e   :  { %6789 = vrot.lane.b32.xlu1 %v6773_v41, %s7370_s23  ;;  %410 = vrot.lane.b32.xlu0 %v7561_v32, %s7369_s20 }
  0x72   :  { %459 = vrot.lane.b32.xlu1 %v7561_v32, %s7370_s23  ;;  %6794 = vrot.lane.b32.xlu0 %v6728_v39, %s7371_s0 }
  0x76   :  { %508 = vrot.lane.b32.xlu1 %v7561_v32, %s7371_s0  ;;  %6799 = vrot.lane.b32.xlu0 %v6773_v41, %s7371_s0 }
  0x7a   :  { %292 = vrot.lane.b32.xlu1 %v7496_v16, %s7367_s18  ;;  %143 = vrot.lane.b32.xlu0 %v7496_v16, %s7366_s17 }
  0x7c   :  { %v7622_v42 = vpop.permute.xlu1 %6564  ;;  %v7624_v43 = vpop.permute.xlu0 %6554 }
  0x7d   :  { %v12020_v57 = vunpack.i.h.bf16 %v7624_v43  ;;  %v6556_v58 = vunpack.i.l.bf16 %v7624_v43  ;;  %v12019_v59 = vunpack.i.h.bf16 %v7622_v42  ;;  %v6566_v60 = vunpack.i.l.bf16 %v7622_v42 }
  0x7e   :  { %392 = vrot.lane.b32.xlu1 %v7499_v17, %s7369_s20  ;;  %343 = vrot.lane.b32.xlu0 %v7499_v17, %s7368_s19 }
  0x7f   :  { %v231_v9 = vsel %vm12044_vm0, %v6556_v58, %v12020_v57  ;;  %v280_v12 = vsel %vm12090_vm1, %v6566_v60, %v12019_v59 }
  0x80   :  { %v7630_v44 = vpop.permute.xlu1 %6569  ;;  %v7632_v45 = vpop.permute.xlu0 %6559  ;;  %v548_v22 = vrot.slane %v231_v9, 7  ;;  %v596_v34 = vrot.slane %v280_v12, 6 }
  0x81   :  { %v12017_v61 = vunpack.i.h.bf16 %v7630_v44  ;;  %v6571_v62 = vunpack.i.l.bf16 %v7630_v44  ;;  %v12023_v19 = vunpack.i.l.bf16 %v7632_v45 }
  0x82   :  { %490 = vrot.lane.b32.xlu1 %v7499_v17, %s7371_s0  ;;  %441 = vrot.lane.b32.xlu0 %v7499_v17, %s7370_s23 }
  0x83   :  { %v182_v20 = vsel %vm169_vm2, %v6571_v62, %v12017_v61  ;;  %v232_v9 = vsel %vm12044_vm0, %v12023_v19, %v6556_v58 }
  0x84   :  { %v7638_v46 = vpop.permute.xlu1 %6579  ;;  %v7640_v47 = vpop.permute.xlu0 %6574  ;;  %v821_v41 = vsel %vm817_vm4, %v182_v20, %v548_v22  ;;  %v547_v19 = vrot.slane %v232_v9, 7 }
  0x85   :  { %v12018_v63 = vunpack.i.h.bf16 %v7638_v46  ;;  %v6581_v0 = vunpack.i.l.bf16 %v7638_v46  ;;  %v12026_v37 = vunpack.i.l.bf16 %v7640_v47  ;;  %v838_v40 = vsel %vm834_vm6, %v821_v41, %v596_v34 }
  0x86   :  { %251 = vrot.lane.b32.xlu1 %v7534_v26, %s7364_s15  ;;  %202 = vrot.lane.b32.xlu0 %v7534_v26, %s7365_s16 }
  0x87   :  { %v329_v21 = vsel %vm316_vm3, %v6581_v0, %v12018_v63  ;;  %v281_v59 = vsel %vm12090_vm1, %v12026_v37, %v6566_v60 }
  0x88   :  { %v7646_v48 = vpop.permute.xlu1 %6589  ;;  %v7648_v49 = vpop.permute.xlu0 %6584  ;;  %v644_v61 = vrot.slane %v329_v21, 5 }
  0x89   :  { %v12024_v27 = vunpack.i.l.bf16 %v7648_v49  ;;  %v12027_v63 = vunpack.i.l.bf16 %v7646_v48 }
  0x8a   :  { %300 = vrot.lane.b32.xlu1 %v7534_v26, %s7367_s18  ;;  %151 = vrot.lane.b32.xlu0 %v7534_v26, %s7366_s17  ;;  %v855_v60 = vsel %vm12056_vm9, %v838_v40, %v644_v61  ;;  %v6577_v40 = vunpack.i.h.bf16 %v7640_v47  ;;  %v595_v61 = vrot.slane %v281_v59, 6 }
  0x8b   :  { %v183_v58 = vsel %vm169_vm2, %v12024_v27, %v6571_v62  ;;  %v6562_v27 = vunpack.i.h.bf16 %v7632_v45  ;;  %v7768_v34 = vsel %vm316_vm3, %v12027_v63, %v6581_v0  ;;  %v7373_v63 = vmov 0  }
  0x8c   :  { %v7654_v50 = vpop.permute.xlu1 %6599  ;;  %v7656_v51 = vpop.permute.xlu0 %6594  ;;  %v820_v41 = vsel %vm817_vm4, %v183_v58, %v547_v19  ;;  %6803 = vset.pattern.permute.xlu0 %v7373_v63  ;;  %7049 = vset.pattern.permute.xlu1 %v7373_v63  ;;  %v6587_v63 = vunpack.i.h.bf16 %v7648_v49  ;;  %v872_v59 = vsel %vm868_vm10, %v855_v60, %v7469_v6 }
  0x8d   :  { %v12025_v38 = vunpack.i.h.bf16 %v7654_v50  ;;  %v12028_v39 = vunpack.i.l.bf16 %v7654_v50  ;;  %v12158_v8 = vunpack.i.l.bf16 %v7656_v51 }
  0x8e   :  { %400 = vrot.lane.b32.xlu1 %v7546_v30, %s7369_s20  ;;  %351 = vrot.lane.b32.xlu0 %v7546_v30, %s7368_s19 }
  0x8f   :  { %v377_v62 = vsel %vm365_vm5, %v12028_v39, %v12025_v38  ;;  %v937_v39 = vld [vmem:[%s12004_s2] sm:$0xff]  ;;  %v643_v38 = vrot.slane %v7768_v34, 5  ;;  %v12159_v34 = vunpack.i.h.bf16 %v7656_v51  ;;  %s7380_s2 = smov 111  }
  0x90   :  { %v7662_v52 = vpop.permute.xlu1 %6609  ;;  %v7664_v53 = vpop.permute.xlu0 %6604  ;;  %v692_v19 = vrot.slane %v377_v62, 3  ;;  %v837_v62 = vsel %vm834_vm6, %v820_v41, %v595_v61 }
  0x91   :  { %v12045_v6 = vunpack.i.h.bf16 %v7664_v53 }
  0x92   :  { %498 = vrot.lane.b32.xlu1 %v7546_v30, %s7371_s0  ;;  %449 = vrot.lane.b32.xlu0 %v7546_v30, %s7370_s23 }
  0x93   :  { %v277_v7 = vsel %vm12090_vm1, %v12045_v6, %v6577_v40 }
  0x94   :  { %v7673_v55 = vpop.permute.xlu1 %6619  ;;  %v7675_v56 = vpop.permute.xlu0 %6614 }
  0x95   :  { %v12029_v12 = vunpack.i.h.bf16 %v7675_v56  ;;  %v12156_v37 = vunpack.i.l.bf16 %v7675_v56 }
  0x96   :  { %259 = vrot.lane.b32.xlu1 %v7574_v36, %s7364_s15  ;;  %210 = vrot.lane.b32.xlu0 %v7574_v36, %s7365_s16 }
  0x97   :  { %v426_v0 = vsel %vm414_vm7, %v12156_v37, %v12029_v12  ;;  %v6592_v12 = vunpack.i.h.bf16 %v7646_v48 }
  0x98   :  { %v7693_v1 = vpop.permute.xlu1 %6629  ;;  %v7695_v2 = vpop.permute.xlu0 %6624  ;;  %v740_v14 = vrot.slane %v426_v0, 2 }
  0x99   :  { %v12162_v61 = vunpack.i.h.bf16 %v7695_v2  ;;  %v12170_v3 = vunpack.i.l.bf16 %v7693_v1 }
  0x9a   :  { %308 = vrot.lane.b32.xlu1 %v7574_v36, %s7367_s18  ;;  %159 = vrot.lane.b32.xlu0 %v7574_v36, %s7366_s17 }
  0x9b   :  { %v326_v41 = vsel %vm316_vm3, %v12162_v61, %v6592_v12 }
  0x9c   :  { %v7722_v28 = vpop.permute.xlu1 %6639  ;;  %v7724_v31 = vpop.permute.xlu0 %6634 }
  0x9d   :  { %12154 = vst [vmem:[#allocation19_spill] sm:$0xff] %v7724_v31  ;;  %v12038_v20 = vunpack.i.h.bf16 %v7724_v31  ;;  %v12039_v21 = vunpack.i.l.bf16 %v7724_v31 }
  0x9e   :  { %408 = vrot.lane.b32.xlu1 %v7571_v35, %s7369_s20  ;;  %359 = vrot.lane.b32.xlu0 %v7571_v35, %s7368_s19 }
  0x9f   :  { %v475_v37 = vsel %vm12066_vm8, %v12039_v21, %v12038_v20  ;;  %v227_v20 = vsel %vm12044_vm0, %v6562_v27, %v12158_v8  ;;  %v228_v21 = vsel %vm12044_vm0, %v12159_v34, %v6562_v27  ;;  %v889_v8 = vsel %vm12092_vm11, %v872_v59, %v692_v19  ;;  %vm7849_vm0 = vmpackc.low %vm817_vm4, %vm7374_vm15 }
  0xa0   :  { %v7748_v22 = vpop.permute.xlu1 %6649  ;;  %v7750_v57 = vpop.permute.xlu0 %6644  ;;  %v788_v60 = vrot.slane %v475_v37, 1  ;;  %v12161_v34 = vunpack.i.h.bf16 %v7673_v55  ;;  %v906_v59 = vsel %vm12091_vm12, %v889_v8, %v740_v14  ;;  %v551_v15 = vrot.slane %v228_v21, 7 }
  0xa1   :  { %12155 = vst [vmem:[#allocation20_spill] sm:$0xff] %v7750_v57  ;;  %v552_v14 = vrot.slane %v227_v20, 7  ;;  %v12165_v21 = vunpack.i.l.bf16 %v7654_v50  ;;  %v12166_v8 = vunpack.i.l.bf16 %v7662_v52  ;;  %v12167_v19 = vunpack.i.l.bf16 %v7673_v55 }
  0xa2   :  { %506 = vrot.lane.b32.xlu1 %v7571_v35, %s7371_s0  ;;  %457 = vrot.lane.b32.xlu0 %v7571_v35, %s7370_s23  ;;  %v179_v0 = vsel %vm169_vm2, %v12161_v34, %v6587_v63  ;;  %v923_v23 = vsel %vm12075_vm14, %v906_v59, %v788_v60  ;;  %v12169_v20 = vunpack.i.l.bf16 %v7675_v56  ;;  %vm943_vm15 = vcmask 72704  }
  0xa3   :  { %v378_v6 = vsel %vm365_vm5, %v12166_v8, %v12165_v21  ;;  %v824_v4 = vsel %vm817_vm4, %v179_v0, %v551_v15  ;;  %v647_v21 = vrot.slane %v326_v41, 5  ;;  %v12171_v8 = vunpack.i.l.bf16 %v7695_v2 }
  0xa4   :  { %v7788_v58 = vpop.permute.xlu1 %6659  ;;  %v7790_v9 = vpop.permute.xlu0 %6654  ;;  %v427_v36 = vsel %vm414_vm7, %v12170_v3, %v12169_v20  ;;  %v12173_v15 = vunpack.i.l.bf16 %v7724_v31  ;;  %v12174_v0 = vunpack.i.l.bf16 %v7722_v28  ;;  %v691_v41 = vrot.slane %v378_v6, 3 }
  0xa5   :  { %12157 = vst [vmem:[#allocation21_spill] sm:$0xff] %v7788_v58  ;;  %v854_v20 = vsel %vm12056_vm9, %v837_v62, %v643_v38  ;;  %v12177_v6 = vunpack.i.h.bf16 %v7748_v22  ;;  %v12057_v62 = vunpack.i.h.bf16 %v7750_v57 }
  0xa6   :  { %940 = vperm.xlu0 %6803, %v937_v39   ;;  %v476_v35 = vsel %vm12066_vm8, %v12174_v0, %v12173_v15 }
  0xa7   :  { %v787_v3 = vrot.slane %v476_v35, 1 }
  0xa8   :  { %v7818_v39 = vpop.permute.xlu1 %6669  ;;  %v7820_v13 = vpop.permute.xlu0 %6664 }
  0xa9   :  { %12160 = vst [vmem:[#allocation22_spill] sm:$0xff] %v7818_v39  ;;  %v12046_v27 = vunpack.i.h.bf16 %v7818_v39  ;;  %v12047_v37 = vunpack.i.l.bf16 %v7818_v39 }
  0xab   :  { %v524_v34 = vsel %vm12076_vm13, %v12047_v37, %v12046_v27  ;;  %v178_v27 = vsel %vm169_vm2, %v6587_v63, %v12167_v19  ;;  %v325_v63 = vsel %vm316_vm3, %v6592_v12, %v12171_v8  ;;  %v12172_v19 = vunpack.i.l.bf16 %v7664_v53 }
  0xac   :  { %v7863_v60 = vpop.permute.xlu1 %6679  ;;  %v7865_v59 = vpop.permute.xlu0 %6674  ;;  %v5521_v37 = vpack.c.bf16 %v524_v34, %v923_v23  ;;  %v599_v34 = vrot.slane %v277_v7, 6  ;;  %v6612_v12 = vunpack.i.h.bf16 %v7662_v52  ;;  %v739_v8 = vrot.slane %v427_v36, 2 }
  0xad   :  { %12168 = vst [vmem:[#allocation23_spill] sm:$0xff] %v7865_v59  ;;  %v276_v23 = vsel %vm12090_vm1, %v6577_v40, %v12172_v19  ;;  %v825_v40 = vsel %vm817_vm4, %v178_v27, %v552_v14  ;;  %v648_v19 = vrot.slane %v325_v63, 5  ;;  %v871_v36 = vsel %vm868_vm10, %v854_v20, %v7466_v5 }
  0xae   :  { %5523 = vmatprep.subr.msk.bf16.mxu1 %vm7849_vm0, %v5521_v37  ;;  %v841_v7 = vsel %vm834_vm6, %v824_v4, %v599_v34  ;;  %v600_v15 = vrot.slane %v276_v23, 6  ;;  %v12058_v37 = vunpack.i.l.bf16 %v7748_v22  ;;  %v374_v38 = vsel %vm365_vm5, %v12177_v6, %v6612_v12 }
  0xaf   :  { %v858_v0 = vsel %vm12056_vm9, %v841_v7, %v647_v21  ;;  %v6646_v4 = vunpack.i.l.bf16 %v7750_v57  ;;  %v6632_v14 = vunpack.i.h.bf16 %v7693_v1  ;;  %v888_v35 = vsel %vm12092_vm11, %v871_v36, %v691_v41 }
  0xb0   :  { %v7895_v26 = vpop.permute.xlu1 %6689  ;;  %v7897_v30 = vpop.permute.xlu0 %6684  ;;  %v842_v27 = vsel %vm834_vm6, %v825_v40, %v600_v15  ;;  %v6642_v63 = vunpack.i.h.bf16 %v7722_v28  ;;  %v875_v23 = vsel %vm868_vm10, %v858_v0, %v7481_v11  ;;  %v905_v6 = vsel %vm12091_vm12, %v888_v35, %v739_v8 }
  0xb1   :  { %12175 = vst [vmem:[#allocation24_spill] sm:$0xff] %v7895_v26  ;;  %12176 = vst [vmem:[#allocation25_spill] sm:$0xff] %v7897_v30  ;;  %v859_v21 = vsel %vm12056_vm9, %v842_v27, %v648_v19  ;;  %v373_v5 = vsel %vm365_vm5, %v6612_v12, %v12058_v37  ;;  %v695_v41 = vrot.slane %v374_v38, 3  ;;  %v12063_v20 = vunpack.i.h.bf16 %v7820_v13 }
  0xb2   :  { %v922_v40 = vsel %vm12075_vm14, %v905_v6, %v787_v3  ;;  %vm12179_vm9 = vcmp.lt.s32.totalorder %v7667_v54, 32  ;;  %v12065_v8 = vunpack.i.l.bf16 %v7820_v13  ;;  %v6661_v0 = vunpack.i.l.bf16 %v7788_v58 }
  0xb3   :  { %v223_v11 = vsel %vm12179_vm9, %v6646_v4, %v12057_v62  ;;  %v6676_v38 = vunpack.i.l.bf16 %v7865_v59  ;;  %v6686_v35 = vunpack.i.l.bf16 %v7897_v30  ;;  %v12180_v37 = vunpack.i.l.bf16 %v7818_v39 }
  0xb4   :  { %v7916_v34 = vpop.permute.xlu1 %6699  ;;  %v7918_v7 = vpop.permute.xlu0 %6694  ;;  %v696_v19 = vrot.slane %v373_v5, 3  ;;  %v423_v27 = vsel %vm414_vm7, %v12063_v20, %v6632_v14  ;;  %v422_v57 = vsel %vm414_vm7, %v6632_v14, %v12065_v8  ;;  %v876_v5 = vsel %vm868_vm10, %v859_v21, %v7504_v18 }
  0xb5   :  { %12178 = vst [vmem:[#allocation26_spill] sm:$0xff] %v7916_v34  ;;  %v12062_v15 = vunpack.i.l.bf16 %v7918_v7  ;;  %v556_v3 = vrot.slane %v223_v11, 7  ;;  %v12181_v36 = vunpack.i.h.bf16 %v7788_v58  ;;  %v12182_v17 = vunpack.i.h.bf16 %v7865_v59 }
  0xb6   :  { %v12183_v8 = vunpack.i.h.bf16 %v7895_v26  ;;  %v12184_v18 = vunpack.i.l.bf16 %v7895_v26  ;;  %v893_v31 = vsel %vm12092_vm11, %v876_v5, %v696_v19  ;;  %v12190_v39 = vunpack.i.l.bf16 %v7790_v9 }
  0xb7   :  { %v525_v12 = vsel %vm12076_vm13, %v12062_v15, %v12180_v37  ;;  %v892_v15 = vsel %vm12092_vm11, %v875_v23, %v695_v41  ;;  %v272_v20 = vsel %vm12090_vm1, %v6661_v0, %v12181_v36  ;;  %v174_v14 = vsel %vm169_vm2, %v6676_v38, %v12182_v17 }
  0xb8   :  { %v7941_v6 = vpop.permute.xlu1 %6709  ;;  %v7943_v62 = vpop.permute.xlu0 %6704  ;;  %v5524_v37 = vpack.c.bf16 %v525_v12, %v922_v40  ;;  %v472_v40 = vsel %vm12066_vm8, %v12183_v8, %v6642_v63  ;;  %v471_v21 = vsel %vm12066_vm8, %v6642_v63, %v12184_v18  ;;  %v12185_v23 = vunpack.i.h.bf16 %v7897_v30  ;;  %v7995_v8 = vld [vmem:[%s12003_s1] sm:$0xff]  ;;  %vm12191_vm8 = vmmov %vm12179_vm9 }
  0xb9   :  { %v12188_v12 = vunpack.i.l.bf16 %v7632_v45  ;;  %v12189_v63 = vunpack.i.h.bf16 %v7790_v9  ;;  %v743_v18 = vrot.slane %v423_v27, 2  ;;  %v224_v59 = vsel %vm12191_vm8, %v12190_v39, %v6646_v4 }
  0xba   :  { %v321_v41 = vsel %vm316_vm3, %v6686_v35, %v12185_v23  ;;  %5526 = vmatpush1.bf16.msk.msra.mxu1 %vm7849_vm0, %v5524_v37  ;;  %v744_v23 = vrot.slane %v422_v57, 2  ;;  %v12192_v30 = vunpack.i.l.bf16 %v7640_v47  ;;  %v12193_v45 = vunpack.i.h.bf16 %v7863_v60 }
  0xbb   :  { %v233_v36 = vsel %vm12179_vm9, %v12189_v63, %v12188_v12  ;;  %v12194_v27 = vunpack.i.l.bf16 %v7863_v60  ;;  %v829_v19 = vsel %vm817_vm4, %v174_v14, %v556_v3  ;;  %v791_v5 = vrot.slane %v472_v40, 1 }
  0xbc   :  { %v7988_v11 = vpop.permute.xlu1 %6719  ;;  %v7990_v17 = vpop.permute.xlu0 %6714  ;;  %v8015_v58 = vsel %vm12090_vm1, %v12193_v45, %v12192_v30  ;;  %v792_v12 = vrot.slane %v471_v21, 1  ;;  %v652_v63 = vrot.slane %v321_v41, 5  ;;  %v604_v47 = vrot.slane %v272_v20, 6 }
  0xbd   :  { %12186 = vst [vmem:[#allocation27_spill] sm:$0xff] %v7988_v11  ;;  %12187 = vst [vmem:[#allocation28_spill] sm:$0xff] %v7990_v17  ;;  %v273_v57 = vsel %vm12090_vm1, %v12194_v27, %v6661_v0  ;;  %5191 = vmatmul.mubr.msk.f32.vlgmr.msra.gmra.mrb[0].mxu1 %vm943_vm15, %v7995_v8  ;;  %v546_v39 = vrot.slane %v233_v36, 7  ;;  %v12195_v26 = vmov 0.0   ;;  %v555_v0 = vrot.slane %v224_v59, 7 }
  0xbe   :  { %1272 = vmatprep.mubr.f32.mxu1 %v12195_v26  ;;  %v12196_v3 = vunpack.i.l.bf16 %v7916_v34  ;;  %v909_v40 = vsel %vm12091_vm12, %v892_v15, %v743_v18  ;;  %v910_v20 = vsel %vm12091_vm12, %v893_v31, %v744_v23  ;;  %v594_v21 = vrot.slane %v8015_v58, 6 }
  0xbf   :  { %v603_v41 = vrot.slane %v273_v57, 6  ;;  %v846_v36 = vsel %vm834_vm6, %v829_v19, %v604_v47  ;;  %v12074_v27 = vunpack.i.h.bf16 %v7943_v62  ;;  %vm12197_vm8 = vcmask 1042432  }
  0xc0   :  { %v8026_v45 = vpop.permute.xlu1 %6729  ;;  %v8028_v37 = vpop.permute.xlu0 %6724  ;;  %v175_v14 = vsel %vm169_vm2, %v12196_v3, %v6676_v38  ;;  %v863_v30 = vsel %vm12197_vm8, %v846_v36, %v652_v63  ;;  %v6697_v59 = vunpack.i.h.bf16 %v7918_v7  ;;  %v926_v4 = vsel %vm12075_vm14, %v909_v40, %v791_v5  ;;  %vm12205_vm8 = vmmov %vm12179_vm9 }
  0xc1   :  { %v927_v16 = vsel %vm12075_vm14, %v910_v20, %v792_v12  ;;  %v12198_v38 = vunpack.i.l.bf16 %v7648_v49  ;;  %v12199_v15 = vunpack.i.h.bf16 %v7916_v34  ;;  %v828_v58 = vsel %vm817_vm4, %v175_v14, %v555_v0  ;;  %vm12207_vm14 = vmmov %vm12205_vm8 }
  0xc2   :  { %v6711_v18 = vunpack.i.l.bf16 %v7941_v6  ;;  %v12200_v23 = vunpack.i.l.bf16 %v7943_v62  ;;  %v6712_v49 = vunpack.i.h.bf16 %v7941_v6  ;;  %v6722_v12 = vunpack.i.h.bf16 %v7988_v11 }
  0xc3   :  { %v184_v31 = vsel %vm169_vm2, %v12199_v15, %v12198_v38  ;;  %v12202_v0 = vunpack.i.l.bf16 %v7646_v48  ;;  %v12077_v14 = vunpack.i.h.bf16 %v7990_v17  ;;  %v6716_v40 = vunpack.i.l.bf16 %v7990_v17 }
  0xc4   :  { %v322_v57 = vsel %vm316_vm3, %v12200_v23, %v6686_v35  ;;  %v8056_v19 = vpop.permute.xlu1 %6739  ;;  %v8058_v5 = vpop.permute.xlu0 %6734  ;;  %v12078_v35 = vunpack.i.l.bf16 %v7988_v11  ;;  %v819_v6 = vsel %vm817_vm4, %v184_v31, %v546_v39  ;;  %v845_v38 = vsel %vm834_vm6, %v828_v58, %v603_v41 }
  0xc5   :  { %12201 = vst [vmem:[#allocation29_spill] sm:$0xff] %v8058_v5  ;;  %v12080_v63 = vunpack.i.h.bf16 %v8056_v19  ;;  %v12073_v47 = vunpack.i.l.bf16 %v8056_v19  ;;  %v331_v3 = vsel %vm316_vm3, %v12074_v27, %v12202_v0  ;;  %v651_v20 = vrot.slane %v322_v57, 5 }
  0xc6   :  { %v8085_v15 = vsel %vm12179_vm9, %v6711_v18, %v6712_v49  ;;  %v12204_v57 = vunpack.i.h.bf16 %v7790_v9  ;;  %v642_v27 = vrot.slane %v331_v3, 5  ;;  %vm12209_vm9 = vmmov %vm12205_vm8  ;;  %v12081_v3 = vunpack.i.h.bf16 %v8026_v45 }
  0xc7   :  { %v520_v36 = vsel %vm12076_vm13, %v6697_v59, %v12073_v47  ;;  %v521_v48 = vsel %vm12076_vm13, %v12080_v63, %v6697_v59  ;;  %v12206_v59 = vunpack.i.h.bf16 %v7656_v51  ;;  %vm12210_vm13 = vmmov %vm12205_vm8  ;;  %v12217_v17 = vunpack.i.h.bf16 %v8058_v5 }
  0xc8   :  { %v5536_v23 = vpack.c.bf16 %v521_v48, %v926_v4  ;;  %v8087_v0 = vpop.permute.xlu1 %6749  ;;  %v8089_v39 = vpop.permute.xlu0 %6744  ;;  %v5533_v31 = vpack.c.bf16 %v520_v36, %v927_v16  ;;  %v8095_v47 = vsel %vm12205_vm8, %v6712_v49, %v12204_v57  ;;  %v12208_v4 = vunpack.i.h.bf16 %v7624_v43 }
  0xc9   :  { %12203 = vst [vmem:[#allocation30_spill] sm:$0xff] %v8087_v0  ;;  %v8101_v41 = vsel %vm12207_vm14, %v6722_v12, %v12206_v59  ;;  %v8113_v16 = vsel %vm12210_vm13, %v12078_v35, %v6711_v18  ;;  %v369_v49 = vsel %vm365_vm5, %v6716_v40, %v12077_v14  ;;  %v12079_v36 = vunpack.i.l.bf16 %v8026_v45 }
  0xca   :  { %v8107_v58 = vsel %vm12209_vm9, %v12208_v4, %v6722_v12  ;;  %5535 = vmatprep.subr.msk.bf16.mxu1 %vm7849_vm0, %v5533_v31  ;;  %vm12211_vm14 = vcmask 1042432   ;;  %v880_v12 = vsel %vm868_vm10, %v863_v30, %v7529_v25  ;;  %v6727_v18 = vunpack.i.h.bf16 %v8028_v37 }
  0xcb   :  { %v862_v43 = vsel %vm12211_vm14, %v845_v38, %v651_v20  ;;  %5538 = vmatpush1.bf16.msk.msra.mxu1 %vm7849_vm0, %v5536_v23  ;;  %v836_v48 = vsel %vm834_vm6, %v819_v6, %v594_v21  ;;  %v545_v57 = vrot.slane %v8095_v47, 7  ;;  %v560_v59 = vrot.slane %v8085_v15, 7  ;;  %vm12213_vm13 = vmmov %vm12211_vm14 }
  0xcc   :  { %v6726_v4 = vunpack.i.l.bf16 %v8028_v37  ;;  %v8133_v14 = vpop.permute.xlu1 %6759  ;;  %v6755_v31 = vpop.permute.xlu0 %6754  ;;  %v559_v30 = vrot.slane %v8113_v16, 7  ;;  %v700_v38 = vrot.slane %v369_v49, 3  ;;  %v12212_v23 = vunpack.i.l.bf16 %v7662_v52  ;;  %vm12227_vm9 = vmmov %vm12213_vm13 }
  0xcd   :  { %v370_v37 = vsel %vm365_vm5, %v12079_v36, %v6716_v40  ;;  %v879_v47 = vsel %vm868_vm10, %v862_v43, %v7526_v24  ;;  %v853_v6 = vsel %vm12213_vm13, %v836_v48, %v642_v27  ;;  %v12214_v52 = vunpack.i.h.bf16 %v7863_v60  ;;  %vm12229_vm13 = vmmov %vm12227_vm9 }
  0xce   :  { %v379_v21 = vsel %vm365_vm5, %v12081_v3, %v12212_v23  ;;  %5197 = vmatmul.mubr.msk.f32.vlgmr.msra.gmra.mrb[2].mxu1 %vm943_vm15, %v7995_v8  ;;  %v6736_v49 = vunpack.i.l.bf16 %v8058_v5  ;;  %v6747_v23 = vunpack.i.h.bf16 %v8089_v39  ;;  %v268_v24 = vsel %vm12090_vm1, %v6726_v4, %v6727_v18 }
  0xcf   :  { %v283_v15 = vsel %vm12090_vm1, %v6727_v18, %v12214_v52  ;;  %1414 = vmatprep.mubr.f32.mxu1 %v12195_v26  ;;  %v6746_v27 = vunpack.i.l.bf16 %v8089_v39  ;;  %v6757_v40 = vunpack.i.h.bf16 %v6755_v31  ;;  %v6756_v43 = vunpack.i.l.bf16 %v6755_v31 }
  0xd0   :  { %v8164_v48 = vpop.permute.xlu1 %161  ;;  %v8166_v35 = vpop.permute.xlu0 %6764  ;;  %v690_v52 = vrot.slane %v379_v21, 3  ;;  %v699_v36 = vrot.slane %v370_v37, 3  ;;  %v12086_v63 = vunpack.i.h.bf16 %v8133_v14  ;;  %v897_v20 = vsel %vm12092_vm11, %v880_v12, %v700_v38 }
  0xd1   :  { %12215 = vst [vmem:[#allocation31_spill] sm:$0xff] %v8164_v48  ;;  %12216 = vst [vmem:[#allocation32_spill] sm:$0xff] %v8166_v35  ;;  %v6752_v3 = vunpack.i.h.bf16 %v8087_v0  ;;  %v870_v39 = vsel %vm868_vm10, %v853_v6, %v7478_v10  ;;  %v593_v31 = vrot.slane %v283_v15, 6  ;;  %v608_v16 = vrot.slane %v268_v24, 6 }
  0xd2   :  { %v418_v21 = vsel %vm414_vm7, %v6736_v49, %v12217_v17  ;;  %v12218_v37 = vunpack.i.h.bf16 %v7916_v34  ;;  %v170_v12 = vsel %vm169_vm2, %v6746_v27, %v6747_v23  ;;  %v317_v38 = vsel %vm316_vm3, %v6756_v43, %v6757_v40 }
  0xd3   :  { %v6766_v6 = vunpack.i.l.bf16 %v8166_v35  ;;  %v896_v17 = vsel %vm12092_vm11, %v879_v47, %v699_v36  ;;  %v12219_v18 = vunpack.i.l.bf16 %v7693_v1  ;;  %v887_v5 = vsel %vm12092_vm11, %v870_v39, %v690_v52 }
  0xd4   :  { %v185_v25 = vsel %vm169_vm2, %v6747_v23, %v12218_v37  ;;  %v8189_v15 = vpop.permute.xlu1 %6769  ;;  %v8191_v24 = vpop.permute.xlu0 %310  ;;  %v12220_v37 = vunpack.i.l.bf16 %v8133_v14  ;;  %v748_v11 = vrot.slane %v418_v21, 2  ;;  %v12221_v34 = vunpack.i.h.bf16 %v7664_v53 }
  0xd5   :  { %v428_v23 = vsel %vm414_vm7, %v12086_v63, %v12219_v18  ;;  %v12222_v1 = vunpack.i.l.bf16 %v8087_v0  ;;  %v818_v18 = vsel %vm817_vm4, %v185_v25, %v545_v57  ;;  %v833_v63 = vsel %vm817_vm4, %v170_v12, %v560_v59 }
  0xd6   :  { %v419_v10 = vsel %vm414_vm7, %v12220_v37, %v6736_v49  ;;  %v8209_v36 = vsel %vm12090_vm1, %v6752_v3, %v12221_v34  ;;  %v12223_v49 = vunpack.i.h.bf16 %v7943_v62  ;;  %v656_v39 = vrot.slane %v317_v38, 5 }
  0xd7   :  { %v269_v47 = vsel %vm12090_vm1, %v12222_v1, %v6726_v4  ;;  %v171_v34 = vsel %vm169_vm2, %v8164_v48, %v6746_v27  ;;  %v738_v21 = vrot.slane %v428_v23, 2  ;;  %v747_v37 = vrot.slane %v419_v10, 2 }
  0xd8   :  { %v332_v52 = vsel %vm316_vm3, %v6757_v40, %v12223_v49  ;;  %v12224_v0 = vunpack.i.h.bf16 %v8166_v35  ;;  %vm12225_vm8 = vcmp.lt.s32.totalorder %v7667_v54, 96  ;;  %v318_v57 = vsel %vm316_vm3, %v8191_v24, %v6756_v43  ;;  %v8231_v59 = vpop.permute.xlu1 %361  ;;  %v6775_v25 = vpop.permute.xlu0 %6774 }
  0xd9   :  { %v12226_v40 = vunpack.i.h.bf16 %v7622_v42  ;;  %v607_v27 = vrot.slane %v269_v47, 6  ;;  %v835_v38 = vsel %vm834_vm6, %v818_v18, %v593_v31  ;;  %v6771_v10 = vunpack.i.l.bf16 %v8189_v15  ;;  %vm12228_vm14 = vmmov %vm12225_vm8 }
  0xda   :  { %v467_v4 = vsel %vm12225_vm8, %v6766_v6, %v12224_v0  ;;  %v850_v0 = vsel %vm834_vm6, %v833_v63, %v608_v16  ;;  %v641_v23 = vrot.slane %v332_v52, 5  ;;  %v832_v1 = vsel %vm817_vm4, %v171_v34, %v559_v30  ;;  %vm12230_vm8 = vmmov %vm12227_vm9 }
  0xdb   :  { %v8237_v12 = vsel %vm12090_vm1, %v12226_v40, %v6752_v3  ;;  %v914_v43 = vsel %vm12091_vm12, %v897_v20, %v748_v11  ;;  %v867_v49 = vsel %vm12227_vm9, %v850_v0, %v656_v39  ;;  %v796_v35 = vrot.slane %v467_v4, 1 }
  0xdc   :  { %v6772_v42 = vunpack.i.h.bf16 %v8189_v15  ;;  %v655_v48 = vrot.slane %v318_v57, 5  ;;  %v6777_v3 = vunpack.i.h.bf16 %v6775_v25  ;;  %v6776_v40 = vunpack.i.l.bf16 %v6775_v25  ;;  %v8246_v47 = vpop.permute.xlu1 %6784  ;;  %v6780_v31 = vpop.permute.xlu0 %6779 }
  0xdd   :  { %v913_v18 = vsel %vm12091_vm12, %v896_v17, %v747_v37  ;;  %v904_v63 = vsel %vm12091_vm12, %v887_v5, %v738_v21  ;;  %v468_v11 = vsel %vm12228_vm14, %v6771_v10, %v6766_v6  ;;  %v6787_v20 = vunpack.i.h.bf16 %v8246_v47 }
  0xde   :  { %v6786_v30 = vunpack.i.l.bf16 %v8246_v47  ;;  %v6781_v16 = vunpack.i.l.bf16 %v6780_v31  ;;  %v852_v52 = vsel %vm12229_vm13, %v835_v38, %v641_v23  ;;  %v849_v39 = vsel %vm834_vm6, %v832_v1, %v607_v27 }
  0xdf   :  { %v884_v34 = vsel %vm868_vm10, %v867_v49, %v7564_v33  ;;  %v6782_v17 = vunpack.i.h.bf16 %v6780_v31  ;;  %v866_v5 = vsel %vm12230_vm8, %v849_v39, %v655_v48  ;;  %vm12231_vm9 = vcmp.lt.s32.totalorder %v7667_v54, 95 }
  0xe0   :  { %v516_v6 = vsel %vm12231_vm9, %v6786_v30, %v6787_v20  ;;  %vm12232_vm14 = vcmask 1046528   ;;  %v12233_v37 = vunpack.i.l.bf16 %v7722_v28  ;;  %vm12234_vm1 = vcmp.lt.s32.totalorder %v7667_v54, 96  ;;  %v6790_v25 = vpop.permute.xlu1 %6789  ;;  %v8275_v27 = vpop.permute.xlu0 %410 }
  0xe1   :  { %v931_v21 = vsel %vm12232_vm14, %v914_v43, %v796_v35  ;;  %v795_v57 = vrot.slane %v468_v11, 1  ;;  %v366_v33 = vsel %vm365_vm5, %v8231_v59, %v6777_v3  ;;  %v381_v48 = vsel %vm365_vm5, %v6777_v3, %v6776_v40  ;;  %vm12237_vm13 = vmmov %vm12234_vm1 }
  0xe2   :  { %v477_v4 = vsel %vm12234_vm1, %v6772_v42, %v12233_v37  ;;  %v5545_v38 = vpack.c.bf16 %v516_v6, %v931_v21  ;;  %v12235_v0 = vunpack.i.h.bf16 %v8026_v45  ;;  %v12236_v35 = vunpack.i.h.bf16 %v8133_v14  ;;  %vm12238_vm8 = vmmov %vm12232_vm14 }
  0xe3   :  { %v6792_v1 = vunpack.i.h.bf16 %v6790_v25  ;;  %v6791_v43 = vunpack.i.l.bf16 %v6790_v25  ;;  %v883_v49 = vsel %vm868_vm10, %v866_v5, %v7561_v32  ;;  %v430_v3 = vsel %vm414_vm7, %v6782_v17, %v6781_v16  ;;  %vm12239_vm9 = vmmov %vm12234_vm1 }
  0xe4   :  { %v380_v28 = vsel %vm365_vm5, %v6776_v40, %v12235_v0  ;;  %v429_v23 = vsel %vm414_vm7, %v6781_v16, %v12236_v35  ;;  %5547 = vmatprep.subr.msk.bf16.mxu1 %vm7849_vm0, %v5545_v38  ;;  %v786_v31 = vrot.slane %v477_v4, 1  ;;  %v869_v40 = vsel %vm868_vm10, %v852_v52, %v7543_v29  ;;  %v8300_v37 = vpop.permute.xlu1 %459  ;;  %v8302_v4 = vpop.permute.xlu0 %6794  ;;  %vm12240_vm14 = vmmov %vm12238_vm8 }
  0xe5   :  { %v704_v11 = vrot.slane %v381_v48, 3  ;;  %v478_v39 = vsel %vm12234_vm1, %v6791_v43, %v6772_v42  ;;  %v479_v6 = vsel %vm12237_vm13, %v6792_v1, %v6791_v43  ;;  %v415_v32 = vsel %vm414_vm7, %v8275_v27, %v6782_v17 }
  0xe6   :  { %v703_v5 = vrot.slane %v366_v33, 3  ;;  %v689_v16 = vrot.slane %v380_v28, 3  ;;  %v737_v21 = vrot.slane %v429_v23, 2  ;;  %v930_v29 = vsel %vm12238_vm8, %v913_v18, %v795_v57 }
  0xe7   :  { %v752_v52 = vrot.slane %v430_v3, 2  ;;  %v464_v42 = vsel %vm12239_vm9, %v8300_v37, %v6792_v1  ;;  %v6797_v48 = vunpack.i.h.bf16 %v8302_v4  ;;  %v6796_v25 = vunpack.i.l.bf16 %v8302_v4  ;;  %vm12244_vm9 = vmmov %vm12238_vm8 }
  0xe8   :  { %v785_v38 = vrot.slane %v478_v39, 1  ;;  %v800_v17 = vrot.slane %v479_v6, 1  ;;  %v751_v33 = vrot.slane %v415_v32, 2  ;;  %v921_v0 = vsel %vm12240_vm14, %v904_v63, %v786_v31  ;;  %v8321_v3 = vpop.permute.xlu1 %508  ;;  %v6800_v39 = vpop.permute.xlu0 %6799  ;;  %vm12245_vm14 = vmmov %vm12238_vm8 }
  0xe9   :  { %v901_v28 = vsel %vm12092_vm11, %v884_v34, %v704_v11  ;;  %v799_v35 = vrot.slane %v464_v42, 1  ;;  %vm12241_vm1 = vcmp.lt.s32.totalorder %v7667_v54, 95  ;;  %v12242_v57 = vunpack.i.l.bf16 %v7918_v7 }
  0xea   :  { %v517_v18 = vsel %vm12241_vm1, %v6796_v25, %v6786_v30  ;;  %vm12243_vm13 = vmmov %vm12241_vm1  ;;  %v900_v1 = vsel %vm12092_vm11, %v883_v49, %v703_v5  ;;  %v886_v34 = vsel %vm12092_vm11, %v869_v40, %v689_v16  ;;  %v6802_v31 = vunpack.i.h.bf16 %v6800_v39 }
  0xeb   :  { %v526_v23 = vsel %vm12243_vm13, %v6797_v48, %v12242_v57  ;;  %v5548_v43 = vpack.c.bf16 %v517_v18, %v930_v29  ;;  %v6801_v11 = vunpack.i.l.bf16 %v6800_v39  ;;  %v903_v6 = vsel %vm12091_vm12, %v886_v34, %v737_v21  ;;  %vm12246_vm13 = vmmov %vm12241_vm1 }
  0xec   :  { %v5515_v63 = vpack.c.bf16 %v526_v23, %v921_v0  ;;  %v918_v30 = vsel %vm12091_vm12, %v901_v28, %v752_v52  ;;  %v597_v7 = vrot.slane %v8237_v12, 6  ;;  %v917_v32 = vsel %vm12091_vm12, %v900_v1, %v751_v33  ;;  %vm12247_vm12 = vmmov %vm12241_vm1  ;;  %v293_v42 = vpop.permute.xlu1 %292  ;;  %v144_v33 = vpop.permute.xlu0 %143 }
  0xed   :  { %5550 = vmatpush1.bf16.msk.msra.mxu1 %vm7849_vm0, %v5548_v43  ;;  %v920_v49 = vsel %vm12238_vm8, %v903_v6, %v785_v38  ;;  %v935_v40 = vsel %vm12244_vm9, %v918_v30, %v800_v17  ;;  %v934_v5 = vsel %vm12245_vm14, %v917_v32, %v799_v35  ;;  %v513_v16 = vsel %vm12241_vm1, %v8321_v3, %v6802_v31 }
  0xee   :  { %5517 = vmatprep.subr.msk.bf16.mxu0 %vm7849_vm0, %v5515_v63  ;;  %v528_v12 = vsel %vm12246_vm13, %v6802_v31, %v6801_v11  ;;  %v527_v21 = vsel %vm12247_vm12, %v6801_v11, %v6797_v48  ;;  %v598_v29 = vrot.slane %v8209_v36, 6  ;;  %v5560_v52 = vpack.c.bf16 %v513_v16, %v934_v5 }
  0xef   :  { %v5518_v38 = vpack.c.bf16 %v527_v21, %v920_v49  ;;  %v5557_v0 = vpack.c.bf16 %v528_v12, %v935_v40  ;;  %v12248_v17 = vunpack.i.h.bf16 %v7695_v2  ;;  %v12249_v35 = vunpack.i.h.bf16 %v7638_v46 }
  0xf0   :  { %v12250_v57 = vunpack.i.h.bf16 %v7673_v55  ;;  %v12251_v48 = vunpack.i.h.bf16 %v7630_v44  ;;  %5203 = vmatmul.mubr.msk.f32.vlgmr.msra.gmra.mrb[4].mxu1 %vm943_vm15, %v7995_v8  ;;  %v12252_v46 = vrot.slane %v8107_v58, 7  ;;  %v12253_v63 = vrot.slane %v8101_v41, 7  ;;  %v393_v58 = vpop.permute.xlu1 %392  ;;  %v344_v11 = vpop.permute.xlu0 %343 }
  0xf1   :  { %v327_v28 = vsel %vm316_vm3, %v293_v42, %v12248_v17  ;;  %v328_v18 = vsel %vm316_vm3, %v12249_v35, %v293_v42  ;;  %5520 = vmatpush1.bf16.msk.msra.mxu0 %vm7849_vm0, %v5518_v38  ;;  %5559 = vmatprep.subr.msk.bf16.mxu1 %vm7849_vm0, %v5557_v0  ;;  %vm12254_vm12 = vcmask 1042432   ;;  %v12256_v30 = vunpack.i.h.bf16 %v7820_v13  ;;  %v12260_v42 = vld [vmem:[#allocation12_spill] sm:$0xff]  ;;  %v12261_v38 = vld [vmem:[#allocation13_spill] sm:$0xff] }
  0xf2   :  { %v180_v36 = vsel %vm169_vm2, %v144_v33, %v12250_v57  ;;  %v181_v23 = vsel %vm169_vm2, %v12251_v48, %v144_v33  ;;  %v645_v1 = vrot.slane %v328_v18, 5  ;;  %v646_v43 = vrot.slane %v327_v28, 5  ;;  %5562 = vmatpush1.bf16.msk.msra.mxu1 %vm7849_vm0, %v5560_v52  ;;  %1556 = vmatprep.mubr.f32.mxu1 %v12195_v26  ;;  %vm12255_vm8 = vmmov %vm12254_vm12  ;;  %v12262_v18 = vld [vmem:[#allocation24_spill] sm:$0xff]  ;;  %v12265_v48 = vld [vmem:[#allocation19_spill] sm:$0xff] }
  0xf3   :  { %v822_v39 = vsel %vm817_vm4, %v181_v23, %v12252_v46  ;;  %v823_v34 = vsel %vm817_vm4, %v180_v36, %v12253_v63  ;;  %v424_v32 = vsel %vm414_vm7, %v393_v58, %v12256_v30  ;;  %v12258_v40 = vunpack.i.h.bf16 %v7748_v22 }
  0xf4   :  { %v839_v44 = vsel %vm834_vm6, %v822_v39, %v597_v7  ;;  %v840_v31 = vsel %vm834_vm6, %v823_v34, %v598_v29  ;;  %v12257_v7 = vunpack.i.h.bf16 %v7675_v56  ;;  %5188 = vmatmul.mubr.msk.f32.vlgmr.msra.gmra.mrb[0].mxu0 %vm943_vm15, %v7995_v8  ;;  %v12259_v16 = vunpack.i.h.bf16 %v7654_v50  ;;  %v491_v0 = vpop.permute.xlu1 %490  ;;  %v442_v17 = vpop.permute.xlu0 %441  ;;  %v12268_v39 = vld [vmem:[#allocation22_spill] sm:$0xff] }
  0xf5   :  { %v856_v41 = vsel %vm12254_vm12, %v839_v44, %v645_v1  ;;  %v857_v6 = vsel %vm12255_vm8, %v840_v31, %v646_v43  ;;  %v375_v5 = vsel %vm365_vm5, %v344_v11, %v12258_v40  ;;  %5209 = vmatmul.mubr.msk.f32.vlgmr.msra.gmra.mrb[6].mxu1 %vm943_vm15, %v7995_v8  ;;  %1201 = vmatprep.mubr.f32.mxu0 %v12195_v26  ;;  %v742_v52 = vrot.slane %v424_v32, 2 }
  0xf6   :  { %v425_v49 = vsel %vm414_vm7, %v12257_v7, %v393_v58  ;;  %v376_v12 = vsel %vm365_vm5, %v12259_v16, %v344_v11  ;;  %v694_v21 = vrot.slane %v375_v5, 3  ;;  %2207 = vmatprep.mubr.f32.mxu1 %v12195_v26  ;;  %v873_v33 = vsel %vm868_vm10, %v856_v41, %v12260_v42 }
  0xf7   :  { %v693_v56 = vrot.slane %v376_v12, 3  ;;  %v741_v29 = vrot.slane %v425_v49, 2  ;;  %v874_v50 = vsel %vm868_vm10, %v857_v6, %v12261_v38  ;;  %v12263_v57 = vunpack.i.h.bf16 %v12262_v18 }
  0xf8   :  { %v891_v35 = vsel %vm12092_vm11, %v874_v50, %v694_v21  ;;  %vm12264_vm9 = vcmp.lt.s32.totalorder %v7667_v54, 96  ;;  %v12266_v23 = vunpack.i.h.bf16 %v12265_v48  ;;  %v12269_v63 = vunpack.i.h.bf16 %v12268_v39  ;;  %v252_v58 = vpop.permute.xlu1 %251  ;;  %v203_v11 = vpop.permute.xlu0 %202 }
  0xf9   :  { %v890_v28 = vsel %vm12092_vm11, %v873_v33, %v693_v56  ;;  %v473_v36 = vsel %vm12264_vm9, %v442_v17, %v12263_v57  ;;  %vm12267_vm14 = vmmov %vm12264_vm9  ;;  %vm12270_vm13 = vcmask 1045504   ;;  %vm12272_vm8 = vcmask 1046528  }
  0xfa   :  { %v474_v1 = vsel %vm12267_vm14, %v12266_v23, %v442_v17  ;;  %v790_v46 = vrot.slane %v473_v36, 1  ;;  %v523_v34 = vsel %vm12241_vm1, %v12269_v63, %v491_v0  ;;  %v907_v44 = vsel %vm12270_vm13, %v890_v28, %v741_v29  ;;  %vm12271_vm12 = vmmov %vm12270_vm13  ;;  %v12285_v28 = vld [vmem:[#allocation26_spill] sm:$0xff] }
  0xfb   :  { %v789_v43 = vrot.slane %v474_v1, 1  ;;  %v908_v31 = vsel %vm12271_vm12, %v891_v35, %v742_v52  ;;  %vm12273_vm9 = vmmov %vm12272_vm8  ;;  %v12274_v30 = vunpack.i.l.bf16 %v7863_v60  ;;  %vm12275_vm14 = vcmp.lt.s32.totalorder %v7667_v54, 31 }
  0xfc   :  { %v925_v6 = vsel %vm12273_vm9, %v908_v31, %v790_v46  ;;  %v12276_v7 = vunpack.i.l.bf16 %v7664_v53  ;;  %vm12277_vm11 = vmmov %vm12275_vm14  ;;  %v12278_v40 = vunpack.i.h.bf16 %v8056_v19  ;;  %v12279_v12 = vunpack.i.l.bf16 %v7790_v9  ;;  %v301_v38 = vpop.permute.xlu1 %300  ;;  %v152_v50 = vpop.permute.xlu0 %151 }
  0xfd   :  { %v924_v41 = vsel %vm12272_vm8, %v907_v44, %v789_v43  ;;  %v274_v32 = vsel %vm12275_vm14, %v252_v58, %v12274_v30  ;;  %vm12280_vm13 = vcmp.lt.s32.totalorder %v7667_v54, 32  ;;  %v12281_v60 = vunpack.i.l.bf16 %v7656_v51 }
  0xfe   :  { %v275_v49 = vsel %vm12277_vm11, %v12276_v7, %v252_v58  ;;  %v522_v5 = vsel %vm12241_vm1, %v491_v0, %v12278_v40  ;;  %v5530_v16 = vpack.c.bf16 %v523_v34, %v924_v41  ;;  %v225_v56 = vsel %vm12280_vm13, %v203_v11, %v12279_v12  ;;  %vm12282_vm12 = vmmov %vm12280_vm13  ;;  %v12294_v40 = vld [vmem:[#allocation16_spill] sm:$0xff] }
  0xff   :  { %v226_v21 = vsel %vm12282_vm12, %v12281_v60, %v203_v11  ;;  %v5527_v53 = vpack.c.bf16 %v522_v5, %v925_v6  ;;  %v601_v29 = vrot.slane %v275_v49, 6  ;;  %v602_v52 = vrot.slane %v274_v32, 6 }
 0x100   :  { %v553_v42 = vrot.slane %v226_v21, 7  ;;  %v554_v33 = vrot.slane %v225_v56, 7  ;;  %v12283_v9 = vunpack.i.l.bf16 %v7943_v62  ;;  %v12284_v51 = vunpack.i.l.bf16 %v7695_v2  ;;  %v401_v63 = vpop.permute.xlu1 %400 }
 0x101   :  { %5529 = vmatprep.subr.msk.bf16.mxu0 %vm7849_vm0, %v5527_v53  ;;  %v12286_v35 = vunpack.i.l.bf16 %v12285_v28  ;;  %v12287_v36 = vunpack.i.l.bf16 %v7673_v55  ;;  %vm12288_vm11 = vcmask 1042432   ;;  %v352_v55 = vpop.permute.xlu0 %351  ;;  %v12290_v44 = vunpack.i.l.bf16 %v8133_v14 }
 0x102   :  { %v323_v0 = vsel %vm316_vm3, %v301_v38, %v12283_v9  ;;  %v324_v17 = vsel %vm316_vm3, %v12284_v51, %v301_v38  ;;  %5532 = vmatpush1.bf16.msk.msra.mxu0 %vm7849_vm0, %v5530_v16  ;;  %vm12289_vm8 = vmmov %vm12288_vm11  ;;  %v12291_v58 = vunpack.i.l.bf16 %v7820_v13  ;;  %v12292_v41 = vunpack.i.l.bf16 %v8026_v45  ;;  %v12295_v16 = vld [vmem:[#allocation15_spill] sm:$0xff]  ;;  %v12307_v51 = vld [vmem:[#allocation30_spill] sm:$0xff] }
 0x103   :  { %v176_v57 = vsel %vm169_vm2, %v152_v50, %v12286_v35  ;;  %v177_v48 = vsel %vm169_vm2, %v12287_v36, %v152_v50  ;;  %v649_v23 = vrot.slane %v324_v17, 5  ;;  %v650_v62 = vrot.slane %v323_v0, 5  ;;  %v12310_v35 = vld [vmem:[#allocation21_spill] sm:$0xff]  ;;  %v12313_v36 = vld [vmem:[#allocation27_spill] sm:$0xff] }
 0x104   :  { %v826_v1 = vsel %vm817_vm4, %v177_v48, %v553_v42  ;;  %v827_v43 = vsel %vm817_vm4, %v176_v57, %v554_v33  ;;  %v420_v31 = vsel %vm414_vm7, %v401_v63, %v12290_v44  ;;  %v421_v11 = vsel %vm414_vm7, %v12291_v58, %v401_v63  ;;  %v499_v56 = vpop.permute.xlu1 %498 }
 0x105   :  { %v843_v2 = vsel %vm834_vm6, %v826_v1, %v601_v29  ;;  %v844_v46 = vsel %vm834_vm6, %v827_v43, %v602_v52  ;;  %5194 = vmatmul.mubr.msk.f32.vlgmr.msra.gmra.mrb[2].mxu0 %vm943_vm15, %v7995_v8  ;;  %v371_v6 = vsel %vm365_vm5, %v352_v55, %v12292_v41  ;;  %v12293_v30 = vunpack.i.l.bf16 %v7748_v22  ;;  %v450_v60 = vpop.permute.xlu0 %449  ;;  %v12316_v43 = vld [vmem:[#allocation20_spill] sm:$0xff] }
 0x106   :  { %v861_v39 = vsel %vm12288_vm11, %v844_v46, %v650_v62  ;;  %v860_v34 = vsel %vm12289_vm8, %v843_v2, %v649_v23  ;;  %v698_v7 = vrot.slane %v371_v6, 3  ;;  %1343 = vmatprep.mubr.f32.mxu0 %v12195_v26  ;;  %v746_v14 = vrot.slane %v420_v31, 2  ;;  %v12321_v6 = vld [vmem:[#allocation31_spill] sm:$0xff] }
 0x107   :  { %v372_v32 = vsel %vm365_vm5, %v12293_v30, %v352_v55  ;;  %v878_v13 = vsel %vm868_vm10, %v861_v39, %v12294_v40  ;;  %v745_v5 = vrot.slane %v421_v11, 2  ;;  %v877_v45 = vsel %vm868_vm10, %v860_v34, %v12295_v16 }
 0x108   :  { %v697_v49 = vrot.slane %v372_v32, 3  ;;  %vm12296_vm9 = vcmask 1044480   ;;  %vm12298_vm1 = vcmp.lt.s32.totalorder %v7667_v54, 96  ;;  %v12299_v53 = vunpack.i.l.bf16 %v12262_v18  ;;  %v260_v0 = vpop.permute.xlu1 %259  ;;  %v12322_v32 = vld [vmem:[#allocation23_spill] sm:$0xff] }
 0x109   :  { %v895_v12 = vsel %vm12296_vm9, %v878_v13, %v698_v7  ;;  %vm12297_vm14 = vmmov %vm12296_vm9  ;;  %v469_v21 = vsel %vm12298_vm1, %v450_v60, %v6771_v10  ;;  %vm12301_vm12 = vcmask 1045504   ;;  %v12302_v38 = vunpack.i.l.bf16 %v8056_v19  ;;  %v211_v10 = vpop.permute.xlu0 %210 }
 0x10a   :  { %v894_v22 = vsel %vm12297_vm14, %v877_v45, %v697_v49  ;;  %vm12300_vm13 = vmmov %vm12298_vm1  ;;  %v794_v52 = vrot.slane %v469_v21, 1  ;;  %v912_v33 = vsel %vm12301_vm12, %v895_v12, %v746_v14  ;;  %vm12303_vm11 = vcmp.lt.s32.totalorder %v7667_v54, 95  ;;  %v12326_v21 = vld [vmem:[#allocation29_spill] sm:$0xff] }
 0x10b   :  { %v470_v29 = vsel %vm12300_vm13, %v12299_v53, %v450_v60  ;;  %v519_v50 = vsel %vm12303_vm11, %v12302_v38, %v499_v56  ;;  %vm12304_vm8 = vmmov %vm12301_vm12  ;;  %vm12305_vm9 = vcmask 1046528   ;;  %v12308_v17 = vunpack.i.l.bf16 %v12307_v51 }
 0x10c   :  { %v793_v42 = vrot.slane %v470_v29, 1  ;;  %v911_v9 = vsel %vm12304_vm8, %v894_v22, %v745_v5  ;;  %v929_v15 = vsel %vm12305_vm9, %v912_v33, %v794_v52  ;;  %vm12306_vm14 = vmmov %vm12305_vm9  ;;  %vm12309_vm1 = vcmp.lt.s32.totalorder %v7667_v54, 31  ;;  %v309_v31 = vpop.permute.xlu1 %308 }
 0x10d   :  { %v270_v28 = vsel %vm12309_vm1, %v260_v0, %v12308_v17  ;;  %v12311_v57 = vunpack.i.h.bf16 %v12310_v35  ;;  %vm12312_vm13 = vmmov %vm12309_vm1  ;;  %v12314_v48 = vunpack.i.l.bf16 %v12313_v36  ;;  %vm12315_vm12 = vcmp.lt.s32.totalorder %v7667_v54, 32  ;;  %v160_v58 = vpop.permute.xlu0 %159 }
 0x10e   :  { %v928_v18 = vsel %vm12306_vm14, %v911_v9, %v793_v42  ;;  %v518_v62 = vsel %vm12303_vm11, %v499_v56, %v6796_v25  ;;  %v12317_v2 = vunpack.i.h.bf16 %v12316_v43  ;;  %vm12318_vm8 = vmmov %vm12315_vm12  ;;  %v606_v55 = vrot.slane %v270_v28, 6  ;;  %v12319_v25 = vld [vmem:[#allocation25_spill] sm:$0xff]  ;;  %v12328_v42 = vld [vmem:[#allocation28_spill] sm:$0xff] }
 0x10f   :  { %v271_v19 = vsel %vm12312_vm13, %v12311_v57, %v260_v0  ;;  %v221_v23 = vsel %vm12315_vm12, %v211_v10, %v12314_v48  ;;  %v5542_v1 = vpack.c.bf16 %v519_v50, %v928_v18  ;;  %v5539_v39 = vpack.c.bf16 %v518_v62, %v929_v15  ;;  %v12330_v0 = vld [vmem:[#allocation17_spill] sm:$0xff]  ;;  %v12331_v18 = vld [vmem:[#allocation18_spill] sm:$0xff] }
 0x110   :  { %v222_v46 = vsel %vm12318_vm8, %v12317_v2, %v211_v10  ;;  %v605_v63 = vrot.slane %v271_v19, 6  ;;  %v558_v44 = vrot.slane %v221_v23, 7  ;;  %v319_v4 = vsel %vm316_vm3, %v309_v31, %v8191_v24  ;;  %v409_v12 = vpop.permute.xlu1 %408  ;;  %v12335_v19 = vld [vmem:[#allocation32_spill] sm:$0xff] }
 0x111   :  { %v557_v34 = vrot.slane %v222_v46, 7  ;;  %5541 = vmatprep.subr.msk.bf16.mxu0 %vm7849_vm0, %v5539_v39  ;;  %v12320_v11 = vunpack.i.h.bf16 %v12319_v25  ;;  %v172_v30 = vsel %vm169_vm2, %v160_v58, %v12321_v6  ;;  %v12323_v7 = vunpack.i.h.bf16 %v12322_v32  ;;  %v360_v56 = vpop.permute.xlu0 %359 }
 0x112   :  { %v654_v40 = vrot.slane %v319_v4, 5  ;;  %v831_v24 = vsel %vm817_vm4, %v172_v30, %v558_v44  ;;  %5544 = vmatpush1.bf16.msk.msra.mxu0 %vm7849_vm0, %v5542_v1  ;;  %vm12324_vm9 = vcmask 1042432   ;;  %v416_v22 = vsel %vm414_vm7, %v409_v12, %v8275_v27  ;;  %v12344_v44 = vld [vmem:[#allocation5_spill] sm:$0xff]  ;;  %v12345_v4 = vld [vmem:[#allocation6_spill] sm:$0xff] }
 0x113   :  { %v320_v41 = vsel %vm316_vm3, %v12320_v11, %v309_v31  ;;  %v173_v14 = vsel %vm169_vm2, %v12323_v7, %v160_v58  ;;  %v848_v16 = vsel %vm834_vm6, %v831_v24, %v606_v55  ;;  %vm12325_vm14 = vmmov %vm12324_vm9  ;;  %v12327_v53 = vunpack.i.h.bf16 %v12326_v21 }
 0x114   :  { %v653_v49 = vrot.slane %v320_v41, 5  ;;  %v830_v13 = vsel %vm817_vm4, %v173_v14, %v557_v34  ;;  %v865_v60 = vsel %vm12325_vm14, %v848_v16, %v654_v40  ;;  %v367_v52 = vsel %vm365_vm5, %v360_v56, %v8231_v59  ;;  %v507_v35 = vpop.permute.xlu1 %506  ;;  %v8631_v40 = vld [vmem:[%s12011_s9 + $0x8] sm:$0xff] }
 0x115   :  { %v847_v5 = vsel %vm834_vm6, %v830_v13, %v605_v63  ;;  %5200 = vmatmul.mubr.msk.f32.vlgmr.msra.gmra.mrb[4].mxu0 %vm943_vm15, %v7995_v8  ;;  %v417_v29 = vsel %vm414_vm7, %v12327_v53, %v409_v12  ;;  %v12329_v33 = vunpack.i.h.bf16 %v12328_v42  ;;  %v702_v50 = vrot.slane %v367_v52, 3  ;;  %v458_v17 = vpop.permute.xlu0 %457  ;;  %v12348_v53 = vld [vmem:[#allocation8_spill] sm:$0xff] }
 0x116   :  { %v864_v45 = vsel %vm12324_vm9, %v847_v5, %v653_v49  ;;  %1485 = vmatprep.mubr.f32.mxu0 %v12195_v26  ;;  %v749_v15 = vrot.slane %v417_v29, 2  ;;  %v750_v27 = vrot.slane %v416_v22, 2  ;;  %v882_v10 = vsel %vm868_vm10, %v865_v60, %v12330_v0  ;;  %v12346_v5 = vld [vmem:[#allocation14_spill] sm:$0xff]  ;;  %v12347_v60 = vld [vmem:[#allocation7_spill] sm:$0xff] }
 0x117   :  { %v368_v38 = vsel %vm365_vm5, %v12329_v33, %v360_v56  ;;  %v881_v51 = vsel %vm868_vm10, %v864_v45, %v12331_v18  ;;  %vm12332_vm6 = vcmask 1044480   ;;  %vm12334_vm13 = vcmp.lt.s32.totalorder %v7667_v54, 96 }
 0x118   :  { %v701_v9 = vrot.slane %v368_v38, 3  ;;  %vm12333_vm1 = vmmov %vm12332_vm6  ;;  %v465_v57 = vsel %vm12334_vm13, %v458_v17, %v8300_v37  ;;  %v12336_v36 = vunpack.i.h.bf16 %v12335_v19  ;;  %vm12338_vm11 = vcmask 1045504  }
 0x119   :  { %v899_v28 = vsel %vm12333_vm1, %v882_v10, %v702_v50  ;;  %vm12337_vm12 = vmmov %vm12334_vm13  ;;  %v798_v62 = vrot.slane %v465_v57, 1  ;;  %vm12340_vm8 = vcmp.lt.s32.totalorder %v7667_v54, 95  ;;  %vm12342_vm14 = vcmask 1046528  }
 0x11a   :  { %v898_v59 = vsel %vm12332_vm6, %v881_v51, %v701_v9  ;;  %v466_v48 = vsel %vm12337_vm12, %v12336_v36, %v458_v17  ;;  %v916_v1 = vsel %vm12338_vm11, %v899_v28, %v750_v27  ;;  %vm12339_vm10 = vmmov %vm12338_vm11  ;;  %v514_v2 = vsel %vm12340_vm8, %v507_v35, %v8321_v3  ;;  %v12350_v28 = vld [vmem:[#allocation9_spill] sm:$0xff]  ;;  %v12351_v36 = vld [vmem:[#allocation10_spill] sm:$0xff] }
 0x11b   :  { %v797_v23 = vrot.slane %v466_v48, 1  ;;  %v915_v43 = vsel %vm12339_vm10, %v898_v59, %v749_v15  ;;  %vm12341_vm9 = vmmov %vm12340_vm8  ;;  %v1640_v29 = vrot.slane %v8631_v40, %v12348_v53  ;;  %vm12360_vm13 = vcmp.lt.s32.totalorder %v7667_v54, 31 }
 0x11c   :  { %v515_v37 = vsel %vm12341_vm9, %v6787_v20, %v507_v35  ;;  %vm12343_vm6 = vmmov %vm12342_vm14  ;;  %v8606_v20 = vld [vmem:[%s12011_s9] sm:$0xff]  ;;  %vm12364_vm11 = vcmp.lt.s32.totalorder %v7667_v54, 96 }
 0x11d   :  { %v932_v46 = vsel %vm12342_vm14, %v915_v43, %v797_v23  ;;  %v933_v39 = vsel %vm12343_vm6, %v916_v1, %v798_v62  ;;  %v1592_v31 = vrot.slane %v8606_v20, %v12344_v44  ;;  %v1584_v16 = vrot.slane %v8606_v20, %v12346_v5  ;;  %vm12361_vm12 = vmmov %vm12360_vm13 }
 0x11e   :  { %v5554_v63 = vpack.c.bf16 %v515_v37, %v932_v46  ;;  %v5551_v55 = vpack.c.bf16 %v514_v2, %v933_v39  ;;  %v1588_v22 = vrot.slane %v8606_v20, %v12347_v60  ;;  %v1600_v35 = vrot.slane %v8606_v20, %v12350_v28  ;;  %vm12365_vm10 = vmmov %vm12364_vm11 }
 0x11f   :  { %v1604_v48 = vrot.slane %v8606_v20, %v12351_v36  ;;  %v1608_v39 = vrot.slane %v8606_v20, %v12348_v53  ;;  %vm12366_vm8 = vmmov %vm12365_vm10  ;;  %vm2068_vm14 = vcmask 588800  }
 0x120   :  { %5553 = vmatprep.subr.msk.bf16.mxu0 %vm7849_vm0, %v5551_v55  ;;  %vm12367_vm6 = vmmov %vm12341_vm9 }
 0x121   :  { %5556 = vmatpush1.bf16.msk.msra.mxu0 %vm7849_vm0, %v5554_v63  ;;  %vm12355_vm0 = vcmp.lt.s32.totalorder %v7667_v54, 32 }
 0x122   :  { %vm12359_vm1 = vmmov %vm12355_vm0 }
 0x124   :  { %5206 = vmatmul.mubr.msk.f32.vlgmr.msra.gmra.mrb[6].mxu0 %vm943_vm15, %v7995_v8  ;;  %v1596_v8 = vrot.slane %v8606_v20, %v12345_v4  ;;  %vm12358_vm15 = vmmov %vm12355_vm0 }
 0x125   :  { %2136 = vmatprep.mubr.f32.mxu0 %v12195_v26  ;;  %v8601_v47 = vpop.permute.xlu0 %940 }
 0x190   :  { %v1132_v3 = vpop.f32.mrb[0].mxu1 }
 0x191   :  { %v1133_v34 = vadd.f32 %v1132_v3, %v8601_v47  ;;  %v1134_v61 = vpop.f32.mrb[1].mxu1 }
 0x192   :  { %v1135_v58 = vadd.f32 %v1134_v61, %v8601_v47 }
 0x193   :  { %v1565_v25 = vmax.f32 %v1133_v34, 0.0 }
 0x194   :  { %v1566_v11 = vmax.f32 %v1135_v58, 0.0 }
 0x195   :  { %v8614_v41 = vmul.f32 %v1592_v31, %v1565_v25  ;;  %v12352_v31 = vld [vmem:[#allocation11_spill] sm:$0xff]  ;;  %v1616_v25 = vrot.slane %v8631_v40, %v12346_v5 }
 0x196   :  { %v8616_v6 = vmul.f32 %v1596_v8, %v1566_v11  ;;  %v1612_v61 = vrot.slane %v8606_v20, %v12352_v31 }
 0x197   :  { %2017 = vrot.lane.b32.xlu0 %v8614_v41, %s7371_s0 }
 0x198   :  { %v6814_v30 = vpack.i.bf16 %v8616_v6, %v8614_v41 }
 0x19b   :  { %6815 = vrot.lane.b32.xlu0 %v6814_v30, %s7366_s17 }
 0x19f   :  { %6820 = vrot.lane.b32.xlu0 %v6814_v30, %s7365_s16 }
 0x1a1   :  { %v1274_v32 = vpop.f32.mrb[2].mxu1 }
 0x1a2   :  { %v1276_v7 = vpop.f32.mrb[3].mxu1  ;;  %v1275_v37 = vadd.f32 %v1274_v32, %v8601_v47 }
 0x1a3   :  { %v1277_v63 = vadd.f32 %v1276_v7, %v8601_v47 }
 0x1a4   :  { %v1569_v46 = vmax.f32 %v1275_v37, 0.0 }
 0x1a5   :  { %v1570_v34 = vmax.f32 %v1277_v63, 0.0 }
 0x1a6   :  { %v8693_v3 = vmul.f32 %v1608_v39, %v1569_v46  ;;  %v1632_v39 = vrot.slane %v8631_v40, %v12350_v28 }
 0x1c3   :  { %v8624_v14 = vpop.f32.mrb[4].mxu1 }
 0x1c4   :  { %v8626_v49 = vpop.f32.mrb[5].mxu1 }
 0x1c7   :  { %v1061_v13 = vpop.f32.mrb[0].mxu0 }
 0x1c8   :  { %v1062_v24 = vadd.f32 %v1061_v13, %v8601_v47  ;;  %v1063_v45 = vpop.f32.mrb[1].mxu0  ;;  %v1558_v12 = vpop.f32.mrb[6].mxu1 }
 0x1c9   :  { %v1064_v56 = vadd.f32 %v1063_v45, %v8601_v47  ;;  %v1559_v21 = vadd.f32 %v1558_v12, %v8601_v47  ;;  %v8642_v52 = vpop.f32.mrb[7].mxu1 }
 0x1ca   :  { %v1563_v42 = vmax.f32 %v1062_v24, 0.0  ;;  %v1561_v12 = vadd.f32 %v8642_v52, %v8601_v47 }
 0x1cb   :  { %v1564_v33 = vmax.f32 %v1064_v56, 0.0  ;;  %v1577_v38 = vmax.f32 %v1559_v21, 0.0  ;;  %v1644_v21 = vrot.slane %v8631_v40, %v12352_v31 }
 0x1cc   :  { %v8644_v50 = vmul.f32 %v1584_v16, %v1563_v42  ;;  %v1620_v16 = vrot.slane %v8631_v40, %v12347_v60 }
 0x1cd   :  { %v8646_v9 = vmul.f32 %v1588_v22, %v1564_v33  ;;  %v8648_v15 = vmul.f32 %v1640_v29, %v1577_v38  ;;  %v1578_v22 = vmax.f32 %v1561_v12, 0.0  ;;  %v1417_v29 = vadd.f32 %v8624_v14, %v8601_v47 }
 0x1ce   :  { %2013 = vrot.lane.b32.xlu1 %v8644_v50, %s7371_s0  ;;  %v6849_v59 = vpack.i.bf16 %v8616_v6, %v8644_v50  ;;  %v1624_v38 = vrot.slane %v8631_v40, %v12344_v44 }
 0x1cf   :  { %12349 = vst [vmem:[#allocation12_spill] sm:$0xff] %v8648_v15  ;;  %v6824_v27 = vpack.i.bf16 %v8646_v9, %v8644_v50  ;;  %v6844_v17 = vpack.i.bf16 %v8614_v41, %v8646_v9  ;;  %v8736_v52 = vmul.f32 %v1644_v21, %v1578_v22  ;;  %v1573_v33 = vmax.f32 %v1417_v29, 0.0 }
 0x1d1   :  { %6825 = vrot.lane.b32.xlu0 %v6824_v27, %s7364_s15  ;;  %12354 = vst [vmem:[#allocation24_spill] sm:$0xff] %v8736_v52 }
 0x1d2   :  { %6805 = vrot.lane.b32.xlu1 %v6824_v27, %s7366_s17 }
 0x1d5   :  { %6835 = vrot.lane.b32.xlu0 %v6814_v30, %s7364_s15 }
 0x1d6   :  { %6810 = vrot.lane.b32.xlu1 %v6824_v27, %s7365_s16 }
 0x1d8   :  { %v1203_v0 = vpop.f32.mrb[2].mxu0 }
 0x1d9   :  { %v1205_v10 = vpop.f32.mrb[3].mxu0  ;;  %6840 = vrot.lane.b32.xlu0 %v6814_v30, %s7367_s18  ;;  %v1204_v18 = vadd.f32 %v1203_v0, %v8601_v47  ;;  %v8706_v30 = vmul.f32 %v1612_v61, %v1570_v34  ;;  %v1419_v0 = vadd.f32 %v8626_v49, %v8601_v47  ;;  %v1636_v61 = vrot.slane %v8631_v40, %v12351_v36 }
 0x1da   :  { %6830 = vrot.lane.b32.xlu1 %v6824_v27, %s7367_s18  ;;  %v1206_v51 = vadd.f32 %v1205_v10, %v8601_v47  ;;  %v8745_v27 = vmul.f32 %v1624_v38, %v1573_v33 }
 0x1db   :  { %v1567_v57 = vmax.f32 %v1204_v18, 0.0  ;;  %v6909_v13 = vpack.i.bf16 %v8706_v30, %v8693_v3 }
 0x1dc   :  { %v1568_v19 = vmax.f32 %v1206_v51, 0.0  ;;  %v1574_v51 = vmax.f32 %v1419_v0, 0.0 }
 0x1dd   :  { %6845 = vrot.lane.b32.xlu0 %v6844_v17, %s7368_s19  ;;  %v8674_v23 = vmul.f32 %v1600_v35, %v1567_v57 }
 0x1de   :  { %6850 = vrot.lane.b32.xlu1 %v6849_v59, %s7368_s19  ;;  %v8676_v62 = vmul.f32 %v1604_v48, %v1568_v19 }
 0x1df   :  { %v6944_v42 = vpack.i.bf16 %v8674_v23, %v8736_v52 }
 0x1e0   :  { %v6874_v43 = vpack.i.bf16 %v8676_v62, %v8674_v23  ;;  %v6894_v58 = vpack.i.bf16 %v8693_v3, %v8676_v62 }
 0x1e1   :  { %6860 = vrot.lane.b32.xlu0 %v6844_v17, %s7370_s23 }
 0x1e2   :  { %6855 = vrot.lane.b32.xlu1 %v6844_v17, %s7369_s20  ;;  %v1628_v17 = vrot.slane %v8631_v40, %v12345_v4 }
 0x1e4   :  { %v8769_v57 = vmul.f32 %v1628_v17, %v1574_v51 }
 0x1e5   :  { %2019 = vrot.lane.b32.xlu0 %v8616_v6, %s7371_s0 }
 0x1e6   :  { %6865 = vrot.lane.b32.xlu1 %v6849_v59, %s7369_s20  ;;  %v6989_v63 = vpack.i.bf16 %v8769_v57, %v8745_v27 }
 0x1e8   :  { %v1345_v1 = vpop.f32.mrb[4].mxu0 }
 0x1e9   :  { %v1347_v2 = vpop.f32.mrb[5].mxu0  ;;  %6875 = vrot.lane.b32.xlu0 %v6874_v43, %s7368_s19  ;;  %v1346_v55 = vadd.f32 %v1345_v1, %v8601_v47 }
 0x1ea   :  { %6870 = vrot.lane.b32.xlu1 %v6849_v59, %s7370_s23  ;;  %v1348_v20 = vadd.f32 %v1347_v2, %v8601_v47 }
 0x1eb   :  { %v1571_v8 = vmax.f32 %v1346_v55, 0.0 }
 0x1ec   :  { %v1572_v24 = vmax.f32 %v1348_v20, 0.0 }
 0x1ed   :  { %6880 = vrot.lane.b32.xlu0 %v6874_v43, %s7369_s20  ;;  %v8710_v7 = vmul.f32 %v1616_v25, %v1571_v8 }
 0x1ee   :  { %2015 = vrot.lane.b32.xlu1 %v8646_v9, %s7371_s0  ;;  %v8725_v56 = vmul.f32 %v1620_v16, %v1572_v24 }
 0x1ef   :  { %12353 = vst [vmem:[#allocation13_spill] sm:$0xff] %v8710_v7  ;;  %v6919_v45 = vpack.i.bf16 %v8710_v7, %v8706_v30 }
 0x1f0   :  { %v6939_v53 = vpack.i.bf16 %v8725_v56, %v8710_v7  ;;  %v6969_v10 = vpack.i.bf16 %v8745_v27, %v8725_v56 }
 0x1f1   :  { %6885 = vrot.lane.b32.xlu0 %v6874_v43, %s7370_s23 }
 0x1f2   :  { %2021 = vrot.lane.b32.xlu1 %v8674_v23, %s7371_s0 }
 0x1f5   :  { %6895 = vrot.lane.b32.xlu0 %v6894_v58, %s7365_s16 }
 0x1f6   :  { %6890 = vrot.lane.b32.xlu1 %v6894_v58, %s7366_s17 }
 0x1f7   :  { %v1487_v11 = vpop.f32.mrb[6].mxu0 }
 0x1f8   :  { %v8708_v32 = vpop.f32.mrb[7].mxu0  ;;  %v1488_v37 = vadd.f32 %v1487_v11, %v8601_v47 }
 0x1f9   :  { %6900 = vrot.lane.b32.xlu0 %v6894_v58, %s7364_s15  ;;  %v1490_v34 = vadd.f32 %v8708_v32, %v8601_v47 }
 0x1fa   :  { %6905 = vrot.lane.b32.xlu1 %v6894_v58, %s7367_s18  ;;  %v1575_v46 = vmax.f32 %v1488_v37, 0.0 }
 0x1fb   :  { %v1576_v31 = vmax.f32 %v1490_v34, 0.0 }
 0x1fc   :  { %v8802_v55 = vmul.f32 %v1632_v39, %v1575_v46 }
 0x1fd   :  { %6910 = vrot.lane.b32.xlu0 %v6909_v13, %s7368_s19  ;;  %v8819_v58 = vmul.f32 %v1636_v61, %v1576_v31 }
 0x1fe   :  { %6920 = vrot.lane.b32.xlu1 %v6919_v45, %s7366_s17  ;;  %12356 = vst [vmem:[#allocation19_spill] sm:$0xff] %v8802_v55  ;;  %v7004_v28 = vpack.i.bf16 %v8802_v55, %v8769_v57 }
 0x1ff   :  { %12357 = vst [vmem:[#allocation22_spill] sm:$0xff] %v8819_v58  ;;  %v7014_v47 = vpack.i.bf16 %v8819_v58, %v8802_v55  ;;  %v7034_v8 = vpack.i.bf16 %v8648_v15, %v8819_v58 }
 0x201   :  { %6915 = vrot.lane.b32.xlu0 %v6909_v13, %s7369_s20 }
 0x202   :  { %6935 = vrot.lane.b32.xlu1 %v6919_v45, %s7367_s18 }
 0x205   :  { %6925 = vrot.lane.b32.xlu0 %v6919_v45, %s7365_s16 }
 0x206   :  { %6940 = vrot.lane.b32.xlu1 %v6939_v53, %s7368_s19 }
 0x209   :  { %6930 = vrot.lane.b32.xlu0 %v6919_v45, %s7364_s15  ;;  %v8750_v14 = vpop.permute.xlu0 %2017 }
 0x20a   :  { %6945 = vrot.lane.b32.xlu1 %v6944_v42, %s7366_s17 }
 0x20d   :  { %1933 = vrot.lane.b32.xlu0 %v8710_v7, %s7369_s20  ;;  %v8758_v18 = vpop.permute.xlu0 %6815 }
 0x20e   :  { %6950 = vrot.lane.b32.xlu1 %v6944_v42, %s7365_s16  ;;  %v12095_v59 = vunpack.i.h.bf16 %v8758_v18  ;;  %v6817_v35 = vunpack.i.l.bf16 %v8758_v18 }
 0x210   :  { %v1721_v1 = vsel %vm169_vm2, %v6817_v35, %v12095_v59 }
 0x211   :  { %6970 = vrot.lane.b32.xlu0 %v6969_v10, %s7366_s17  ;;  %v8767_v49 = vpop.permute.xlu0 %6820 }
 0x212   :  { %6955 = vrot.lane.b32.xlu1 %v6944_v42, %s7364_s15  ;;  %v12096_v19 = vunpack.i.h.bf16 %v8767_v49  ;;  %v6822_v48 = vunpack.i.l.bf16 %v8767_v49 }
 0x214   :  { %v1769_v43 = vsel %vm12355_vm0, %v6822_v48, %v12096_v19 }
 0x215   :  { %2023 = vrot.lane.b32.xlu0 %v8676_v62, %s7371_s0  ;;  %v5579_v2 = vpack.c.bf16 %v1769_v43, %v1721_v1 }
 0x216   :  { %6960 = vrot.lane.b32.xlu1 %v6944_v42, %s7367_s18 }
 0x217   :  { %5580 = vmatprep.subr.bf16.mxu1 %v5579_v2 }
 0x219   :  { %1699 = vrot.lane.b32.xlu0 %v8769_v57, %s7366_s17 }
 0x21a   :  { %6965 = vrot.lane.b32.xlu1 %v6909_v13, %s7370_s23 }
 0x21d   :  { %2027 = vrot.lane.b32.xlu0 %v8706_v30, %s7371_s0 }
 0x21e   :  { %1981 = vrot.lane.b32.xlu1 %v8710_v7, %s7370_s23 }
 0x221   :  { %6980 = vrot.lane.b32.xlu0 %v6969_v10, %s7364_s15 }
 0x222   :  { %6975 = vrot.lane.b32.xlu1 %v6969_v10, %s7365_s16 }
 0x225   :  { %1795 = vrot.lane.b32.xlu0 %v8769_v57, %s7364_s15 }
 0x226   :  { %2025 = vrot.lane.b32.xlu1 %v8693_v3, %s7371_s0 }
 0x229   :  { %6990 = vrot.lane.b32.xlu0 %v6989_v63, %s7368_s19 }
 0x22a   :  { %1747 = vrot.lane.b32.xlu1 %v8769_v57, %s7365_s16 }
 0x22d   :  { %6995 = vrot.lane.b32.xlu0 %v6969_v10, %s7369_s20 }
 0x22e   :  { %2029 = vrot.lane.b32.xlu1 %v8710_v7, %s7371_s0 }
 0x231   :  { %7005 = vrot.lane.b32.xlu0 %v7004_v28, %s7369_s20 }
 0x232   :  { %6985 = vrot.lane.b32.xlu1 %v6969_v10, %s7367_s18 }
 0x235   :  { %2031 = vrot.lane.b32.xlu0 %v8725_v56, %s7371_s0 }
 0x236   :  { %1843 = vrot.lane.b32.xlu1 %v8769_v57, %s7367_s18 }
 0x239   :  { %2035 = vrot.lane.b32.xlu0 %v8769_v57, %s7371_s0 }
 0x23a   :  { %1893 = vrot.lane.b32.xlu1 %v8802_v55, %s7368_s19 }
 0x23d   :  { %7015 = vrot.lane.b32.xlu0 %v7014_v47, %s7366_s17 }
 0x23e   :  { %7000 = vrot.lane.b32.xlu1 %v6969_v10, %s7370_s23 }
 0x240   :  { %v8829_v40 = vpop.permute.xlu1 %2013 }
 0x241   :  { %7025 = vrot.lane.b32.xlu0 %v7014_v47, %s7364_s15 }
 0x242   :  { %7010 = vrot.lane.b32.xlu1 %v7004_v28, %s7370_s23 }
 0x243   :  { %v8833_v36 = vpop.permute.xlu0 %6825 }
 0x244   :  { %v8837_v25 = vpop.permute.xlu1 %6805  ;;  %v12103_v17 = vunpack.i.h.bf16 %v8833_v36 }
 0x245   :  { %7035 = vrot.lane.b32.xlu0 %v7034_v8, %s7368_s19  ;;  %v6808_v11 = vunpack.i.h.bf16 %v8837_v25  ;;  %v12105_v32 = vunpack.i.l.bf16 %v8837_v25 }
 0x246   :  { %2033 = vrot.lane.b32.xlu1 %v8745_v27, %s7371_s0 }
 0x247   :  { %v8844_v20 = vpop.permute.xlu0 %6835  ;;  %v1722_v22 = vsel %vm169_vm2, %v6808_v11, %v6817_v35  ;;  %v1723_v29 = vsel %vm169_vm2, %v12105_v32, %v6808_v11 }
 0x248   :  { %v8846_v13 = vpop.permute.xlu1 %6810  ;;  %v12101_v45 = vunpack.i.h.bf16 %v8844_v20  ;;  %v6837_v12 = vunpack.i.l.bf16 %v8844_v20 }
 0x249   :  { %v6813_v24 = vunpack.i.h.bf16 %v8846_v13  ;;  %v12104_v16 = vunpack.i.l.bf16 %v8846_v13  ;;  %7045 = vrot.lane.b32.xlu0 %v7034_v8, %s7370_s23 }
 0x24a   :  { %2037 = vrot.lane.b32.xlu1 %v8802_v55, %s7371_s0  ;;  %v1818_v43 = vsel %vm12361_vm12, %v12103_v17, %v6837_v12 }
 0x24b   :  { %v1770_v21 = vsel %vm12358_vm15, %v6813_v24, %v6822_v48  ;;  %v8859_v53 = vpop.permute.xlu0 %6840  ;;  %v1771_v42 = vsel %vm12359_vm1, %v12104_v16, %v6813_v24  ;;  %v1817_v48 = vsel %vm12360_vm13, %v6837_v12, %v12101_v45  ;;  %vm12369_vm15 = vmmov %vm12355_vm0 }
 0x24c   :  { %v12099_v33 = vunpack.i.h.bf16 %v8859_v53  ;;  %v6842_v38 = vunpack.i.l.bf16 %v8859_v53  ;;  %v8871_v0 = vpop.permute.xlu1 %6830  ;;  %v5563_v10 = vpack.c.bf16 %v1771_v42, %v1723_v29  ;;  %v5581_v51 = vpack.c.bf16 %v1770_v21, %v1722_v22  ;;  %vm12371_vm1 = vmmov %vm12361_vm12 }
 0x24d   :  { %v12106_v35 = vunpack.i.h.bf16 %v8871_v0  ;;  %2041 = vrot.lane.b32.xlu0 %v8648_v15, %s7371_s0  ;;  %vm12373_vm13 = vmmov %vm12371_vm1 }
 0x24e   :  { %7020 = vrot.lane.b32.xlu1 %v7014_v47, %s7365_s16  ;;  %5564 = vmatprep.subr.bf16.mxu0 %v5563_v10  ;;  %v1865_v1 = vsel %vm316_vm3, %v6842_v38, %v12099_v33  ;;  %vm12381_vm12 = vmmov %vm12355_vm0 }
 0x24f   :  { %v1866_v2 = vsel %vm316_vm3, %v12106_v35, %v6842_v38  ;;  %5582 = vmatpush1.bf16.msra.mxu1 %v5581_v51  ;;  %v8894_v37 = vpop.permute.xlu0 %6845  ;;  %v5583_v46 = vpack.c.bf16 %v1865_v1, %v1817_v48 }
 0x250   :  { %v8896_v39 = vpop.permute.xlu1 %6850  ;;  %v5585_v63 = vpack.c.bf16 %v1866_v2, %v1818_v43  ;;  %v12102_v11 = vunpack.i.h.bf16 %v8894_v37 }
 0x251   :  { %12362 = vst [vmem:[#allocation26_spill] sm:$0xff] %v8896_v39  ;;  %1753 = vrot.lane.b32.xlu0 %v8648_v15, %s7365_s16  ;;  %5584 = vmatprep.subr.bf16.mxu1 %v5583_v46  ;;  %v6853_v24 = vunpack.i.h.bf16 %v8896_v39 }
 0x252   :  { %7030 = vrot.lane.b32.xlu1 %v7014_v47, %s7367_s18 }
 0x253   :  { %5586 = vmatpush1.bf16.msra.mxu1 %v5585_v63  ;;  %v8901_v34 = vpop.permute.xlu0 %6860 }
 0x254   :  { %v8903_v28 = vpop.permute.xlu1 %6855  ;;  %v12098_v43 = vunpack.i.h.bf16 %v8901_v34 }
 0x255   :  { %1849 = vrot.lane.b32.xlu0 %v8648_v15, %s7367_s18 }
 0x256   :  { %7040 = vrot.lane.b32.xlu1 %v7034_v8, %s7369_s20  ;;  %v1913_v8 = vsel %vm365_vm5, %v12102_v11, %v6853_v24 }
 0x257   :  { %v2020_v31 = vpop.permute.xlu0 %2019  ;;  %v5589_v10 = vpack.c.bf16 %v1913_v8, %v8614_v41 }
 0x258   :  { %v8908_v61 = vpop.permute.xlu1 %6865 }
 0x259   :  { %1947 = vrot.lane.b32.xlu0 %v8736_v52, %s7369_s20  ;;  %v6868_v2 = vunpack.i.h.bf16 %v8908_v61 }
 0x25a   :  { %2039 = vrot.lane.b32.xlu1 %v8819_v58, %s7371_s0  ;;  %v6827_v58 = vunpack.i.l.bf16 %v8833_v36 }
 0x25b   :  { %v8916_v47 = vpop.permute.xlu0 %6875 }
 0x25c   :  { %v12093_v12 = vunpack.i.l.bf16 %v8916_v47  ;;  %v8919_v22 = vpop.permute.xlu1 %6870 }
 0x25d   :  { %12363 = vst [vmem:[#allocation16_spill] sm:$0xff] %v8919_v22  ;;  %2043 = vrot.lane.b32.xlu0 %v8736_v52, %s7371_s0  ;;  %v6873_v51 = vunpack.i.h.bf16 %v8919_v22 }
 0x25e   :  { %1705 = vrot.lane.b32.xlu1 %v8648_v15, %s7366_s17  ;;  %v1912_v21 = vsel %vm365_vm5, %v6853_v24, %v12093_v12  ;;  %v12100_v24 = vunpack.i.h.bf16 %v8903_v28 }
 0x25f   :  { %v8933_v29 = vpop.permute.xlu0 %6880  ;;  %v5587_v42 = vpack.c.bf16 %v1912_v21, %v8616_v6  ;;  %v2009_v8 = vsel %vm12364_vm11, %v12098_v43, %v6873_v51  ;;  %vm12383_vm11 = vmmov %vm12371_vm1 }
 0x260   :  { %v8936_v38 = vpop.permute.xlu1 %2015  ;;  %v12094_v48 = vunpack.i.h.bf16 %v8933_v29  ;;  %v6882_v1 = vunpack.i.l.bf16 %v8933_v29 }
 0x261   :  { %5588 = vmatprep.subr.bf16.mxu1 %v5587_v42 }
 0x262   :  { %1801 = vrot.lane.b32.xlu1 %v8648_v15, %s7364_s15  ;;  %5590 = vmatpush1.bf16.msra.mxu1 %v5589_v10  ;;  %v8961_v21 = vsel %vm414_vm7, %v6882_v1, %v12094_v48  ;;  %v1960_v10 = vsel %vm414_vm7, %v6868_v2, %v6882_v1  ;;  %v1961_v48 = vsel %vm414_vm7, %v12100_v24, %v6868_v2 }
 0x263   :  { %v8946_v6 = vpop.permute.xlu0 %6885  ;;  %v5593_v33 = vpack.c.bf16 %v2009_v8, %v1961_v48 }
 0x264   :  { %v12097_v46 = vunpack.i.h.bf16 %v8946_v6  ;;  %v6887_v41 = vunpack.i.l.bf16 %v8946_v6  ;;  %v8950_v63 = vpop.permute.xlu1 %2021 }
 0x266   :  { %v8967_v42 = vsel %vm12365_vm10, %v6887_v41, %v12097_v46  ;;  %1899 = vrot.lane.b32.xlu1 %v8736_v52, %s7368_s19  ;;  %v2008_v12 = vsel %vm12366_vm8, %v6873_v51, %v6887_v41  ;;  %v2056_v51 = vsel %vm12341_vm9, %v2020_v31, %v8950_v63  ;;  %vm12386_vm10 = vmmov %vm12371_vm1  ;;  %vm12391_vm9 = vcmp.lt.s32.totalorder %v7667_v54, 96 }
 0x267   :  { %v8979_v59 = vpop.permute.xlu0 %6895  ;;  %v5591_v19 = vpack.c.bf16 %v2008_v12, %v1960_v10  ;;  %v2062_v12 = vld [vmem:[%s12006_s4] sm:$0xff]  ;;  %vm12387_vm8 = vmmov %vm12371_vm1 }
 0x268   :  { %v8983_v43 = vpop.permute.xlu1 %6890  ;;  %v6898_v10 = vunpack.i.h.bf16 %v8979_v59 }
 0x269   :  { %5592 = vmatprep.subr.bf16.mxu1 %v5591_v19  ;;  %v9000_v19 = vld [vmem:[%s12005_s3] sm:$0xff]  ;;  %v6893_v46 = vunpack.i.h.bf16 %v8983_v43 }
 0x26a   :  { %1995 = vrot.lane.b32.xlu1 %v8736_v52, %s7370_s23  ;;  %5594 = vmatpush1.bf16.msra.mxu1 %v5593_v33  ;;  %v2057_v33 = vsel %vm12367_vm6, %v8750_v14, %v2020_v31  ;;  %v12111_v31 = vunpack.i.l.bf16 %v8983_v43  ;;  %vm12392_vm6 = vmmov %vm12391_vm9 }
 0x26b   :  { %v8990_v1 = vpop.permute.xlu0 %6900  ;;  %2159 = vmatprep.subr.mxu1 %v2056_v51  ;;  %v12109_v51 = vunpack.i.l.bf16 %v8979_v59 }
 0x26c   :  { %v8995_v2 = vpop.permute.xlu1 %6905  ;;  %v1718_v11 = vsel %vm169_vm2, %v12111_v31, %v6893_v46  ;;  %v6903_v32 = vunpack.i.h.bf16 %v8990_v1  ;;  %v12370_v55 = vunpack.i.l.bf16 %v8990_v1 }
 0x26d   :  { %v1766_v45 = vsel %vm12355_vm0, %v12109_v51, %v6898_v10  ;;  %vm12394_vm0 = vmmov %vm12392_vm6 }
 0x26e   :  { %2160 = vmatpush1.msra.mxu1 %v2057_v33  ;;  %2065 = vperm.xlu1 %7049, %v2062_v12   ;;  %v6908_v33 = vunpack.i.h.bf16 %v8995_v2  ;;  %v5613_v51 = vpack.c.bf16 %v1766_v45, %v1718_v11 }
 0x26f   :  { %v9005_v48 = vpop.permute.xlu0 %6910  ;;  %5211 = vmatmul.mubr.msk.f32.vlgmr.msra.gmra.mrb[8].mxu1 %vm2068_vm14, %v9000_v19 }
 0x270   :  { %v9009_v41 = vpop.permute.xlu1 %6920  ;;  %2349 = vmatprep.mubr.f32.mxu1 %v12195_v26  ;;  %v6913_v52 = vunpack.i.h.bf16 %v9005_v48 }
 0x271   :  { %v12368_v60 = vunpack.i.l.bf16 %v9009_v41 }
 0x273   :  { %v9012_v8 = vpop.permute.xlu0 %6915  ;;  %v1717_v31 = vsel %vm169_vm2, %v6893_v46, %v12368_v60  ;;  %v1814_v60 = vsel %vm12371_vm1, %v12370_v55, %v6903_v32  ;;  %v12372_v46 = vunpack.i.l.bf16 %v8995_v2  ;;  %vm12396_vm1 = vcmp.lt.s32.totalorder %v7667_v54, 95 }
 0x274   :  { %v9018_v12 = vpop.permute.xlu1 %6935 }
 0x275   :  { %v12374_v11 = vunpack.i.l.bf16 %v9018_v12 }
 0x277   :  { %v9021_v24 = vpop.permute.xlu0 %6925  ;;  %v1861_v55 = vsel %vm316_vm3, %v6908_v33, %v12374_v11 }
 0x278   :  { %v12116_v17 = vunpack.i.l.bf16 %v9021_v24  ;;  %v9032_v16 = vpop.permute.xlu1 %6940 }
 0x27a   :  { %v1765_v5 = vsel %vm12369_vm15, %v6898_v10, %v12116_v17  ;;  %v1862_v10 = vsel %vm316_vm3, %v12372_v46, %v6908_v33  ;;  %vm12395_vm15 = vmmov %vm12394_vm0 }
 0x27b   :  { %v9048_v15 = vpop.permute.xlu0 %6930  ;;  %v5611_v35 = vpack.c.bf16 %v1765_v5, %v1717_v31  ;;  %v6832_v5 = vunpack.i.l.bf16 %v8871_v0  ;;  %v12375_v31 = vunpack.i.l.bf16 %v9032_v16 }
 0x27c   :  { %v12119_v4 = vunpack.i.l.bf16 %v9048_v15  ;;  %v9052_v44 = vpop.permute.xlu1 %6945 }
 0x27d   :  { %5612 = vmatprep.subr.bf16.mxu1 %v5611_v35  ;;  %v1908_v46 = vsel %vm365_vm5, %v6913_v52, %v12375_v31  ;;  %v12377_v35 = vunpack.i.h.bf16 %v8871_v0 }
 0x27e   :  { %5614 = vmatpush1.bf16.msra.mxu1 %v5613_v51  ;;  %v1813_v45 = vsel %vm12373_vm13, %v6903_v32, %v12119_v4  ;;  %v5617_v32 = vpack.c.bf16 %v1862_v10, %v1814_v60  ;;  %v12376_v4 = vunpack.i.l.bf16 %v9005_v48  ;;  %v5619_v31 = vpack.c.bf16 %v1908_v46, %v8706_v30  ;;  %vm12398_vm13 = vmmov %vm12381_vm12 }
 0x27f   :  { %v9077_v17 = vpop.permute.xlu0 %1933  ;;  %v5615_v51 = vpack.c.bf16 %v1861_v55, %v1813_v45  ;;  %v1867_v45 = vsel %vm316_vm3, %v6832_v5, %v12377_v35  ;;  %v12378_v55 = vunpack.i.l.bf16 %v8837_v25  ;;  %v12379_v60 = vunpack.i.l.bf16 %v9052_v44 }
 0x280   :  { %v9080_v7 = vpop.permute.xlu1 %6950  ;;  %v1909_v33 = vsel %vm365_vm5, %v12376_v4, %v6913_v52  ;;  %v12380_v4 = vunpack.i.l.bf16 %v8846_v13  ;;  %v12382_v35 = vunpack.i.h.bf16 %v8833_v36  ;;  %v6847_v13 = vunpack.i.l.bf16 %v8894_v37 }
 0x281   :  { %v12120_v11 = vunpack.i.l.bf16 %v9080_v7  ;;  %5616 = vmatprep.subr.bf16.mxu1 %v5615_v51  ;;  %v1724_v10 = vsel %vm169_vm2, %v12379_v60, %v12378_v55  ;;  %v5621_v25 = vpack.c.bf16 %v1909_v33, %v8693_v3 }
 0x282   :  { %5618 = vmatpush1.bf16.msra.mxu1 %v5617_v32  ;;  %v1819_v51 = vsel %vm12383_vm11, %v6827_v58, %v12382_v35  ;;  %vm12403_vm11 = vmmov %vm12396_vm1 }
 0x283   :  { %v1772_v30 = vsel %vm12381_vm12, %v12120_v11, %v12380_v4  ;;  %v9104_v52 = vpop.permute.xlu0 %6970  ;;  %5620 = vmatprep.subr.bf16.mxu1 %v5619_v31  ;;  %v5567_v32 = vpack.c.bf16 %v1867_v45, %v1819_v51  ;;  %v6862_v45 = vunpack.i.l.bf16 %v8901_v34  ;;  %v6857_v4 = vunpack.i.l.bf16 %v8903_v28 }
 0x284   :  { %v9106_v0 = vpop.permute.xlu1 %6955  ;;  %v5565_v46 = vpack.c.bf16 %v1772_v30, %v1724_v10  ;;  %v12125_v10 = vunpack.i.l.bf16 %v8896_v39  ;;  %v12384_v30 = vunpack.i.h.bf16 %v8894_v37  ;;  %v6917_v39 = vunpack.i.l.bf16 %v9012_v8 }
 0x285   :  { %v12122_v55 = vunpack.i.h.bf16 %v9106_v0  ;;  %v12121_v60 = vunpack.i.l.bf16 %v9106_v0 }
 0x286   :  { %5566 = vmatpush1.bf16.msra.mxu0 %v5565_v46  ;;  %5622 = vmatpush1.bf16.msra.mxu1 %v5621_v25  ;;  %v1914_v46 = vsel %vm365_vm5, %v6847_v13, %v12384_v30  ;;  %v12385_v25 = vunpack.i.h.bf16 %v8844_v20 }
 0x287   :  { %v9116_v31 = vpop.permute.xlu0 %2023  ;;  %5568 = vmatprep.subr.bf16.mxu0 %v5567_v32  ;;  %v1820_v51 = vsel %vm12387_vm8, %v12121_v60, %v6827_v58  ;;  %v12388_v32 = vunpack.i.h.bf16 %v8859_v53  ;;  %v6867_v53 = vunpack.i.l.bf16 %v8908_v61 }
 0x288   :  { %v9119_v3 = vpop.permute.xlu1 %6960  ;;  %v9135_v35 = vsel %vm12386_vm10, %v12385_v25, %v12122_v55  ;;  %v1915_v25 = vsel %vm365_vm5, %v12125_v10, %v6847_v13  ;;  %v12389_v13 = vunpack.i.h.bf16 %v8903_v28  ;;  %vm12406_vm10 = vmmov %vm12387_vm8 }
 0x289   :  { %v6963_v36 = vunpack.i.h.bf16 %v9119_v3  ;;  %v12123_v33 = vunpack.i.l.bf16 %v9119_v3  ;;  %v5573_v28 = vpack.c.bf16 %v1915_v25, %v8644_v50  ;;  %v6953_v50 = vunpack.i.h.bf16 %v9080_v7  ;;  %vm12409_vm8 = vmmov %vm12381_vm12 }
 0x28b   :  { %v9145_v37 = vsel %vm316_vm3, %v12388_v32, %v6963_v36  ;;  %v1868_v20 = vsel %vm316_vm3, %v12123_v33, %v6832_v5  ;;  %v9151_v30 = vpop.permute.xlu0 %1699  ;;  %v5571_v5 = vpack.c.bf16 %v1914_v46, %v8646_v9  ;;  %v6918_v33 = vunpack.i.h.bf16 %v9012_v8 }
 0x28c   :  { %v9157_v11 = vpop.permute.xlu1 %6965  ;;  %v5569_v58 = vpack.c.bf16 %v1868_v20, %v1820_v51  ;;  %v1962_v51 = vsel %vm414_vm7, %v6857_v4, %v12389_v13  ;;  %v12390_v20 = vunpack.i.h.bf16 %v8901_v34 }
 0x28d   :  { %v6968_v60 = vunpack.i.h.bf16 %v9157_v11  ;;  %v12126_v55 = vunpack.i.l.bf16 %v9157_v11  ;;  %v1956_v13 = vsel %vm414_vm7, %v6918_v33, %v9077_v17 }
 0x28e   :  { %5570 = vmatpush1.bf16.msra.mxu0 %v5569_v58  ;;  %v2010_v10 = vsel %vm12391_vm9, %v6862_v45, %v12390_v20  ;;  %v12393_v58 = vunpack.i.l.bf16 %v8919_v22  ;;  %vm12413_vm9 = vmmov %vm12394_vm0 }
 0x28f   :  { %v9176_v32 = vpop.permute.xlu0 %2027  ;;  %5572 = vmatprep.subr.bf16.mxu0 %v5571_v5  ;;  %v2005_v9 = vsel %vm12392_vm6, %v12126_v55, %v6968_v60  ;;  %v5575_v20 = vpack.c.bf16 %v2010_v10, %v1962_v51  ;;  %v1957_v55 = vsel %vm414_vm7, %v6917_v39, %v6918_v33  ;;  %v2058_v33 = vsel %vm12396_vm1, %v8936_v38, %v8750_v14  ;;  %vm12414_vm6 = vmmov %vm12409_vm8 }
 0x290   :  { %v9182_v46 = vpop.permute.xlu1 %1981  ;;  %v2011_v34 = vsel %vm12394_vm0, %v12393_v58, %v6862_v45  ;;  %v1963_v45 = vsel %vm414_vm7, %v6867_v53, %v6857_v4  ;;  %v5625_v22 = vpack.c.bf16 %v2005_v9, %v1957_v55  ;;  %v12399_v55 = vunpack.i.h.bf16 %v8767_v49  ;;  %vm12415_vm0 = vmmov %vm12396_vm1 }
 0x291   :  { %v2004_v5 = vsel %vm12395_vm15, %v6968_v60, %v9182_v46  ;;  %v6948_v60 = vunpack.i.h.bf16 %v9052_v44  ;;  %v5577_v51 = vpack.c.bf16 %v2011_v34, %v1963_v45  ;;  %v12400_v34 = vunpack.i.l.bf16 %v8983_v43  ;;  %vm12416_vm15 = vmmov %vm12415_vm0 }
 0x292   :  { %5574 = vmatpush1.bf16.msra.mxu0 %v5573_v28  ;;  %v5623_v25 = vpack.c.bf16 %v2004_v5, %v1956_v13  ;;  %v12397_v28 = vunpack.i.l.bf16 %v8979_v59  ;;  %v1768_v9 = vsel %vm12381_vm12, %v12399_v55, %v6953_v50  ;;  %v12401_v59 = vunpack.i.l.bf16 %v8995_v2  ;;  %vm12419_vm1 = vmmov %vm12414_vm6 }
 0x293   :  { %v9204_v58 = vpop.permute.xlu0 %6980  ;;  %5576 = vmatprep.subr.bf16.mxu0 %v5575_v20  ;;  %v1719_v14 = vsel %vm169_vm2, %v6948_v60, %v12400_v34  ;;  %v12402_v49 = vunpack.i.h.bf16 %v8758_v18  ;;  %v6878_v43 = vunpack.i.h.bf16 %v8916_v47  ;;  %v12404_v2 = vunpack.i.l.bf16 %v8990_v1  ;;  %vm12422_vm12 = vmmov %vm12415_vm0 }
 0x294   :  { %v9207_v10 = vpop.permute.xlu1 %6975  ;;  %5624 = vmatprep.subr.bf16.mxu1 %v5623_v25  ;;  %v1767_v4 = vsel %vm12398_vm13, %v6953_v50, %v12397_v28  ;;  %v1863_v5 = vsel %vm316_vm3, %v6963_v36, %v12401_v59  ;;  %v2059_v50 = vsel %vm12403_vm11, %v8829_v40, %v8936_v38  ;;  %v12408_v55 = vunpack.i.l.bf16 %v8916_v47  ;;  %vm12420_vm13 = vmmov %vm12406_vm10 }
 0x295   :  { %5626 = vmatpush1.bf16.msra.mxu1 %v5625_v22  ;;  %v1720_v20 = vsel %vm169_vm2, %v12402_v49, %v6948_v60  ;;  %v5595_v25 = vpack.c.bf16 %v1767_v4, %v1719_v14  ;;  %v6978_v28 = vunpack.i.h.bf16 %v9207_v10  ;;  %v6977_v4 = vunpack.i.l.bf16 %v9207_v10  ;;  %vm12423_vm11 = vmmov %vm12419_vm1 }
 0x296   :  { %5578 = vmatpush1.bf16.msra.mxu0 %v5577_v51  ;;  %v5597_v45 = vpack.c.bf16 %v1768_v9, %v1720_v20  ;;  %v12405_v51 = vunpack.i.h.bf16 %v9106_v0  ;;  %v1911_v9 = vsel %vm365_vm5, %v12408_v55, %v6878_v43  ;;  %v6973_v34 = vunpack.i.h.bf16 %v9104_v52 }
 0x297   :  { %v9221_v13 = vpop.permute.xlu0 %1795  ;;  %2088 = vmatprep.subr.mxu0 %v2058_v33  ;;  %v12407_v33 = vunpack.i.l.bf16 %v9005_v48  ;;  %v6972_v14 = vunpack.i.l.bf16 %v9104_v52  ;;  %v12410_v47 = vpack.c.bf16 %v9145_v37, %v9135_v35  ;;  %v12411_v10 = vunpack.i.l.bf16 %v9157_v11 }
 0x298   :  { %v9223_v22 = vpop.permute.xlu1 %2025  ;;  %v1815_v18 = vsel %vm12406_vm10, %v12405_v51, %v12404_v2  ;;  %v12412_v20 = vunpack.i.h.bf16 %v8946_v6  ;;  %v5605_v11 = vpack.c.bf16 %v1911_v9, %v8674_v23  ;;  %v6982_v55 = vunpack.i.l.bf16 %v9204_v58 }
 0x299   :  { %v5599_v60 = vpack.c.bf16 %v1863_v5, %v1815_v18  ;;  %v1910_v1 = vsel %vm365_vm5, %v6878_v43, %v12407_v33  ;;  %v2053_v6 = vsel %vm12416_vm15, %v9223_v22, %v9176_v32  ;;  %v1714_v2 = vsel %vm169_vm2, %v6972_v14, %v6973_v34 }
 0x29a   :  { %2089 = vmatpush1.msra.mxu0 %v2059_v50  ;;  %v5603_v5 = vpack.c.bf16 %v1910_v1, %v8676_v62  ;;  %v2006_v52 = vsel %vm12413_vm9, %v12412_v20, %v12411_v10  ;;  %v1713_v50 = vsel %vm169_vm2, %v6973_v34, %v9151_v30  ;;  %v1762_v62 = vsel %vm12414_vm6, %v6977_v4, %v6978_v28  ;;  %vm12427_vm9 = vmmov %vm12406_vm10 }
 0x29b   :  { %v9248_v36 = vpop.permute.xlu0 %6990  ;;  %5210 = vmatmul.mubr.msk.f32.vlgmr.msra.gmra.mrb[8].mxu0 %vm2068_vm14, %v9000_v19  ;;  %5596 = vmatprep.subr.bf16.mxu0 %v5595_v25  ;;  %v12417_v25 = vunpack.i.h.bf16 %v8933_v29  ;;  %v5645_v23 = vpack.c.bf16 %v1762_v62, %v1714_v2  ;;  %v6983_v29 = vunpack.i.h.bf16 %v9204_v58  ;;  %v6938_v33 = vunpack.i.h.bf16 %v9018_v12  ;;  %vm12428_vm6 = vmmov %vm12427_vm9 }
 0x29c   :  { %v9252_v38 = vpop.permute.xlu1 %1747  ;;  %5598 = vmatpush1.bf16.msra.mxu0 %v5597_v45  ;;  %2278 = vmatprep.mubr.f32.mxu0 %v12195_v26  ;;  %v6928_v45 = vunpack.i.h.bf16 %v9021_v24  ;;  %v12418_v1 = vunpack.i.l.bf16 %v9021_v24  ;;  %v6933_v34 = vunpack.i.h.bf16 %v9048_v15  ;;  %v2054_v24 = vsel %vm12422_vm12, %v9116_v31, %v9223_v22 }
 0x29d   :  { %5600 = vmatprep.subr.bf16.mxu0 %v5599_v60  ;;  %v1761_v48 = vsel %vm12409_vm8, %v6978_v28, %v9252_v38  ;;  %v1958_v43 = vsel %vm414_vm7, %v12417_v25, %v6917_v39  ;;  %v6923_v39 = vunpack.i.h.bf16 %v9009_v41  ;;  %v6993_v10 = vunpack.i.h.bf16 %v9248_v36  ;;  %vm12425_vm8 = vmmov %vm12415_vm0 }
 0x29e   :  { %v5643_v37 = vpack.c.bf16 %v1761_v48, %v1713_v50  ;;  %v5607_v18 = vpack.c.bf16 %v2006_v52, %v1958_v43  ;;  %v1764_v28 = vsel %vm12419_vm1, %v12418_v1, %v6928_v45  ;;  %v1809_v48 = vsel %vm12420_vm13, %v6983_v29, %v9221_v13  ;;  %vm12436_vm12 = vmmov %vm12425_vm8 }
 0x29f   :  { %v9270_v59 = vpop.permute.xlu0 %6995  ;;  %v1763_v58 = vsel %vm12423_vm11, %v6928_v45, %v6977_v4  ;;  %v6992_v20 = vunpack.i.l.bf16 %v9248_v36  ;;  %v1715_v4 = vsel %vm169_vm2, %v6923_v39, %v6972_v14  ;;  %v1810_v62 = vsel %vm12406_vm10, %v6982_v55, %v6983_v29  ;;  %vm12437_vm11 = vmmov %vm12425_vm8 }
 0x2a0   :  { %v9273_v49 = vpop.permute.xlu1 %2029  ;;  %5602 = vmatpush1.bf16.msra.mxu0 %v12410_v47  ;;  %v12421_v47 = vpack.c.bf16 %v8967_v42, %v8961_v21  ;;  %v12424_v42 = vunpack.i.l.bf16 %v9009_v41  ;;  %v2055_v41 = vsel %vm12425_vm8, %v8950_v63, %v9116_v31  ;;  %v12426_v25 = vunpack.i.l.bf16 %v9048_v15  ;;  %vm12438_vm10 = vmmov %vm12425_vm8 }
 0x2a1   :  { %5604 = vmatprep.subr.bf16.mxu0 %v5603_v5  ;;  %v2052_v35 = vsel %vm12415_vm0, %v9176_v32, %v9273_v49  ;;  %v1811_v2 = vsel %vm12428_vm6, %v6933_v34, %v6982_v55  ;;  %v1905_v63 = vsel %vm365_vm5, %v6992_v20, %v6993_v10  ;;  %v12430_v55 = vunpack.i.l.bf16 %v9032_v16 }
 0x2a2   :  { %2301 = vmatprep.subr.mxu1 %v2052_v35  ;;  %v1716_v22 = vsel %vm169_vm2, %v12424_v42, %v6923_v39  ;;  %v1812_v14 = vsel %vm12427_vm9, %v12426_v25, %v6933_v34  ;;  %v6997_v39 = vunpack.i.l.bf16 %v9270_v59  ;;  %vm12431_vm0 = vcmp.lt.s32.totalorder %v7667_v54, 96 }
 0x2a3   :  { %v9307_v51 = vpop.permute.xlu0 %7005  ;;  %2302 = vmatpush1.msra.mxu1 %v2053_v6  ;;  %v5627_v6 = vpack.c.bf16 %v1763_v58, %v1715_v4  ;;  %vm12433_vm15 = vmmov %vm12431_vm0  ;;  %vm12439_vm9 = vcmp.lt.s32.totalorder %v7667_v54, 32 }
 0x2a4   :  { %v6986_v32 = vpop.permute.xlu1 %6985  ;;  %5606 = vmatpush1.bf16.msra.mxu0 %v5605_v11  ;;  %5644 = vmatprep.subr.bf16.mxu1 %v5643_v37  ;;  %v5629_v11 = vpack.c.bf16 %v1764_v28, %v1716_v22  ;;  %v6943_v37 = vunpack.i.h.bf16 %v9032_v16  ;;  %v1955_v22 = vsel %vm414_vm7, %v9077_v17, %v6997_v39  ;;  %vm12434_vm1 = vmmov %vm12431_vm0 }
 0x2a5   :  { %v6988_v60 = vunpack.i.h.bf16 %v6986_v32  ;;  %v6987_v8 = vunpack.i.l.bf16 %v6986_v32  ;;  %5608 = vmatprep.subr.bf16.mxu0 %v5607_v18  ;;  %5213 = vmatmul.mubr.msk.f32.vlgmr.msra.gmra.mrb[10].mxu1 %vm2068_vm14, %v9000_v19  ;;  %vm12435_vm13 = vmmov %vm12431_vm0 }
 0x2a6   :  { %5646 = vmatpush1.bf16.msra.mxu1 %v5645_v23  ;;  %2491 = vmatprep.mubr.f32.mxu1 %v12195_v26  ;;  %v1906_v32 = vsel %vm365_vm5, %v6943_v37, %v6992_v20  ;;  %v12429_v23 = vunpack.i.l.bf16 %v9018_v12  ;;  %v1907_v12 = vsel %vm365_vm5, %v12430_v55, %v6943_v37  ;;  %vm12440_vm6 = vmmov %vm12439_vm9 }
 0x2a7   :  { %v9320_v9 = vpop.permute.xlu0 %2031  ;;  %v1858_v52 = vsel %vm316_vm3, %v6987_v8, %v6988_v60  ;;  %v1859_v36 = vsel %vm316_vm3, %v6938_v33, %v6987_v8  ;;  %v6998_v8 = vunpack.i.h.bf16 %v9270_v59  ;;  %v7008_v59 = vunpack.i.h.bf16 %v9307_v51 }
 0x2a8   :  { %v9326_v5 = vpop.permute.xlu1 %1843  ;;  %5610 = vmatpush1.bf16.msra.mxu0 %v12421_v47  ;;  %v5649_v45 = vpack.c.bf16 %v1858_v52, %v1810_v62  ;;  %v5631_v15 = vpack.c.bf16 %v1859_v36, %v1811_v2  ;;  %v7007_v47 = vunpack.i.l.bf16 %v9307_v51 }
 0x2a9   :  { %v1857_v21 = vsel %vm316_vm3, %v6988_v60, %v9326_v5  ;;  %2230 = vmatprep.subr.mxu0 %v2054_v24  ;;  %v1860_v60 = vsel %vm316_vm3, %v12429_v23, %v6938_v33 }
 0x2aa   :  { %v5647_v50 = vpack.c.bf16 %v1857_v21, %v1809_v48  ;;  %v5633_v28 = vpack.c.bf16 %v1860_v60, %v1812_v14  ;;  %v5635_v48 = vpack.c.bf16 %v1906_v32, %v8725_v56  ;;  %v2051_v14 = vsel %vm12437_vm11, %v9273_v49, %v9320_v9  ;;  %vm12448_vm11 = vmmov %vm12440_vm6 }
 0x2ab   :  { %v9354_v35 = vpop.permute.xlu0 %2035 }
 0x2ac   :  { %v9365_v43 = vpop.permute.xlu1 %1893  ;;  %2231 = vmatpush1.msra.mxu0 %v2055_v41  ;;  %5648 = vmatprep.subr.bf16.mxu1 %v5647_v50  ;;  %v1953_v50 = vsel %vm414_vm7, %v6998_v8, %v7007_v47 }
 0x2ad   :  { %v1904_v31 = vsel %vm365_vm5, %v6993_v10, %v9365_v43  ;;  %5212 = vmatmul.mubr.msk.f32.vlgmr.msra.gmra.mrb[10].mxu0 %vm2068_vm14, %v9000_v19  ;;  %5628 = vmatprep.subr.bf16.mxu0 %v5627_v6  ;;  %v12432_v10 = vld [vmem:[#allocation13_spill] sm:$0xff] }
 0x2ae   :  { %v5651_v18 = vpack.c.bf16 %v1904_v31, %v8769_v57  ;;  %5650 = vmatpush1.bf16.msra.mxu1 %v5649_v45  ;;  %5630 = vmatpush1.bf16.msra.mxu0 %v5629_v11  ;;  %v5653_v57 = vpack.c.bf16 %v1905_v63, %v8745_v27  ;;  %v1954_v27 = vsel %vm414_vm7, %v6997_v39, %v6998_v8 }
 0x2af   :  { %v9385_v29 = vpop.permute.xlu0 %7015  ;;  %5632 = vmatprep.subr.bf16.mxu0 %v5631_v15  ;;  %2420 = vmatprep.mubr.f32.mxu0 %v12195_v26  ;;  %v5637_v20 = vpack.c.bf16 %v1907_v12, %v12432_v10 }
 0x2b0   :  { %v7001_v1 = vpop.permute.xlu1 %7000  ;;  %5652 = vmatprep.subr.bf16.mxu1 %v5651_v18  ;;  %v7018_v2 = vunpack.i.h.bf16 %v9385_v29  ;;  %v7017_v63 = vunpack.i.l.bf16 %v9385_v29 }
 0x2b1   :  { %v7003_v33 = vunpack.i.h.bf16 %v7001_v1  ;;  %v7002_v34 = vunpack.i.l.bf16 %v7001_v1 }
 0x2b2   :  { %5654 = vmatpush1.bf16.msra.mxu1 %v5653_v57  ;;  %5634 = vmatpush1.bf16.msra.mxu0 %v5633_v28  ;;  %v1711_v60 = vsel %vm169_vm2, %v7017_v63, %v7018_v2 }
 0x2b3   :  { %5636 = vmatprep.subr.bf16.mxu0 %v5635_v48  ;;  %v2002_v16 = vsel %vm12431_vm0, %v7002_v34, %v7003_v33  ;;  %v9400_v24 = vpop.permute.xlu0 %7025  ;;  %v2003_v52 = vsel %vm12433_vm15, %v9182_v46, %v7002_v34  ;;  %v1952_v46 = vsel %vm414_vm7, %v7007_v47, %v7008_v59  ;;  %vm12441_vm0 = vcmp.lt.s32.totalorder %v7667_v54, 31 }
 0x2b4   :  { %v9402_v58 = vpop.permute.xlu1 %7010  ;;  %v5639_v56 = vpack.c.bf16 %v2002_v16, %v1954_v27  ;;  %v5641_v62 = vpack.c.bf16 %v2003_v52, %v1955_v22  ;;  %v7028_v32 = vunpack.i.h.bf16 %v9400_v24  ;;  %v7027_v23 = vunpack.i.l.bf16 %v9400_v24  ;;  %vm12442_vm15 = vmmov %vm12441_vm0  ;;  %v12443_v22 = vld [vmem:[#allocation22_spill] sm:$0xff] }
 0x2b5   :  { %v7013_v21 = vunpack.i.h.bf16 %v9402_v58  ;;  %v7012_v42 = vunpack.i.l.bf16 %v9402_v58 }
 0x2b6   :  { %5638 = vmatpush1.bf16.msra.mxu0 %v5637_v20  ;;  %v1808_v34 = vsel %vm12441_vm0, %v9221_v13, %v7027_v23 }
 0x2b7   :  { %v2001_v4 = vsel %vm12434_vm1, %v7003_v33, %v7012_v42  ;;  %5640 = vmatprep.subr.bf16.mxu0 %v5639_v56  ;;  %v2000_v36 = vsel %vm12435_vm13, %v7012_v42, %v7013_v21  ;;  %v9428_v37 = vpop.permute.xlu0 %7035  ;;  %vm12445_vm13 = vmmov %vm12434_vm1 }
 0x2b8   :  { %v5657_v17 = vpack.c.bf16 %v2001_v4, %v1953_v50  ;;  %v2034_v41 = vpop.permute.xlu1 %2033  ;;  %v5655_v6 = vpack.c.bf16 %v2000_v36, %v1952_v46  ;;  %v7038_v8 = vunpack.i.h.bf16 %v9428_v37  ;;  %v7037_v39 = vunpack.i.l.bf16 %v9428_v37 }
 0x2b9   :  { %v2050_v11 = vsel %vm12436_vm12, %v9320_v9, %v2034_v41  ;;  %v2049_v31 = vsel %vm12425_vm8, %v2034_v41, %v9354_v35  ;;  %vm12447_vm12 = vmmov %vm12440_vm6 }
 0x2ba   :  { %5642 = vmatpush1.bf16.msra.mxu0 %v5641_v62  ;;  %5656 = vmatprep.subr.bf16.mxu1 %v5655_v6  ;;  %v1902_v16 = vsel %vm365_vm5, %v7037_v39, %v7038_v8  ;;  %v1903_v42 = vsel %vm365_vm5, %v9365_v43, %v7037_v39  ;;  %v12444_v62 = vld [vmem:[#allocation19_spill] sm:$0xff] }
 0x2bb   :  { %2372 = vmatprep.subr.mxu0 %v2050_v11  ;;  %5658 = vmatpush1.bf16.msra.mxu1 %v5657_v17  ;;  %v9447_v49 = vpop.permute.xlu0 %7045  ;;  %v5667_v50 = vpack.c.bf16 %v1902_v16, %v12443_v22  ;;  %v5669_v17 = vpack.c.bf16 %v1903_v42, %v12444_v62  ;;  %v2848_v42 = vld [vmem:[%s12013_s11] sm:$0xff]  ;;  %v2853_v22 = vld [vmem:[%s12013_s11 + $0x28] sm:$0xff]  ;;  %v2854_v62 = vld [vmem:[%s12013_s11 + $0x30] sm:$0xff] }
 0x2bc   :  { %v9430_v25 = vpop.permute.xlu1 %2037  ;;  %v7048_v20 = vunpack.i.h.bf16 %v9447_v49  ;;  %v7047_v56 = vunpack.i.l.bf16 %v9447_v49 }
 0x2bd   :  { %v2048_v45 = vsel %vm12438_vm10, %v9354_v35, %v9430_v25  ;;  %v1712_v35 = vsel %vm169_vm2, %v9151_v30, %v7017_v63  ;;  %vm12450_vm10 = vmmov %vm12425_vm8 }
 0x2be   :  { %2373 = vmatpush1.msra.mxu0 %v2051_v14  ;;  %2443 = vmatprep.subr.mxu1 %v2048_v45  ;;  %v1998_v41 = vsel %vm12434_vm1, %v7047_v56, %v7048_v20  ;;  %v1999_v11 = vsel %vm12445_vm13, %v7013_v21, %v7047_v56  ;;  %v12446_v14 = vunpack.i.l.bf16 %v9080_v7  ;;  %vm12454_vm8 = vmmov %vm12441_vm0 }
 0x2bf   :  { %5214 = vmatmul.mubr.msk.f32.vlgmr.msra.gmra.mrb[12].mxu0 %vm2068_vm14, %v9000_v19  ;;  %2444 = vmatpush1.msra.mxu1 %v2049_v31  ;;  %v9472_v48 = vpop.permute.xlu0 %2041 }
 0x2c0   :  { %v7021_v9 = vpop.permute.xlu1 %7020  ;;  %5215 = vmatmul.mubr.msk.f32.vlgmr.msra.gmra.mrb[12].mxu1 %vm2068_vm14, %v9000_v19  ;;  %2562 = vmatprep.mubr.f32.mxu0 %v12195_v26 }
 0x2c1   :  { %v7023_v15 = vunpack.i.h.bf16 %v7021_v9  ;;  %v7022_v18 = vunpack.i.l.bf16 %v7021_v9  ;;  %2633 = vmatprep.mubr.f32.mxu1 %v12195_v26 }
 0x2c3   :  { %v1760_v57 = vsel %vm12439_vm9, %v9252_v38, %v7022_v18  ;;  %v1759_v30 = vsel %vm12440_vm6, %v7022_v18, %v7023_v15  ;;  %v1807_v38 = vsel %vm12442_vm15, %v7027_v23, %v7028_v32  ;;  %v1754_v46 = vpop.permute.xlu0 %1753  ;;  %vm12455_vm9 = vmmov %vm12450_vm10 }
 0x2c4   :  { %v5661_v1 = vpack.c.bf16 %v1760_v57, %v1712_v35  ;;  %v7031_v28 = vpop.permute.xlu1 %7030  ;;  %v5659_v55 = vpack.c.bf16 %v1759_v30, %v1711_v60  ;;  %v1757_v45 = vsel %vm12447_vm12, %v1754_v46, %v12446_v14  ;;  %v1758_v51 = vsel %vm12448_vm11, %v7023_v15, %v1754_v46  ;;  %vm12460_vm6 = vmmov %vm12434_vm1 }
 0x2c5   :  { %v7033_v12 = vunpack.i.h.bf16 %v7031_v28  ;;  %v7032_v33 = vunpack.i.l.bf16 %v7031_v28  ;;  %vm12464_vm15 = vmmov %vm12455_vm9 }
 0x2c6   :  { %5660 = vmatprep.subr.bf16.mxu0 %v5659_v55 }
 0x2c7   :  { %v1856_v47 = vsel %vm316_vm3, %v9326_v5, %v7032_v33  ;;  %5662 = vmatpush1.bf16.msra.mxu0 %v5661_v1  ;;  %v1855_v27 = vsel %vm316_vm3, %v7032_v33, %v7033_v12  ;;  %v1850_v7 = vpop.permute.xlu0 %1849  ;;  %v12459_v33 = vld [vmem:[#allocation12_spill] sm:$0xff] }
 0x2c8   :  { %v5665_v13 = vpack.c.bf16 %v1856_v47, %v1808_v34  ;;  %v7041_v24 = vpop.permute.xlu1 %7040  ;;  %v5663_v10 = vpack.c.bf16 %v1855_v27, %v1807_v38  ;;  %v1854_v29 = vsel %vm316_vm3, %v7033_v12, %v1850_v7  ;;  %v12461_v27 = vld [vmem:[#allocation16_spill] sm:$0xff] }
 0x2c9   :  { %v7043_v5 = vunpack.i.h.bf16 %v7041_v24  ;;  %v7042_v52 = vunpack.i.l.bf16 %v7041_v24  ;;  %v12462_v16 = vunpack.i.l.bf16 %v12461_v27  ;;  %v2879_v27 = vld [vmem:[%s12013_s11 + $0xf8] sm:$0xff] }
 0x2ca   :  { %5664 = vmatprep.subr.bf16.mxu0 %v5663_v10 }
 0x2cb   :  { %5666 = vmatpush1.bf16.msra.mxu0 %v5665_v13  ;;  %v1950_v4 = vsel %vm414_vm7, %v7042_v52, %v7043_v5  ;;  %v1951_v43 = vsel %vm414_vm7, %v7008_v59, %v7042_v52  ;;  %v12449_v59 = vunpack.i.l.bf16 %v9052_v44  ;;  %v12451_v44 = vunpack.i.l.bf16 %v9119_v3  ;;  %v1948_v30 = vpop.permute.xlu0 %1947  ;;  %v2849_v52 = vld [vmem:[%s12013_s11 + $0x8] sm:$0xff] }
 0x2cc   :  { %v2040_v36 = vpop.permute.xlu1 %2039  ;;  %5668 = vmatprep.subr.bf16.mxu0 %v5667_v50  ;;  %v5671_v6 = vpack.c.bf16 %v1998_v41, %v1950_v4  ;;  %v5673_v31 = vpack.c.bf16 %v1999_v11, %v1951_v43  ;;  %v1949_v38 = vsel %vm414_vm7, %v7043_v5, %v1948_v30  ;;  %v1964_v37 = vsel %vm414_vm7, %v1948_v30, %v6867_v53  ;;  %vm12465_vm7 = vmmov %vm12455_vm9  ;;  %v2855_v50 = vld [vmem:[%s12013_s11 + $0x38] sm:$0xff]  ;;  %v2857_v43 = vld [vmem:[%s12013_s11 + $0x48] sm:$0xff] }
 0x2cd   :  { %v2046_v18 = vsel %vm12450_vm10, %v2040_v36, %v9472_v48  ;;  %v1853_v35 = vsel %vm316_vm3, %v1850_v7, %v12451_v44  ;;  %v2047_v39 = vsel %vm12455_vm9, %v9430_v25, %v2040_v36  ;;  %v12458_v25 = vld [vmem:[#allocation24_spill] sm:$0xff]  ;;  %v5695_v46 = vpack.c.bf16 %v2855_v50, %v2853_v22  ;;  %v2865_v44 = vld [vmem:[%s12013_s11 + $0x88] sm:$0xff]  ;;  %vm12467_vm13 = vmmov %vm12465_vm7 }
 0x2ce   :  { %v2852_v36 = vld [vmem:[%s12013_s11 + $0x20] sm:$0xff]  ;;  %v2887_v22 = vld [vmem:[%s12013_s11 + $0x138] sm:$0xff]  ;;  %vm12469_vm11 = vmmov %vm12465_vm7 }
 0x2cf   :  { %5670 = vmatpush1.bf16.msra.mxu0 %v5669_v17  ;;  %v2044_v24 = vpop.permute.xlu0 %2043  ;;  %v5697_v17 = vpack.c.bf16 %v2854_v62, %v2852_v36  ;;  %v2856_v11 = vld [vmem:[%s12013_s11 + $0x40] sm:$0xff]  ;;  %v2886_v36 = vld [vmem:[%s12013_s11 + $0x130] sm:$0xff]  ;;  %v2889_v62 = vld [vmem:[%s12013_s11 + $0x148] sm:$0xff] }
 0x2d0   :  { %v1706_v63 = vpop.permute.xlu1 %1705  ;;  %5672 = vmatprep.subr.bf16.mxu0 %v5671_v6  ;;  %v2060_v61 = vsel %vm12464_vm15, %v2044_v24, %v8829_v40  ;;  %v2045_v53 = vsel %vm12465_vm7, %v9472_v48, %v2044_v24  ;;  %v2851_v40 = vld [vmem:[%s12013_s11 + $0x18] sm:$0xff]  ;;  %v2860_v7 = vld [vmem:[%s12013_s11 + $0x60] sm:$0xff]  ;;  %vm12473_vm9 = vmmov %vm12465_vm7 }
 0x2d1   :  { %v1709_v49 = vsel %vm169_vm2, %v1706_v63, %v12449_v59  ;;  %v1710_v58 = vsel %vm169_vm2, %v7018_v2, %v1706_v63  ;;  %v12452_v2 = vunpack.i.l.bf16 %v9106_v0  ;;  %vm12453_vm2 = vmmov %vm12441_vm0  ;;  %v5691_v48 = vpack.c.bf16 %v2851_v40, %v2849_v52  ;;  %v2859_v6 = vld [vmem:[%s12013_s11 + $0x58] sm:$0xff]  ;;  %v2858_v63 = vld [vmem:[%s12013_s11 + $0x50] sm:$0xff] }
 0x2d2   :  { %v5675_v21 = vpack.c.bf16 %v1757_v45, %v1709_v49  ;;  %v5677_v9 = vpack.c.bf16 %v1758_v51, %v1710_v58  ;;  %vm12463_vm0 = vmmov %vm12434_vm1  ;;  %v5699_v45 = vpack.c.bf16 %v2859_v6, %v2857_v43  ;;  %v5701_v51 = vpack.c.bf16 %v2858_v63, %v2856_v11  ;;  %v2861_v49 = vld [vmem:[%s12013_s11 + $0x68] sm:$0xff]  ;;  %v2863_v58 = vld [vmem:[%s12013_s11 + $0x78] sm:$0xff] }
 0x2d3   :  { %5674 = vmatpush1.bf16.msra.mxu0 %v5673_v31  ;;  %v2876_v24 = vld [vmem:[%s12013_s11 + $0xe0] sm:$0xff]  ;;  %vm12466_vm1 = vmmov %vm12463_vm0 }
 0x2d4   :  { %v1802_v15 = vpop.permute.xlu1 %1801  ;;  %2514 = vmatprep.subr.mxu0 %v2046_v18  ;;  %5676 = vmatprep.subr.bf16.mxu1 %v5675_v21  ;;  %v5703_v18 = vpack.c.bf16 %v2863_v58, %v2861_v49  ;;  %v2880_v40 = vld [vmem:[%s12013_s11 + $0x100] sm:$0xff]  ;;  %vm12468_vm12 = vmmov %vm12463_vm0 }
 0x2d5   :  { %v1805_v23 = vsel %vm12453_vm2, %v1802_v15, %v12452_v2  ;;  %v1806_v60 = vsel %vm12454_vm8, %v7028_v32, %v1802_v15  ;;  %5678 = vmatpush1.bf16.msra.mxu1 %v5677_v9  ;;  %v12456_v32 = vld [vmem:[#allocation26_spill] sm:$0xff]  ;;  %v2888_v11 = vld [vmem:[%s12013_s11 + $0x140] sm:$0xff]  ;;  %vm12470_vm10 = vmmov %vm12463_vm0 }
 0x2d6   :  { %v5679_v3 = vpack.c.bf16 %v1853_v35, %v1805_v23  ;;  %v5681_v57 = vpack.c.bf16 %v1854_v29, %v1806_v60  ;;  %v12457_v28 = vunpack.i.l.bf16 %v12456_v32  ;;  %v2862_v15 = vld [vmem:[%s12013_s11 + $0x70] sm:$0xff]  ;;  %v2867_v35 = vld [vmem:[%s12013_s11 + $0x98] sm:$0xff]  ;;  %v2864_v23 = vld [vmem:[%s12013_s11 + $0x80] sm:$0xff] }
 0x2d7   :  { %2515 = vmatpush1.msra.mxu0 %v2047_v39  ;;  %v5705_v29 = vpack.c.bf16 %v2862_v15, %v2860_v7  ;;  %v5707_v2 = vpack.c.bf16 %v2867_v35, %v2865_v44  ;;  %v2866_v60 = vld [vmem:[%s12013_s11 + $0x90] sm:$0xff]  ;;  %v2869_v39 = vld [vmem:[%s12013_s11 + $0xa8] sm:$0xff]  ;;  %v2868_v32 = vld [vmem:[%s12013_s11 + $0xa0] sm:$0xff] }
 0x2d8   :  { %v1900_v1 = vpop.permute.xlu1 %1899  ;;  %5216 = vmatmul.mubr.msk.f32.vlgmr.msra.gmra.mrb[14].mxu0 %vm2068_vm14, %v9000_v19  ;;  %5680 = vmatprep.subr.bf16.mxu1 %v5679_v3  ;;  %v5709_v30 = vpack.c.bf16 %v2866_v60, %v2864_v23  ;;  %v2892_v49 = vld [vmem:[%s12013_s11 + $0x160] sm:$0xff]  ;;  %v2894_v7 = vld [vmem:[%s12013_s11 + $0x170] sm:$0xff]  ;;  %v2897_v23 = vld [vmem:[%s12013_s11 + $0x188] sm:$0xff] }
 0x2d9   :  { %v1901_v0 = vsel %vm365_vm5, %v7038_v8, %v1900_v1  ;;  %v1916_v55 = vsel %vm365_vm5, %v1900_v1, %v12457_v28  ;;  %5682 = vmatpush1.bf16.msra.mxu1 %v5681_v57  ;;  %5692 = vmatprep.subr.bf16.mxu0 %v5691_v48  ;;  %v2871_v57 = vld [vmem:[%s12013_s11 + $0xb8] sm:$0xff]  ;;  %v2870_v28 = vld [vmem:[%s12013_s11 + $0xb0] sm:$0xff]  ;;  %v5737_v15 = vpack.c.bf16 %v2894_v7, %v2892_v49  ;;  %v2896_v60 = vld [vmem:[%s12013_s11 + $0x180] sm:$0xff] }
 0x2da   :  { %v5683_v12 = vpack.c.bf16 %v1916_v55, %v12458_v25  ;;  %v5685_v34 = vpack.c.bf16 %v1901_v0, %v12459_v33  ;;  %v5711_v0 = vpack.c.bf16 %v2871_v57, %v2869_v39  ;;  %v2873_v55 = vld [vmem:[%s12013_s11 + $0xc8] sm:$0xff]  ;;  %v2875_v25 = vld [vmem:[%s12013_s11 + $0xd8] sm:$0xff]  ;;  %vm12471_vm2 = vmmov %vm12463_vm0 }
 0x2db   :  { %vm12472_vm8 = vmmov %vm12465_vm7 }
 0x2dc   :  { %v1996_v47 = vpop.permute.xlu1 %1995  ;;  %5684 = vmatprep.subr.bf16.mxu1 %v5683_v12  ;;  %v5713_v12 = vpack.c.bf16 %v2870_v28, %v2868_v32  ;;  %v2898_v32 = vld [vmem:[%s12013_s11 + $0x190] sm:$0xff]  ;;  %vm12475_vm15 = vmmov %vm12465_vm7 }
 0x2dd   :  { %v1997_v8 = vsel %vm12460_vm6, %v7048_v20, %v1996_v47  ;;  %v2012_v13 = vsel %vm12463_vm0, %v1996_v47, %v12462_v16  ;;  %5686 = vmatpush1.bf16.msra.mxu1 %v5685_v34  ;;  %v5715_v34 = vpack.c.bf16 %v2875_v25, %v2873_v55  ;;  %v2872_v47 = vld [vmem:[%s12013_s11 + $0xc0] sm:$0xff]  ;;  %v5741_v25 = vpack.c.bf16 %v2898_v32, %v2896_v60  ;;  %vm12474_vm6 = vmmov %vm12463_vm0 }
 0x2de   :  { %v5687_v10 = vpack.c.bf16 %v2012_v13, %v1964_v37  ;;  %v5689_v56 = vpack.c.bf16 %v1997_v8, %v1949_v38  ;;  %v2874_v38 = vld [vmem:[%s12013_s11 + $0xd0] sm:$0xff]  ;;  %v2877_v8 = vld [vmem:[%s12013_s11 + $0xe8] sm:$0xff] }
 0x2df   :  { %v5717_v16 = vpack.c.bf16 %v2874_v38, %v2872_v47  ;;  %v5719_v13 = vpack.c.bf16 %v2879_v27, %v2877_v8  ;;  %v2901_v38 = vld [vmem:[%s12013_s11 + $0x1a8] sm:$0xff]  ;;  %v2903_v8 = vld [vmem:[%s12013_s11 + $0x1b8] sm:$0xff]  ;;  %v2900_v27 = vld [vmem:[%s12013_s11 + $0x1a0] sm:$0xff] }
 0x2e0   :  { %5688 = vmatprep.subr.bf16.mxu1 %v5687_v10  ;;  %v2878_v10 = vld [vmem:[%s12013_s11 + $0xf0] sm:$0xff] }
 0x2e1   :  { %5690 = vmatpush1.bf16.msra.mxu1 %v5689_v56  ;;  %v2881_v56 = vld [vmem:[%s12013_s11 + $0x108] sm:$0xff] }
 0x2e2   :  { %2585 = vmatprep.subr.mxu1 %v2060_v61  ;;  %v2883_v61 = vld [vmem:[%s12013_s11 + $0x118] sm:$0xff] }
 0x2e3   :  { %v5723_v52 = vpack.c.bf16 %v2883_v61, %v2881_v56  ;;  %v2905_v56 = vld [vmem:[%s12013_s11 + $0x1c8] sm:$0xff]  ;;  %v2907_v61 = vld [vmem:[%s12013_s11 + $0x1d8] sm:$0xff] }
 0x2e5   :  { %2586 = vmatpush1.msra.mxu1 %v2045_v53  ;;  %v5721_v53 = vpack.c.bf16 %v2878_v10, %v2876_v24  ;;  %v2902_v24 = vld [vmem:[%s12013_s11 + $0x1b0] sm:$0xff] }
 0x2e6   :  { %5217 = vmatmul.mubr.msk.f32.vlgmr.msra.gmra.mrb[14].mxu1 %vm2068_vm14, %v9000_v19  ;;  %v2850_v19 = vld [vmem:[%s12013_s11 + $0x10] sm:$0xff]  ;;  %5948 = vmatprep.subr.bf16.mxu1 %v5691_v48  ;;  %v5745_v10 = vpack.c.bf16 %v2902_v24, %v2900_v27 }
 0x2e7   :  { %v5693_v4 = vpack.c.bf16 %v2850_v19, %v2848_v42  ;;  %v2882_v42 = vld [vmem:[%s12013_s11 + $0x110] sm:$0xff]  ;;  %v2885_v19 = vld [vmem:[%s12013_s11 + $0x128] sm:$0xff] }
 0x2e8   :  { %v5725_v50 = vpack.c.bf16 %v2882_v42, %v2880_v40  ;;  %v2906_v40 = vld [vmem:[%s12013_s11 + $0x1d0] sm:$0xff] }
 0x2e9   :  { %5694 = vmatpush1.bf16.msra.mxu0 %v5693_v4  ;;  %5950 = vmatpush1.bf16.msra.mxu1 %v5693_v4  ;;  %v5727_v4 = vpack.c.bf16 %v2887_v22, %v2885_v19  ;;  %v2909_v19 = vld [vmem:[%s12013_s11 + $0x1e8] sm:$0xff]  ;;  %v2911_v22 = vld [vmem:[%s12013_s11 + $0x1f8] sm:$0xff] }
 0x2ea   :  { %5696 = vmatprep.subr.bf16.mxu0 %v5695_v46  ;;  %5952 = vmatprep.subr.bf16.mxu1 %v5695_v46  ;;  %v2884_v46 = vld [vmem:[%s12013_s11 + $0x120] sm:$0xff] }
 0x2eb   :  { %v5729_v43 = vpack.c.bf16 %v2886_v36, %v2884_v46 }
 0x2ed   :  { %5698 = vmatpush1.bf16.msra.mxu0 %v5697_v17  ;;  %5954 = vmatpush1.bf16.msra.mxu1 %v5697_v17  ;;  %v9594_v41 = vpop.permute.xlu1 %2065  ;;  %v2891_v17 = vld [vmem:[%s12013_s11 + $0x158] sm:$0xff] }
 0x2ee   :  { %5700 = vmatprep.subr.bf16.mxu0 %v5699_v45  ;;  %5956 = vmatprep.subr.bf16.mxu1 %v5699_v45  ;;  %v5731_v6 = vpack.c.bf16 %v2891_v17, %v2889_v62  ;;  %v2890_v45 = vld [vmem:[%s12013_s11 + $0x150] sm:$0xff]  ;;  %v2913_v62 = vld [vmem:[%s12013_s11 + $0x208] sm:$0xff]  ;;  %v2915_v17 = vld [vmem:[%s12013_s11 + $0x218] sm:$0xff] }
 0x2ef   :  { %v5733_v63 = vpack.c.bf16 %v2890_v45, %v2888_v11 }
 0x2f1   :  { %5702 = vmatpush1.bf16.msra.mxu0 %v5701_v51  ;;  %5958 = vmatpush1.bf16.msra.mxu1 %v5701_v51  ;;  %v2893_v51 = vld [vmem:[%s12013_s11 + $0x168] sm:$0xff] }
 0x2f2   :  { %5704 = vmatprep.subr.bf16.mxu0 %v5703_v18  ;;  %5960 = vmatprep.subr.bf16.mxu1 %v5703_v18 }
 0x2f5   :  { %5706 = vmatpush1.bf16.msra.mxu0 %v5705_v29  ;;  %5962 = vmatpush1.bf16.msra.mxu1 %v5705_v29 }
 0x2f6   :  { %5708 = vmatprep.subr.bf16.mxu0 %v5707_v2  ;;  %5964 = vmatprep.subr.bf16.mxu1 %v5707_v2 }
 0x2f9   :  { %5710 = vmatpush1.bf16.msra.mxu0 %v5709_v30  ;;  %5966 = vmatpush1.bf16.msra.mxu1 %v5709_v30 }
 0x2fa   :  { %5712 = vmatprep.subr.bf16.mxu0 %v5711_v0  ;;  %5968 = vmatprep.subr.bf16.mxu1 %v5711_v0 }
 0x2fd   :  { %5714 = vmatpush1.bf16.msra.mxu0 %v5713_v12  ;;  %5970 = vmatpush1.bf16.msra.mxu1 %v5713_v12 }
 0x2fe   :  { %5716 = vmatprep.subr.bf16.mxu0 %v5715_v34  ;;  %5972 = vmatprep.subr.bf16.mxu1 %v5715_v34 }
 0x301   :  { %5718 = vmatpush1.bf16.msra.mxu0 %v5717_v16  ;;  %5974 = vmatpush1.bf16.msra.mxu1 %v5717_v16 }
 0x302   :  { %5720 = vmatprep.subr.bf16.mxu0 %v5719_v13  ;;  %5976 = vmatprep.subr.bf16.mxu1 %v5719_v13  ;;  %v5743_v13 = vpack.c.bf16 %v2903_v8, %v2901_v38 }
 0x305   :  { %5722 = vmatpush1.bf16.msra.mxu0 %v5721_v53  ;;  %5978 = vmatpush1.bf16.msra.mxu1 %v5721_v53  ;;  %v2904_v53 = vld [vmem:[%s12013_s11 + $0x1c0] sm:$0xff] }
 0x306   :  { %5724 = vmatprep.subr.bf16.mxu0 %v5723_v52  ;;  %5980 = vmatprep.subr.bf16.mxu1 %v5723_v52  ;;  %v5747_v52 = vpack.c.bf16 %v2907_v61, %v2905_v56  ;;  %v5749_v42 = vpack.c.bf16 %v2906_v40, %v2904_v53 }
 0x309   :  { %5726 = vmatpush1.bf16.msra.mxu0 %v5725_v50  ;;  %5982 = vmatpush1.bf16.msra.mxu1 %v5725_v50  ;;  %v2908_v50 = vld [vmem:[%s12013_s11 + $0x1e0] sm:$0xff] }
 0x30a   :  { %5728 = vmatprep.subr.bf16.mxu0 %v5727_v4  ;;  %5984 = vmatprep.subr.bf16.mxu1 %v5727_v4  ;;  %v5751_v4 = vpack.c.bf16 %v2911_v22, %v2909_v19 }
 0x30d   :  { %5730 = vmatpush1.bf16.msra.mxu0 %v5729_v43  ;;  %5986 = vmatpush1.bf16.msra.mxu1 %v5729_v43  ;;  %v5755_v43 = vpack.c.bf16 %v2915_v17, %v2913_v62 }
 0x30e   :  { %5732 = vmatprep.subr.bf16.mxu0 %v5731_v6  ;;  %5988 = vmatprep.subr.bf16.mxu1 %v5731_v6 }
 0x311   :  { %5734 = vmatpush1.bf16.msra.mxu0 %v5733_v63  ;;  %5990 = vmatpush1.bf16.msra.mxu1 %v5733_v63 }
 0x342   :  { %v2209_v20 = vpop.f32.mrb[8].mxu1 }
 0x343   :  { %v9568_v5 = vpop.f32.mrb[9].mxu1  ;;  %v9606_v14 = vadd.f32 %v2209_v20, %v9594_v41 }
 0x344   :  { %v9835_v6 = vadd.f32 %v9568_v5, %v9594_v41 }
 0x345   :  { %v2642_v9 = vmax.f32 %v9606_v14, 0.0 }
 0x346   :  { %v2643_v11 = vmax.f32 %v9835_v6, 0.0  ;;  %v2937_v6 = vld [vmem:[%s12013_s11 + $0x2c8] sm:$0xff] }
 0x36e   :  { %v9611_v31 = vpop.f32.mrb[8].mxu0 }
 0x36f   :  { %v2140_v59 = vpop.f32.mrb[9].mxu0  ;;  %v9746_v18 = vadd.f32 %v9611_v31, %v9594_v41  ;;  %v2899_v31 = vld [vmem:[%s12013_s11 + $0x198] sm:$0xff] }
 0x370   :  { %v9623_v21 = vadd.f32 %v2140_v59, %v9594_v41  ;;  %v2895_v59 = vld [vmem:[%s12013_s11 + $0x178] sm:$0xff]  ;;  %v5739_v0 = vpack.c.bf16 %v2899_v31, %v2897_v23 }
 0x371   :  { %v5735_v58 = vpack.c.bf16 %v2895_v59, %v2893_v51  ;;  %v2640_v55 = vmax.f32 %v9746_v18, 0.0  ;;  %v2918_v18 = vld [vmem:[%s12013_s11 + $0x230] sm:$0xff] }
 0x372   :  { %v2641_v3 = vmax.f32 %v9623_v21, 0.0 }
 0x373   :  { %5736 = vmatprep.subr.bf16.mxu0 %v5735_v58  ;;  %5992 = vmatprep.subr.bf16.mxu1 %v5735_v58 }
 0x374   :  { %v9652_v1 = vpack.i.bf16 %v2642_v9, %v2641_v3  ;;  %5738 = vmatpush1.bf16.msra.mxu0 %v5737_v15  ;;  %5994 = vmatpush1.bf16.msra.mxu1 %v5737_v15 }
 0x375   :  { %5740 = vmatprep.subr.bf16.mxu0 %v5739_v0  ;;  %5996 = vmatprep.subr.bf16.mxu1 %v5739_v0 }
 0x376   :  { %7051 = vrot.lane.b32.xlu1 %v9652_v1, %s7368_s19 }
 0x378   :  { %v9668_v33 = vpop.f32.mrb[10].mxu1  ;;  %5742 = vmatpush1.bf16.msra.mxu0 %v5741_v25  ;;  %5998 = vmatpush1.bf16.msra.mxu1 %v5741_v25 }
 0x379   :  { %v9676_v37 = vpop.f32.mrb[11].mxu1  ;;  %5744 = vmatprep.subr.bf16.mxu0 %v5743_v13  ;;  %6000 = vmatprep.subr.bf16.mxu1 %v5743_v13  ;;  %v9860_v15 = vadd.f32 %v9668_v33, %v9594_v41 }
 0x37a   :  { %7056 = vrot.lane.b32.xlu1 %v9652_v1, %s7370_s23 }
 0x37c   :  { %5746 = vmatpush1.bf16.msra.mxu0 %v5745_v10  ;;  %6002 = vmatpush1.bf16.msra.mxu1 %v5745_v10 }
 0x37d   :  { %5748 = vmatprep.subr.bf16.mxu0 %v5747_v52  ;;  %6004 = vmatprep.subr.bf16.mxu1 %v5747_v52 }
 0x380   :  { %v9698_v20 = vpop.f32.mrb[10].mxu0  ;;  %5750 = vmatpush1.bf16.msra.mxu0 %v5749_v42  ;;  %6006 = vmatpush1.bf16.msra.mxu1 %v5749_v42 }
 0x381   :  { %v9706_v48 = vpop.f32.mrb[11].mxu0  ;;  %5752 = vmatprep.subr.bf16.mxu0 %v5751_v4  ;;  %6008 = vmatprep.subr.bf16.mxu1 %v5751_v4  ;;  %v9825_v36 = vadd.f32 %v9698_v20, %v9594_v41 }
 0x382   :  { %v9856_v7 = vadd.f32 %v9706_v48, %v9594_v41 }
 0x383   :  { %v2644_v20 = vmax.f32 %v9825_v36, 0.0 }
 0x385   :  { %v7095_v5 = vpack.i.bf16 %v2644_v20, %v2643_v11 }
 0x392   :  { %v2422_v44 = vpop.f32.mrb[12].mxu0 }
 0x393   :  { %v9749_v35 = vadd.f32 %v2422_v44, %v9594_v41  ;;  %v2424_v29 = vpop.f32.mrb[13].mxu0  ;;  %v2493_v2 = vpop.f32.mrb[12].mxu1 }
 0x394   :  { %v9761_v39 = vadd.f32 %v2424_v29, %v9594_v41  ;;  %v9764_v57 = vadd.f32 %v2493_v2, %v9594_v41  ;;  %v2495_v30 = vpop.f32.mrb[13].mxu1  ;;  %v12129_v29 = vmax.f32 %v9856_v7, 0.0  ;;  %v12135_v2 = vmax.f32 %v9860_v15, 0.0 }
 0x395   :  { %v2648_v28 = vmax.f32 %v9749_v35, 0.0  ;;  %v9842_v45 = vadd.f32 %v2495_v30, %v9594_v41  ;;  %v2921_v35 = vld [vmem:[%s12013_s11 + $0x248] sm:$0xff] }
 0x396   :  { %v2649_v12 = vmax.f32 %v9761_v39, 0.0  ;;  %v2650_v34 = vmax.f32 %v9764_v57, 0.0  ;;  %v7125_v48 = vpack.i.bf16 %v12135_v2, %v12129_v29  ;;  %v2912_v39 = vld [vmem:[%s12013_s11 + $0x200] sm:$0xff] }
 0x397   :  { %v7060_v47 = vpack.i.bf16 %v2640_v55, %v2648_v28  ;;  %v2651_v49 = vmax.f32 %v9842_v45, 0.0  ;;  %v2916_v2 = vld [vmem:[%s12013_s11 + $0x220] sm:$0xff] }
 0x398   :  { %v7075_v16 = vpack.i.bf16 %v2650_v34, %v2649_v12 }
 0x399   :  { %7061 = vrot.lane.b32.xlu0 %v7060_v47, %s7368_s19 }
 0x39a   :  { %7076 = vrot.lane.b32.xlu1 %v7075_v16, %s7370_s23 }
 0x39d   :  { %7066 = vrot.lane.b32.xlu0 %v7060_v47, %s7370_s23 }
 0x39e   :  { %7081 = vrot.lane.b32.xlu1 %v9652_v1, %s7371_s0  ;;  %v2910_v1 = vld [vmem:[%s12013_s11 + $0x1f0] sm:$0xff] }
 0x39f   :  { %v5753_v46 = vpack.c.bf16 %v2910_v1, %v2908_v50 }
 0x3a1   :  { %7071 = vrot.lane.b32.xlu0 %v7075_v16, %s7368_s19  ;;  %5754 = vmatpush1.bf16.msra.mxu0 %v5753_v46 }
 0x3a2   :  { %6010 = vmatpush1.bf16.msra.mxu1 %v5753_v46  ;;  %5756 = vmatprep.subr.bf16.mxu0 %v5755_v43 }
 0x3a3   :  { %6012 = vmatprep.subr.bf16.mxu1 %v5755_v43 }
 0x3a5   :  { %7086 = vrot.lane.b32.xlu0 %v7075_v16, %s7371_s0 }
 0x3a9   :  { %7091 = vrot.lane.b32.xlu0 %v7060_v47, %s7371_s0  ;;  %v9895_v47 = vadd.f32 %v9676_v37, %v9594_v41 }
 0x3ab   :  { %v2564_v63 = vpop.f32.mrb[14].mxu0  ;;  %v12134_v8 = vmax.f32 %v9895_v47, 0.0 }
 0x3ac   :  { %v9849_v51 = vadd.f32 %v2564_v63, %v9594_v41  ;;  %v2566_v59 = vpop.f32.mrb[15].mxu0 }
 0x3ad   :  { %7096 = vrot.lane.b32.xlu0 %v7095_v5, %s7368_s19  ;;  %v9873_v33 = vadd.f32 %v2566_v59, %v9594_v41 }
 0x3ae   :  { %v2652_v58 = vmax.f32 %v9849_v51, 0.0 }
 0x3af   :  { %v12128_v30 = vmax.f32 %v9873_v33, 0.0 }
 0x3b0   :  { %v7100_v44 = vpack.i.bf16 %v2652_v58, %v2651_v49 }
 0x3b2   :  { %7101 = vrot.lane.b32.xlu1 %v7100_v44, %s7368_s19  ;;  %7106 = vrot.lane.b32.xlu0 %v7100_v44, %s7370_s23 }
 0x3b6   :  { %7111 = vrot.lane.b32.xlu1 %v7100_v44, %s7371_s0  ;;  %7121 = vrot.lane.b32.xlu0 %v7095_v5, %s7371_s0 }
 0x3b9   :  { %v2635_v23 = vpop.f32.mrb[14].mxu1 }
 0x3ba   :  { %v9880_v31 = vadd.f32 %v2635_v23, %v9594_v41  ;;  %v2637_v60 = vpop.f32.mrb[15].mxu1  ;;  %7116 = vrot.lane.b32.xlu1 %v7095_v5, %s7370_s23  ;;  %7126 = vrot.lane.b32.xlu0 %v7125_v48, %s7368_s19 }
 0x3bb   :  { %v9887_v32 = vadd.f32 %v2637_v60, %v9594_v41 }
 0x3bc   :  { %v12130_v0 = vmax.f32 %v9880_v31, 0.0 }
 0x3bd   :  { %v12133_v38 = vmax.f32 %v9887_v32, 0.0 }
 0x3be   :  { %v7130_v25 = vpack.i.bf16 %v12130_v0, %v12128_v30 }
 0x3bf   :  { %v7160_v27 = vpack.i.bf16 %v12134_v8, %v12133_v38 }
 0x3c0   :  { %7131 = vrot.lane.b32.xlu1 %v7130_v25, %s7368_s19  ;;  %7136 = vrot.lane.b32.xlu0 %v7130_v25, %s7370_s23 }
 0x3c4   :  { %7141 = vrot.lane.b32.xlu1 %v7130_v25, %s7371_s0  ;;  %7151 = vrot.lane.b32.xlu0 %v7125_v48, %s7371_s0 }
 0x3c8   :  { %7146 = vrot.lane.b32.xlu1 %v7125_v48, %s7370_s23  ;;  %7161 = vrot.lane.b32.xlu0 %v7160_v27, %s7370_s23  ;;  %s7376_s23 = smov 17  }
 0x3cc   :  { %7156 = vrot.lane.b32.xlu1 %v7160_v27, %s7368_s19 }
 0x3d0   :  { %7166 = vrot.lane.b32.xlu1 %v7160_v27, %s7371_s0  ;;  %s7377_s0 = smov 15  }
 0x3e8   :  { %v9911_v41 = vpop.permute.xlu1 %7051 }
 0x3e9   :  { %v7054_v24 = vunpack.i.h.bf16 %v9911_v41  ;;  %v7053_v10 = vunpack.i.l.bf16 %v9911_v41 }
 0x3eb   :  { %v2701_v40 = vsel %vm365_vm5, %v7053_v10, %v7054_v24 }
 0x3ec   :  { %v9913_v37 = vpop.permute.xlu1 %7056  ;;  %v2705_v62 = vmax.f32 %v2641_v3, %v2701_v40 }
 0x3ed   :  { %v7059_v56 = vunpack.i.h.bf16 %v9913_v37  ;;  %v7058_v61 = vunpack.i.l.bf16 %v9913_v37 }
 0x3ef   :  { %v2765_v22 = vsel %vm12466_vm1, %v7058_v61, %v7059_v56  ;;  %vm12476_vm1 = vmmov %vm12465_vm7 }
 0x40b   :  { %v9915_v16 = vpop.permute.xlu0 %7061 }
 0x40c   :  { %v9917_v13 = vpop.permute.xlu1 %7076  ;;  %v12138_v44 = vunpack.i.h.bf16 %v9915_v16  ;;  %v12139_v3 = vunpack.i.l.bf16 %v9915_v16 }
 0x40d   :  { %v7079_v43 = vunpack.i.h.bf16 %v9917_v13  ;;  %v7078_v63 = vunpack.i.l.bf16 %v9917_v13 }
 0x40f   :  { %v9923_v53 = vpop.permute.xlu0 %7066  ;;  %v2757_v60 = vsel %vm12468_vm12, %v7078_v63, %v7079_v43  ;;  %vm12478_vm12 = vmmov %vm12463_vm0 }
 0x410   :  { %v9925_v52 = vpop.permute.xlu1 %7081  ;;  %v12136_v25 = vunpack.i.h.bf16 %v9923_v53  ;;  %v12137_v27 = vunpack.i.l.bf16 %v9923_v53 }
 0x411   :  { %v7084_v42 = vunpack.i.h.bf16 %v9925_v52  ;;  %v7083_v19 = vunpack.i.l.bf16 %v9925_v52  ;;  %v2933_v52 = vld [vmem:[%s12013_s11 + $0x2a8] sm:$0xff] }
 0x413   :  { %v2813_v50 = vsel %vm12467_vm13, %v7083_v19, %v7084_v42  ;;  %v9941_v4 = vpop.permute.xlu0 %7071  ;;  %vm12477_vm13 = vmmov %vm12476_vm1 }
 0x414   :  { %v7074_v1 = vunpack.i.h.bf16 %v9941_v4  ;;  %v7073_v46 = vunpack.i.l.bf16 %v9941_v4  ;;  %v2817_v17 = vmax.f32 %v2765_v22, %v2813_v50 }
 0x416   :  { %v2833_v5 = vmax.f32 %v2705_v62, %v2817_v17  ;;  %v2693_v48 = vsel %vm365_vm5, %v7073_v46, %v7074_v1  ;;  %v2702_v17 = vsel %vm365_vm5, %v12138_v44, %v7053_v10  ;;  %v2766_v10 = vsel %vm12470_vm10, %v12136_v25, %v7058_v61  ;;  %v2919_v61 = vld [vmem:[%s12013_s11 + $0x238] sm:$0xff]  ;;  %vm12480_vm10 = vmmov %vm12463_vm0 }
 0x417   :  { %v9949_v59 = vpop.permute.xlu0 %7086  ;;  %v2713_v50 = vmax.f32 %v2649_v12, %v2693_v48  ;;  %v2914_v12 = vld [vmem:[%s12013_s11 + $0x210] sm:$0xff] }
 0x418   :  { %v7089_v23 = vunpack.i.h.bf16 %v9949_v59  ;;  %v7088_v21 = vunpack.i.l.bf16 %v9949_v59  ;;  %3168 = vmatprep.mubr.f32.mxu0 %v2833_v5  ;;  %v2694_v5 = vsel %vm365_vm5, %v12139_v3, %v7073_v46  ;;  %v2758_v46 = vsel %vm12471_vm2, %v12137_v27, %v7078_v63  ;;  %vm12481_vm2 = vmmov %vm12476_vm1 }
 0x419   :  { %v2704_v63 = vmax.f32 %v2640_v55, %v2702_v17  ;;  %v2920_v55 = vld [vmem:[%s12013_s11 + $0x240] sm:$0xff]  ;;  %v2925_v17 = vld [vmem:[%s12013_s11 + $0x268] sm:$0xff] }
 0x41a   :  { %v2805_v40 = vsel %vm12469_vm11, %v7088_v21, %v7089_v23  ;;  %vm12479_vm11 = vmmov %vm12463_vm0 }
 0x41b   :  { %v9969_v22 = vpop.permute.xlu0 %7091  ;;  %v2825_v62 = vmax.f32 %v2757_v60, %v2805_v40  ;;  %v2917_v40 = vld [vmem:[%s12013_s11 + $0x228] sm:$0xff] }
 0x41c   :  { %v12131_v30 = vunpack.i.h.bf16 %v9969_v22  ;;  %v12132_v29 = vunpack.i.l.bf16 %v9969_v22  ;;  %v5759_v8 = vpack.c.bf16 %v2919_v61, %v2917_v40  ;;  %v2928_v61 = vld [vmem:[%s12013_s11 + $0x280] sm:$0xff] }
 0x41d   :  { %v2841_v0 = vmax.f32 %v2713_v50, %v2825_v62  ;;  %v2712_v50 = vmax.f32 %v2648_v28, %v2694_v5  ;;  %v2923_v28 = vld [vmem:[%s12013_s11 + $0x258] sm:$0xff] }
 0x41e   :  { %v2814_v48 = vsel %vm12472_vm8, %v12131_v30, %v7083_v19  ;;  %v2806_v60 = vsel %vm12473_vm9, %v12132_v29, %v7088_v21  ;;  %v5757_v21 = vpack.c.bf16 %v2914_v12, %v2912_v39  ;;  %v2927_v5 = vld [vmem:[%s12013_s11 + $0x278] sm:$0xff]  ;;  %v5763_v40 = vpack.c.bf16 %v2923_v28, %v2921_v35  ;;  %vm12482_vm8 = vmmov %vm12476_vm1 }
 0x41f   :  { %v2816_v19 = vmax.f32 %v2766_v10, %v2814_v48  ;;  %v2824_v62 = vmax.f32 %v2758_v46, %v2806_v60  ;;  %v10015_v30 = vpop.permute.xlu0 %7096  ;;  %3452 = vmatprep.mubr.f32.mxu1 %v2841_v0  ;;  %v2922_v0 = vld [vmem:[%s12013_s11 + $0x250] sm:$0xff]  ;;  %v2929_v46 = vld [vmem:[%s12013_s11 + $0x288] sm:$0xff]  ;;  %vm12483_vm9 = vmmov %vm12463_vm0 }
 0x420   :  { %v2926_v10 = vld [vmem:[%s12013_s11 + $0x270] sm:$0xff]  ;;  %v7099_v3 = vunpack.i.h.bf16 %v10015_v30 }
 0x421   :  { %v2832_v29 = vmax.f32 %v2704_v63, %v2816_v19  ;;  %v2840_v38 = vmax.f32 %v2712_v50, %v2824_v62  ;;  %v2930_v63 = vld [vmem:[%s12013_s11 + $0x290] sm:$0xff]  ;;  %v7098_v50 = vunpack.i.l.bf16 %v10015_v30 }
 0x422   :  { %v5773_v44 = vpack.c.bf16 %v2930_v63, %v2928_v61 }
 0x423   :  { %3169 = vmatmul.mubr.f32.vlgmr.msra.gmra.mrb[16].mxu0 %v2832_v29  ;;  %3453 = vmatmul.mubr.f32.vlgmr.msra.gmra.mrb[16].mxu1 %v2840_v38  ;;  %v5761_v29 = vpack.c.bf16 %v2918_v18, %v2916_v2  ;;  %v2924_v38 = vld [vmem:[%s12013_s11 + $0x260] sm:$0xff]  ;;  %v2931_v2 = vld [vmem:[%s12013_s11 + $0x298] sm:$0xff] }
 0x424   :  { %5758 = vmatpush1.bf16.msra.mxu0 %v5757_v21  ;;  %6014 = vmatpush1.bf16.msra.mxu1 %v5757_v21  ;;  %v10041_v39 = vpop.permute.xlu1 %7101  ;;  %v10043_v12 = vpop.permute.xlu0 %7106  ;;  %v5767_v21 = vpack.c.bf16 %v2927_v5, %v2925_v17  ;;  %v5769_v18 = vpack.c.bf16 %v2926_v10, %v2924_v38  ;;  %v5771_v27 = vpack.c.bf16 %v2931_v2, %v2929_v46 }
 0x425   :  { %v7104_v48 = vunpack.i.h.bf16 %v10041_v39  ;;  %v7103_v60 = vunpack.i.l.bf16 %v10041_v39  ;;  %5760 = vmatprep.subr.bf16.mxu0 %v5759_v8  ;;  %6016 = vmatprep.subr.bf16.mxu1 %v5759_v8  ;;  %v7109_v19 = vunpack.i.h.bf16 %v10043_v12  ;;  %v7108_v62 = vunpack.i.l.bf16 %v10043_v12  ;;  %v2938_v39 = vld [vmem:[%s12013_s11 + $0x2d0] sm:$0xff]  ;;  %v2941_v12 = vld [vmem:[%s12013_s11 + $0x2e8] sm:$0xff] }
 0x426   :  { %v5765_v8 = vpack.c.bf16 %v2922_v0, %v2920_v55  ;;  %v2699_v46 = vsel %vm365_vm5, %v7098_v50, %v7099_v3 }
 0x427   :  { %v2692_v35 = vsel %vm365_vm5, %v7074_v1, %v7103_v60  ;;  %v2691_v55 = vsel %vm365_vm5, %v7103_v60, %v7104_v48  ;;  %v2700_v1 = vsel %vm365_vm5, %v7054_v24, %v7098_v50  ;;  %v2755_v30 = vsel %vm12474_vm6, %v7108_v62, %v7109_v19  ;;  %vm12486_vm6 = vmmov %vm12463_vm0 }
 0x428   :  { %5762 = vmatpush1.bf16.msra.mxu0 %v5761_v29  ;;  %6018 = vmatpush1.bf16.msra.mxu1 %v5761_v29  ;;  %v10072_v28 = vpop.permute.xlu1 %7111  ;;  %v10074_v25 = vpop.permute.xlu0 %7121  ;;  %v2714_v29 = vmax.f32 %v2650_v34, %v2692_v35  ;;  %v2756_v41 = vsel %vm12463_vm0, %v7079_v43, %v7108_v62  ;;  %v2715_v13 = vmax.f32 %v2651_v49, %v2691_v55  ;;  %v2934_v62 = vld [vmem:[%s12013_s11 + $0x2b0] sm:$0xff] }
 0x429   :  { %v7114_v4 = vunpack.i.h.bf16 %v10072_v28  ;;  %v7113_v0 = vunpack.i.l.bf16 %v10072_v28  ;;  %5764 = vmatprep.subr.bf16.mxu0 %v5763_v40  ;;  %6020 = vmatprep.subr.bf16.mxu1 %v5763_v40  ;;  %v7124_v17 = vunpack.i.h.bf16 %v10074_v25  ;;  %v7123_v5 = vunpack.i.l.bf16 %v10074_v25  ;;  %v2947_v28 = vld [vmem:[%s12013_s11 + $0x318] sm:$0xff] }
 0x42a   :  { %v2706_v40 = vmax.f32 %v2642_v9, %v2700_v1  ;;  %v2707_v37 = vmax.f32 %v2643_v11, %v2699_v46  ;;  %v2939_v11 = vld [vmem:[%s12013_s11 + $0x2d8] sm:$0xff] }
 0x42b   :  { %v2803_v24 = vsel %vm12475_vm15, %v7113_v0, %v7114_v4  ;;  %v2804_v38 = vsel %vm12465_vm7, %v7089_v23, %v7113_v0  ;;  %v2811_v45 = vsel %vm12476_vm1, %v7123_v5, %v7124_v17  ;;  %v2812_v61 = vsel %vm12477_vm13, %v7084_v42, %v7123_v5  ;;  %v2935_v42 = vld [vmem:[%s12013_s11 + $0x2b8] sm:$0xff]  ;;  %vm12488_vm15 = vmmov %vm12463_vm0 }
 0x42c   :  { %v2826_v10 = vmax.f32 %v2756_v41, %v2804_v38  ;;  %5766 = vmatpush1.bf16.msra.mxu0 %v5765_v8  ;;  %6022 = vmatpush1.bf16.msra.mxu1 %v5765_v8  ;;  %v10107_v57 = vpop.permute.xlu1 %7116  ;;  %v10109_v34 = vpop.permute.xlu0 %7126  ;;  %v2827_v43 = vmax.f32 %v2755_v30, %v2803_v24  ;;  %v5775_v35 = vpack.c.bf16 %v2935_v42, %v2933_v52  ;;  %vm12490_vm7 = vmmov %vm12463_vm0 }
 0x42d   :  { %v7119_v60 = vunpack.i.h.bf16 %v10107_v57  ;;  %v7118_v59 = vunpack.i.l.bf16 %v10107_v57  ;;  %v7128_v23 = vunpack.i.l.bf16 %v10109_v34  ;;  %5768 = vmatprep.subr.bf16.mxu0 %v5767_v21  ;;  %6024 = vmatprep.subr.bf16.mxu1 %v5767_v21  ;;  %vm12495_vm13 = vmmov %vm12476_vm1 }
 0x42e   :  { %v2843_v49 = vmax.f32 %v2715_v13, %v2827_v43  ;;  %v10124_v2 = vmax.f32 %v2714_v29, %v2826_v10  ;;  %v5779_v29 = vpack.c.bf16 %v2939_v11, %v2937_v6  ;;  %v2940_v13 = vld [vmem:[%s12013_s11 + $0x2e0] sm:$0xff]  ;;  %v2942_v43 = vld [vmem:[%s12013_s11 + $0x2f0] sm:$0xff]  ;;  %v2953_v6 = vld [vmem:[%s12013_s11 + $0x348] sm:$0xff] }
 0x42f   :  { %v2763_v63 = vsel %vm12478_vm12, %v7118_v59, %v7119_v60  ;;  %v2764_v14 = vsel %vm12479_vm11, %v7059_v56, %v7118_v59  ;;  %v10142_v9 = vsel %vm365_vm5, %v7099_v3, %v7128_v23  ;;  %v2932_v3 = vld [vmem:[%s12013_s11 + $0x2a0] sm:$0xff]  ;;  %v2955_v11 = vld [vmem:[%s12013_s11 + $0x358] sm:$0xff]  ;;  %vm12496_vm12 = vmmov %vm12476_vm1 }
 0x430   :  { %v2818_v50 = vmax.f32 %v2764_v14, %v2812_v61  ;;  %5770 = vmatpush1.bf16.msra.mxu0 %v5769_v18  ;;  %6026 = vmatpush1.bf16.msra.mxu1 %v5769_v18  ;;  %v2819_v56 = vmax.f32 %v2763_v63, %v2811_v45  ;;  %v5777_v30 = vpack.c.bf16 %v2934_v62, %v2932_v3  ;;  %v2945_v45 = vld [vmem:[%s12013_s11 + $0x308] sm:$0xff]  ;;  %v2951_v14 = vld [vmem:[%s12013_s11 + $0x338] sm:$0xff]  ;;  %vm12498_vm11 = vmmov %vm12476_vm1 }
 0x431   :  { %3523 = vmatprep.mubr.f32.mxu1 %v2843_v49  ;;  %5772 = vmatprep.subr.bf16.mxu0 %v5771_v27  ;;  %v2949_v63 = vld [vmem:[%s12013_s11 + $0x328] sm:$0xff]  ;;  %v5787_v42 = vpack.c.bf16 %v2947_v28, %v2945_v45  ;;  %v2708_v3 = vmax.f32 %v2644_v20, %v10142_v9 }
 0x432   :  { %v10158_v8 = vpop.permute.xlu1 %7131  ;;  %v10160_v21 = vpop.permute.xlu0 %7136  ;;  %6028 = vmatprep.subr.bf16.mxu1 %v5771_v27  ;;  %v2835_v18 = vmax.f32 %v2707_v37, %v2819_v56  ;;  %v10168_v55 = vmax.f32 %v2706_v40, %v2818_v50  ;;  %v2948_v50 = vld [vmem:[%s12013_s11 + $0x320] sm:$0xff]  ;;  %v2950_v37 = vld [vmem:[%s12013_s11 + $0x330] sm:$0xff] }
 0x433   :  { %v7133_v0 = vunpack.i.l.bf16 %v10158_v8  ;;  %v7138_v1 = vunpack.i.l.bf16 %v10160_v21 }
 0x434   :  { %5774 = vmatpush1.bf16.msra.mxu0 %v5773_v44  ;;  %6030 = vmatpush1.bf16.msra.mxu1 %v5773_v44  ;;  %v2936_v44 = vld [vmem:[%s12013_s11 + $0x2c0] sm:$0xff] }
 0x435   :  { %v2690_v27 = vsel %vm365_vm5, %v7104_v48, %v7133_v0  ;;  %v2754_v5 = vsel %vm12480_vm10, %v7109_v19, %v7138_v1  ;;  %3239 = vmatprep.mubr.f32.mxu0 %v2835_v18  ;;  %5776 = vmatprep.subr.bf16.mxu0 %v5775_v35  ;;  %v2943_v19 = vld [vmem:[%s12013_s11 + $0x2f8] sm:$0xff]  ;;  %v5781_v10 = vpack.c.bf16 %v2938_v39, %v2936_v44  ;;  %v7134_v44 = vunpack.i.h.bf16 %v10158_v8  ;;  %vm12500_vm10 = vmmov %vm12463_vm0 }
 0x436   :  { %v10190_v41 = vpop.permute.xlu1 %7141  ;;  %v10192_v48 = vpop.permute.xlu0 %7151  ;;  %6032 = vmatprep.subr.bf16.mxu1 %v5775_v35  ;;  %v5783_v40 = vpack.c.bf16 %v2943_v19, %v2941_v12  ;;  %v2716_v25 = vmax.f32 %v2652_v58, %v2690_v27  ;;  %v5785_v58 = vpack.c.bf16 %v2942_v43, %v2940_v13  ;;  %v5791_v35 = vpack.c.bf16 %v2951_v14, %v2949_v63  ;;  %v2983_v8 = vld [vmem:[%s12013_s11 + $0x438] sm:$0xff] }
 0x437   :  { %v7143_v24 = vunpack.i.l.bf16 %v10190_v41  ;;  %v7153_v38 = vunpack.i.l.bf16 %v10192_v48  ;;  %v7139_v39 = vunpack.i.h.bf16 %v10160_v21  ;;  %v5795_v12 = vpack.c.bf16 %v2955_v11, %v2953_v6 }
 0x438   :  { %5778 = vmatpush1.bf16.msra.mxu0 %v5777_v30  ;;  %6034 = vmatpush1.bf16.msra.mxu1 %v5777_v30  ;;  %v12484_v13 = vunpack.i.l.bf16 %v9915_v16  ;;  %v7154_v45 = vunpack.i.h.bf16 %v10192_v48  ;;  %v12493_v6 = vmax.f32 %v9887_v32, 0.0  ;;  %v12505_v21 = vmax.f32 %v9873_v33, 0.0 }
 0x439   :  { %v2802_v46 = vsel %vm12481_vm2, %v7114_v4, %v7143_v24  ;;  %v2810_v59 = vsel %vm12482_vm8, %v7124_v17, %v7153_v38  ;;  %5780 = vmatprep.subr.bf16.mxu0 %v5779_v29  ;;  %v2944_v4 = vld [vmem:[%s12013_s11 + $0x300] sm:$0xff]  ;;  %6036 = vmatprep.subr.bf16.mxu1 %v5779_v29  ;;  %v2946_v17 = vld [vmem:[%s12013_s11 + $0x310] sm:$0xff]  ;;  %v5793_v29 = vpack.c.bf16 %v2950_v37, %v2948_v50  ;;  %v12491_v50 = vmax.f32 %v9860_v15, 0.0  ;;  %vm12501_vm2 = vmmov %vm12476_vm1 }
 0x43a   :  { %v2828_v49 = vmax.f32 %v2754_v5, %v2802_v46  ;;  %v10231_v61 = vpop.permute.xlu1 %7146  ;;  %v7162_v51 = vpop.permute.xlu0 %7161  ;;  %v5789_v18 = vpack.c.bf16 %v2946_v17, %v2944_v4  ;;  %v12489_v17 = vunpack.i.h.bf16 %v9923_v53  ;;  %vm12502_vm8 = vmmov %vm12476_vm1 }
 0x43b   :  { %v7148_v52 = vunpack.i.l.bf16 %v10231_v61  ;;  %v7149_v36 = vunpack.i.h.bf16 %v10231_v61  ;;  %v7164_v9 = vunpack.i.h.bf16 %v7162_v51  ;;  %v7163_v30 = vunpack.i.l.bf16 %v7162_v51 }
 0x43c   :  { %5782 = vmatpush1.bf16.msra.mxu0 %v5781_v10  ;;  %6038 = vmatpush1.bf16.msra.mxu1 %v5781_v10  ;;  %v10249_v56 = vmax.f32 %v2716_v25, %v2828_v49  ;;  %v7144_v10 = vunpack.i.h.bf16 %v10190_v41  ;;  %v12487_v25 = vunpack.i.l.bf16 %v9923_v53  ;;  %v2954_v53 = vld [vmem:[%s12013_s11 + $0x350] sm:$0xff]  ;;  %v2809_v41 = vsel %vm12502_vm8, %v7153_v38, %v7154_v45 }
 0x43d   :  { %v2762_v62 = vsel %vm12483_vm9, %v7119_v60, %v7148_v52  ;;  %5784 = vmatprep.subr.bf16.mxu0 %v5783_v40  ;;  %6040 = vmatprep.subr.bf16.mxu1 %v5783_v40  ;;  %v7129_v60 = vunpack.i.h.bf16 %v10109_v34  ;;  %v2760_v28 = vsel %vm12486_vm6, %v7149_v36, %v7164_v9  ;;  %v2752_v4 = vsel %vm12463_vm0, %v7139_v39, %v7163_v30  ;;  %v2978_v34 = vld [vmem:[%s12013_s11 + $0x410] sm:$0xff]  ;;  %vm12503_vm9 = vmmov %vm12463_vm0 }
 0x43e   :  { %v2820_v20 = vmax.f32 %v2762_v62, %v2810_v59  ;;  %v7157_v57 = vpop.permute.xlu1 %7156  ;;  %v12485_v59 = vunpack.i.h.bf16 %v9915_v16  ;;  %v2759_v16 = vsel %vm12488_vm15, %v7164_v9, %v12487_v25  ;;  %v2767_v63 = vsel %vm12490_vm7, %v7163_v30, %v12489_v17  ;;  %v2956_v25 = vld [vmem:[%s12013_s11 + $0x360] sm:$0xff] }
 0x43f   :  { %v7159_v27 = vunpack.i.h.bf16 %v7157_v57  ;;  %v7158_v5 = vunpack.i.l.bf16 %v7157_v57  ;;  %v2697_v61 = vsel %vm365_vm5, %v7128_v23, %v7129_v60  ;;  %v2689_v23 = vsel %vm365_vm5, %v7133_v0, %v7134_v44 }
 0x440   :  { %5786 = vmatpush1.bf16.msra.mxu0 %v5785_v58  ;;  %6042 = vmatpush1.bf16.msra.mxu1 %v5785_v58  ;;  %v10270_v19 = vmax.f32 %v2708_v3, %v2820_v20  ;;  %v12492_v3 = vmax.f32 %v9895_v47, 0.0  ;;  %v12497_v47 = vunpack.i.h.bf16 %v9969_v22  ;;  %v2753_v48 = vsel %vm12503_vm9, %v7138_v1, %v7139_v39  ;;  %v2980_v39 = vld [vmem:[%s12013_s11 + $0x420] sm:$0xff] }
 0x441   :  { %v2695_v43 = vsel %vm365_vm5, %v7159_v27, %v12484_v13  ;;  %v2696_v46 = vsel %vm365_vm5, %v7129_v60, %v7159_v27  ;;  %v2703_v40 = vsel %vm365_vm5, %v7158_v5, %v12485_v59  ;;  %5788 = vmatprep.subr.bf16.mxu0 %v5787_v42  ;;  %6044 = vmatprep.subr.bf16.mxu1 %v5787_v42  ;;  %v2952_v42 = vld [vmem:[%s12013_s11 + $0x340] sm:$0xff]  ;;  %v2957_v27 = vld [vmem:[%s12013_s11 + $0x368] sm:$0xff]  ;;  %vm3680_vm6 = vcmp.lt.s32.totalorder %v7667_v54, 17 }
 0x442   :  { %v7167_v49 = vpop.permute.xlu1 %7166  ;;  %v2688_v14 = vsel %vm365_vm5, %v7134_v44, %v7158_v5  ;;  %v2710_v37 = vmax.f32 %v12491_v50, %v2696_v46  ;;  %v2711_v62 = vmax.f32 %v12492_v3, %v2695_v43  ;;  %v2719_v11 = vmax.f32 %v12493_v6, %v2703_v40  ;;  %v2959_v5 = vld [vmem:[%s12013_s11 + $0x378] sm:$0xff]  ;;  %v2969_v3 = vld [vmem:[%s12013_s11 + $0x3c8] sm:$0xff] }
 0x443   :  { %v7169_v51 = vunpack.i.h.bf16 %v7167_v49  ;;  %v7168_v58 = vunpack.i.l.bf16 %v7167_v49  ;;  %v12499_v46 = vmax.f32 %v9880_v31, 0.0  ;;  %v5797_v59 = vpack.c.bf16 %v2954_v53, %v2952_v42  ;;  %v2958_v31 = vld [vmem:[%s12013_s11 + $0x370] sm:$0xff]  ;;  %v2963_v49 = vld [vmem:[%s12013_s11 + $0x398] sm:$0xff]  ;;  %v2964_v42 = vld [vmem:[%s12013_s11 + $0x3a0] sm:$0xff] }
 0x444   :  { %5790 = vmatpush1.bf16.msra.mxu0 %v5789_v18  ;;  %6046 = vmatpush1.bf16.msra.mxu1 %v5789_v18  ;;  %v12494_v18 = vunpack.i.l.bf16 %v9969_v22  ;;  %v2966_v53 = vld [vmem:[%s12013_s11 + $0x3b0] sm:$0xff]  ;;  %v2981_v60 = vld [vmem:[%s12013_s11 + $0x428] sm:$0xff]  ;;  %v12504_v44 = vmax.f32 %v9856_v7, 0.0  ;;  %v2717_v1 = vmax.f32 %v12505_v21, %v2689_v23  ;;  %v3008_v23 = vld [vmem:[%s12013_s11 + $0x500] sm:$0xff]  ;;  %vm3693_vm0 = vcmp.lt.s32.totalorder %v7667_v54, 16 }
 0x445   :  { %v2800_v15 = vsel %vm12476_vm1, %v7144_v10, %v7168_v58  ;;  %v2808_v9 = vsel %vm12496_vm12, %v7154_v45, %v7169_v51  ;;  %v2815_v32 = vsel %vm12498_vm11, %v7168_v58, %v12497_v47  ;;  %5792 = vmatprep.subr.bf16.mxu0 %v5791_v35  ;;  %6048 = vmatprep.subr.bf16.mxu1 %v5791_v35  ;;  %v2967_v58 = vld [vmem:[%s12013_s11 + $0x3b8] sm:$0xff]  ;;  %v2982_v45 = vld [vmem:[%s12013_s11 + $0x430] sm:$0xff]  ;;  %v2985_v7 = vld [vmem:[%s12013_s11 + $0x448] sm:$0xff]  ;;  %vm3706_vm15 = vcmp.lt.s32.totalorder %v7667_v54, 15 }
 0x446   :  { %v2807_v20 = vsel %vm12495_vm13, %v7169_v51, %v12494_v18  ;;  %v2822_v30 = vmax.f32 %v2760_v28, %v2808_v9  ;;  %v2830_v57 = vmax.f32 %v2752_v4, %v2800_v15  ;;  %v2831_v43 = vmax.f32 %v2767_v63, %v2815_v32  ;;  %v2960_v63 = vld [vmem:[%s12013_s11 + $0x380] sm:$0xff]  ;;  %v2965_v51 = vld [vmem:[%s12013_s11 + $0x3a8] sm:$0xff]  ;;  %v2970_v18 = vld [vmem:[%s12013_s11 + $0x3d0] sm:$0xff] }
 0x447   :  { %v2823_v13 = vmax.f32 %v2759_v16, %v2807_v20  ;;  %v2718_v22 = vmax.f32 %v12499_v46, %v2688_v14  ;;  %v5799_v4 = vpack.c.bf16 %v2959_v5, %v2957_v27  ;;  %v2962_v14 = vld [vmem:[%s12013_s11 + $0x390] sm:$0xff]  ;;  %v5809_v6 = vpack.c.bf16 %v2966_v53, %v2964_v42  ;;  %v2968_v15 = vld [vmem:[%s12013_s11 + $0x3c0] sm:$0xff]  ;;  %v2973_v20 = vld [vmem:[%s12013_s11 + $0x3e8] sm:$0xff] }
 0x448   :  { %5794 = vmatpush1.bf16.msra.mxu0 %v5793_v29  ;;  %6050 = vmatpush1.bf16.msra.mxu1 %v5793_v29  ;;  %v10344_v28 = vmax.f32 %v2719_v11, %v2831_v43  ;;  %v10346_v35 = vmax.f32 %v2710_v37, %v2822_v30  ;;  %v2961_v29 = vld [vmem:[%s12013_s11 + $0x388] sm:$0xff]  ;;  %v5805_v50 = vpack.c.bf16 %v2962_v14, %v2960_v63  ;;  %v2975_v9 = vld [vmem:[%s12013_s11 + $0x3f8] sm:$0xff]  ;;  %v2972_v30 = vld [vmem:[%s12013_s11 + $0x3e0] sm:$0xff]  ;;  %vm3756_vm7 = vcmp.lt.s32.totalorder %v7667_v54, 112 }
 0x449   :  { %v10342_v40 = vmax.f32 %v2711_v62, %v2823_v13  ;;  %5796 = vmatprep.subr.bf16.mxu0 %v5795_v12  ;;  %6052 = vmatprep.subr.bf16.mxu1 %v5795_v12  ;;  %v10354_v16 = vmax.f32 %v2718_v22, %v2830_v57  ;;  %v5801_v12 = vpack.c.bf16 %v2958_v31, %v2956_v25  ;;  %v2971_v62 = vld [vmem:[%s12013_s11 + $0x3d8] sm:$0xff]  ;;  %v2974_v57 = vld [vmem:[%s12013_s11 + $0x3f0] sm:$0xff]  ;;  %v2977_v27 = vld [vmem:[%s12013_s11 + $0x408] sm:$0xff]  ;;  %vm3743_vm1 = vcmp.lt.s32.totalorder %v7667_v54, 113 }
 0x44a   :  { %v5803_v17 = vpack.c.bf16 %v2963_v49, %v2961_v29  ;;  %v5807_v37 = vpack.c.bf16 %v2967_v58, %v2965_v51  ;;  %v5811_v11 = vpack.c.bf16 %v2971_v62, %v2969_v3  ;;  %v5813_v47 = vpack.c.bf16 %v2970_v18, %v2968_v15  ;;  %v2979_v5 = vld [vmem:[%s12013_s11 + $0x418] sm:$0xff]  ;;  %v2984_v29 = vld [vmem:[%s12013_s11 + $0x440] sm:$0xff]  ;;  %v2986_v49 = vld [vmem:[%s12013_s11 + $0x450] sm:$0xff] }
 0x44b   :  { %v5815_v32 = vpack.c.bf16 %v2975_v9, %v2973_v20  ;;  %v2761_v13 = vsel %vm12500_vm10, %v7148_v52, %v7149_v36  ;;  %v2801_v43 = vsel %vm12501_vm2, %v7143_v24, %v7144_v10  ;;  %v5817_v46 = vpack.c.bf16 %v2974_v57, %v2972_v30  ;;  %v2976_v52 = vld [vmem:[%s12013_s11 + $0x400] sm:$0xff]  ;;  %v2990_v14 = vld [vmem:[%s12013_s11 + $0x470] sm:$0xff]  ;;  %v2993_v51 = vld [vmem:[%s12013_s11 + $0x488] sm:$0xff] }
 0x44c   :  { %5798 = vmatpush1.bf16.msra.mxu0 %v5797_v59  ;;  %6054 = vmatpush1.bf16.msra.mxu1 %v5797_v59  ;;  %v5819_v24 = vpack.c.bf16 %v2979_v5, %v2977_v27  ;;  %v2821_v38 = vmax.f32 %v2761_v13, %v2809_v41  ;;  %v2829_v36 = vmax.f32 %v2753_v48, %v2801_v43  ;;  %v2988_v63 = vld [vmem:[%s12013_s11 + $0x460] sm:$0xff]  ;;  %v2995_v58 = vld [vmem:[%s12013_s11 + $0x498] sm:$0xff]  ;;  %v2994_v53 = vld [vmem:[%s12013_s11 + $0x490] sm:$0xff]  ;;  %vm3769_vm13 = vcmp.lt.s32.totalorder %v7667_v54, 111 }
 0x44d   :  { %5800 = vmatprep.subr.bf16.mxu0 %v5799_v4  ;;  %6056 = vmatprep.subr.bf16.mxu1 %v5799_v4  ;;  %v5821_v0 = vpack.c.bf16 %v2978_v34, %v2976_v52  ;;  %v2709_v10 = vmax.f32 %v12504_v44, %v2697_v61  ;;  %v5823_v59 = vpack.c.bf16 %v2983_v8, %v2981_v60  ;;  %v2987_v4 = vld [vmem:[%s12013_s11 + $0x458] sm:$0xff]  ;;  %v2992_v42 = vld [vmem:[%s12013_s11 + $0x480] sm:$0xff]  ;;  %v2997_v3 = vld [vmem:[%s12013_s11 + $0x4a8] sm:$0xff] }
 0x44e   :  { %v2845_v33 = vmax.f32 %v2717_v1, %v2829_v36  ;;  %v5825_v25 = vpack.c.bf16 %v2982_v45, %v2980_v39  ;;  %v5827_v31 = vpack.c.bf16 %v2987_v4, %v2985_v7  ;;  %v2999_v62 = vld [vmem:[%s12013_s11 + $0x4b8] sm:$0xff]  ;;  %v2996_v15 = vld [vmem:[%s12013_s11 + $0x4a0] sm:$0xff]  ;;  %v2998_v18 = vld [vmem:[%s12013_s11 + $0x4b0] sm:$0xff] }
 0x44f   :  { %v2837_v22 = vmax.f32 %v2709_v10, %v2821_v38  ;;  %v3001_v20 = vld [vmem:[%s12013_s11 + $0x4c8] sm:$0xff]  ;;  %v3003_v9 = vld [vmem:[%s12013_s11 + $0x4d8] sm:$0xff]  ;;  %v3000_v30 = vld [vmem:[%s12013_s11 + $0x4c0] sm:$0xff] }
 0x450   :  { %5802 = vmatpush1.bf16.msra.mxu0 %v5801_v12  ;;  %6058 = vmatpush1.bf16.msra.mxu1 %v5801_v12  ;;  %v5829_v12 = vpack.c.bf16 %v2986_v49, %v2984_v29  ;;  %v3002_v57 = vld [vmem:[%s12013_s11 + $0x4d0] sm:$0xff]  ;;  %v3005_v27 = vld [vmem:[%s12013_s11 + $0x4e8] sm:$0xff]  ;;  %v3007_v5 = vld [vmem:[%s12013_s11 + $0x4f8] sm:$0xff] }
 0x451   :  { %5804 = vmatprep.subr.bf16.mxu0 %v5803_v17  ;;  %6060 = vmatprep.subr.bf16.mxu1 %v5803_v17  ;;  %v5845_v13 = vpack.c.bf16 %v3002_v57, %v3000_v30  ;;  %v5847_v43 = vpack.c.bf16 %v3007_v5, %v3005_v27  ;;  %v3006_v61 = vld [vmem:[%s12013_s11 + $0x4f0] sm:$0xff]  ;;  %v3009_v41 = vld [vmem:[%s12013_s11 + $0x508] sm:$0xff]  ;;  %v3015_v36 = vld [vmem:[%s12013_s11 + $0x538] sm:$0xff] }
 0x452   :  { %v3010_v48 = vld [vmem:[%s12013_s11 + $0x510] sm:$0xff]  ;;  %v3013_v38 = vld [vmem:[%s12013_s11 + $0x528] sm:$0xff]  ;;  %v3019_v21 = vld [vmem:[%s12013_s11 + $0x558] sm:$0xff] }
 0x453   :  { %v5853_v60 = vpack.c.bf16 %v3010_v48, %v3008_v23  ;;  %v5855_v8 = vpack.c.bf16 %v3015_v36, %v3013_v38  ;;  %v3014_v44 = vld [vmem:[%s12013_s11 + $0x530] sm:$0xff]  ;;  %v3017_v10 = vld [vmem:[%s12013_s11 + $0x548] sm:$0xff]  ;;  %v3016_v45 = vld [vmem:[%s12013_s11 + $0x540] sm:$0xff] }
 0x454   :  { %5806 = vmatpush1.bf16.msra.mxu0 %v5805_v50  ;;  %6062 = vmatpush1.bf16.msra.mxu1 %v5805_v50  ;;  %v5833_v50 = vpack.c.bf16 %v2990_v14, %v2988_v63  ;;  %v5859_v39 = vpack.c.bf16 %v3019_v21, %v3017_v10  ;;  %v3023_v7 = vld [vmem:[%s12013_s11 + $0x578] sm:$0xff]  ;;  %v3025_v29 = vld [vmem:[%s12013_s11 + $0x588] sm:$0xff] }
 0x455   :  { %5808 = vmatprep.subr.bf16.mxu0 %v5807_v37  ;;  %6064 = vmatprep.subr.bf16.mxu1 %v5807_v37  ;;  %v5835_v37 = vpack.c.bf16 %v2995_v58, %v2993_v51  ;;  %v3027_v49 = vld [vmem:[%s12013_s11 + $0x598] sm:$0xff]  ;;  %v3029_v63 = vld [vmem:[%s12013_s11 + $0x5a8] sm:$0xff] }
 0x456   :  { %v3031_v14 = vld [vmem:[%s12013_s11 + $0x5b8] sm:$0xff]  ;;  %v3041_v30 = vld [vmem:[%s12013_s11 + $0x608] sm:$0xff] }
 0x457   :  { %v5871_v58 = vpack.c.bf16 %v3031_v14, %v3029_v63  ;;  %v3043_v57 = vld [vmem:[%s12013_s11 + $0x618] sm:$0xff]  ;;  %v3049_v23 = vld [vmem:[%s12013_s11 + $0x648] sm:$0xff] }
 0x458   :  { %5810 = vmatpush1.bf16.msra.mxu0 %v5809_v6  ;;  %6066 = vmatpush1.bf16.msra.mxu1 %v5809_v6  ;;  %v5837_v6 = vpack.c.bf16 %v2994_v53, %v2992_v42  ;;  %v3033_v42 = vld [vmem:[%s12013_s11 + $0x5c8] sm:$0xff]  ;;  %v3035_v53 = vld [vmem:[%s12013_s11 + $0x5d8] sm:$0xff]  ;;  %v5883_v5 = vpack.c.bf16 %v3043_v57, %v3041_v30 }
 0x459   :  { %5812 = vmatprep.subr.bf16.mxu0 %v5811_v11  ;;  %6068 = vmatprep.subr.bf16.mxu1 %v5811_v11  ;;  %v5839_v11 = vpack.c.bf16 %v2999_v62, %v2997_v3  ;;  %v5875_v62 = vpack.c.bf16 %v3035_v53, %v3033_v42  ;;  %v3051_v48 = vld [vmem:[%s12013_s11 + $0x658] sm:$0xff]  ;;  %v3057_v10 = vld [vmem:[%s12013_s11 + $0x688] sm:$0xff] }
 0x45a   :  { %v5891_v36 = vpack.c.bf16 %v3051_v48, %v3049_v23  ;;  %v3059_v21 = vld [vmem:[%s12013_s11 + $0x698] sm:$0xff]  ;;  %v3069_v63 = vld [vmem:[%s12013_s11 + $0x6e8] sm:$0xff] }
 0x45b   :  { %v3071_v14 = vld [vmem:[%s12013_s11 + $0x6f8] sm:$0xff]  ;;  %v3073_v42 = vld [vmem:[%s12013_s11 + $0x708] sm:$0xff] }
 0x45c   :  { %5814 = vmatpush1.bf16.msra.mxu0 %v5813_v47  ;;  %6070 = vmatpush1.bf16.msra.mxu1 %v5813_v47  ;;  %v5841_v47 = vpack.c.bf16 %v2998_v18, %v2996_v15  ;;  %v3037_v15 = vld [vmem:[%s12013_s11 + $0x5e8] sm:$0xff]  ;;  %v3039_v18 = vld [vmem:[%s12013_s11 + $0x5f8] sm:$0xff] }
 0x45d   :  { %5816 = vmatprep.subr.bf16.mxu0 %v5815_v32  ;;  %6072 = vmatprep.subr.bf16.mxu1 %v5815_v32  ;;  %v5843_v32 = vpack.c.bf16 %v3003_v9, %v3001_v20  ;;  %v5879_v9 = vpack.c.bf16 %v3039_v18, %v3037_v15  ;;  %v3075_v53 = vld [vmem:[%s12013_s11 + $0x718] sm:$0xff]  ;;  %v3077_v15 = vld [vmem:[%s12013_s11 + $0x728] sm:$0xff] }
 0x45e   :  { %v3079_v18 = vld [vmem:[%s12013_s11 + $0x738] sm:$0xff]  ;;  %v3081_v30 = vld [vmem:[%s12013_s11 + $0x748] sm:$0xff] }
 0x45f   :  { %v3083_v57 = vld [vmem:[%s12013_s11 + $0x758] sm:$0xff]  ;;  %v3089_v23 = vld [vmem:[%s12013_s11 + $0x788] sm:$0xff] }
 0x460   :  { %5818 = vmatpush1.bf16.msra.mxu0 %v5817_v46  ;;  %6074 = vmatpush1.bf16.msra.mxu1 %v5817_v46  ;;  %v3004_v46 = vld [vmem:[%s12013_s11 + $0x4e0] sm:$0xff]  ;;  %v3091_v48 = vld [vmem:[%s12013_s11 + $0x798] sm:$0xff]  ;;  %v4444_v54 = vld [vmem:[%s12014_s12 + $0x308] sm:$0xff] }
 0x461   :  { %5820 = vmatprep.subr.bf16.mxu0 %v5819_v24  ;;  %6076 = vmatprep.subr.bf16.mxu1 %v5819_v24  ;;  %v3011_v24 = vld [vmem:[%s12013_s11 + $0x518] sm:$0xff]  ;;  %v5849_v52 = vpack.c.bf16 %v3006_v61, %v3004_v46  ;;  %v3045_v46 = vld [vmem:[%s12013_s11 + $0x628] sm:$0xff] }
 0x462   :  { %v5851_v34 = vpack.c.bf16 %v3011_v24, %v3009_v41  ;;  %v3047_v61 = vld [vmem:[%s12013_s11 + $0x638] sm:$0xff]  ;;  %v3044_v24 = vld [vmem:[%s12013_s11 + $0x620] sm:$0xff] }
 0x463   :  { %3240 = vmatmul.mubr.f32.vlgmr.msra.gmra.mrb[16].mxu0 %v10168_v55  ;;  %3524 = vmatmul.mubr.f32.vlgmr.msra.gmra.mrb[16].mxu1 %v10124_v2  ;;  %v2989_v2 = vld [vmem:[%s12013_s11 + $0x468] sm:$0xff]  ;;  %v2991_v55 = vld [vmem:[%s12013_s11 + $0x478] sm:$0xff] }
 0x464   :  { %5822 = vmatpush1.bf16.msra.mxu0 %v5821_v0  ;;  %3310 = vmatprep.mubr.f32.mxu0 %v2837_v22  ;;  %v5831_v17 = vpack.c.bf16 %v2991_v55, %v2989_v2  ;;  %v3018_v22 = vld [vmem:[%s12013_s11 + $0x550] sm:$0xff]  ;;  %v5867_v55 = vpack.c.bf16 %v3027_v49, %v3025_v29  ;;  %v3065_v29 = vld [vmem:[%s12013_s11 + $0x6c8] sm:$0xff]  ;;  %v3067_v49 = vld [vmem:[%s12013_s11 + $0x6d8] sm:$0xff] }
 0x465   :  { %6078 = vmatpush1.bf16.msra.mxu1 %v5821_v0  ;;  %3594 = vmatprep.mubr.f32.mxu1 %v2845_v33  ;;  %v3012_v0 = vld [vmem:[%s12013_s11 + $0x520] sm:$0xff]  ;;  %v5861_v4 = vpack.c.bf16 %v3018_v22, %v3016_v45  ;;  %v3058_v22 = vld [vmem:[%s12013_s11 + $0x690] sm:$0xff] }
 0x466   :  { %5824 = vmatprep.subr.bf16.mxu0 %v5823_v59  ;;  %6080 = vmatprep.subr.bf16.mxu1 %v5823_v59  ;;  %v5857_v1 = vpack.c.bf16 %v3014_v44, %v3012_v0  ;;  %v3021_v59 = vld [vmem:[%s12013_s11 + $0x568] sm:$0xff]  ;;  %v3052_v44 = vld [vmem:[%s12013_s11 + $0x660] sm:$0xff] }
 0x467   :  { %v5863_v33 = vpack.c.bf16 %v3023_v7, %v3021_v59  ;;  %v3056_v45 = vld [vmem:[%s12013_s11 + $0x680] sm:$0xff]  ;;  %v3061_v59 = vld [vmem:[%s12013_s11 + $0x6a8] sm:$0xff]  ;;  %v3063_v7 = vld [vmem:[%s12013_s11 + $0x6b8] sm:$0xff] }
 0x468   :  { %5826 = vmatpush1.bf16.msra.mxu0 %v5825_v25 }
 0x469   :  { %6082 = vmatpush1.bf16.msra.mxu1 %v5825_v25  ;;  %5828 = vmatprep.subr.bf16.mxu0 %v5827_v31  ;;  %v3020_v25 = vld [vmem:[%s12013_s11 + $0x560] sm:$0xff] }
 0x46a   :  { %6084 = vmatprep.subr.bf16.mxu1 %v5827_v31  ;;  %v3022_v31 = vld [vmem:[%s12013_s11 + $0x570] sm:$0xff] }
 0x46b   :  { %v5865_v2 = vpack.c.bf16 %v3022_v31, %v3020_v25  ;;  %v3060_v25 = vld [vmem:[%s12013_s11 + $0x6a0] sm:$0xff]  ;;  %v3062_v31 = vld [vmem:[%s12013_s11 + $0x6b0] sm:$0xff] }
 0x46c   :  { %5830 = vmatpush1.bf16.msra.mxu0 %v5829_v12 }
 0x46d   :  { %6086 = vmatpush1.bf16.msra.mxu1 %v5829_v12  ;;  %5832 = vmatprep.subr.bf16.mxu0 %v5831_v17  ;;  %v3024_v12 = vld [vmem:[%s12013_s11 + $0x580] sm:$0xff] }
 0x46e   :  { %6088 = vmatprep.subr.bf16.mxu1 %v5831_v17  ;;  %v3026_v17 = vld [vmem:[%s12013_s11 + $0x590] sm:$0xff] }
 0x46f   :  { %v5869_v51 = vpack.c.bf16 %v3026_v17, %v3024_v12  ;;  %v3064_v12 = vld [vmem:[%s12013_s11 + $0x6c0] sm:$0xff]  ;;  %v3066_v17 = vld [vmem:[%s12013_s11 + $0x6d0] sm:$0xff] }
 0x470   :  { %5834 = vmatpush1.bf16.msra.mxu0 %v5833_v50 }
 0x471   :  { %6090 = vmatpush1.bf16.msra.mxu1 %v5833_v50  ;;  %5836 = vmatprep.subr.bf16.mxu0 %v5835_v37  ;;  %v3028_v50 = vld [vmem:[%s12013_s11 + $0x5a0] sm:$0xff] }
 0x472   :  { %6092 = vmatprep.subr.bf16.mxu1 %v5835_v37  ;;  %v3030_v37 = vld [vmem:[%s12013_s11 + $0x5b0] sm:$0xff] }
 0x473   :  { %v5873_v3 = vpack.c.bf16 %v3030_v37, %v3028_v50  ;;  %v3068_v50 = vld [vmem:[%s12013_s11 + $0x6e0] sm:$0xff]  ;;  %v3070_v37 = vld [vmem:[%s12013_s11 + $0x6f0] sm:$0xff] }
 0x474   :  { %5838 = vmatpush1.bf16.msra.mxu0 %v5837_v6 }
 0x475   :  { %6094 = vmatpush1.bf16.msra.mxu1 %v5837_v6  ;;  %5840 = vmatprep.subr.bf16.mxu0 %v5839_v11  ;;  %v3032_v6 = vld [vmem:[%s12013_s11 + $0x5c0] sm:$0xff] }
 0x476   :  { %6096 = vmatprep.subr.bf16.mxu1 %v5839_v11  ;;  %v3034_v11 = vld [vmem:[%s12013_s11 + $0x5d0] sm:$0xff] }
 0x477   :  { %v5877_v20 = vpack.c.bf16 %v3034_v11, %v3032_v6  ;;  %v3072_v6 = vld [vmem:[%s12013_s11 + $0x700] sm:$0xff]  ;;  %v3074_v11 = vld [vmem:[%s12013_s11 + $0x710] sm:$0xff] }
 0x478   :  { %5842 = vmatpush1.bf16.msra.mxu0 %v5841_v47 }
 0x479   :  { %6098 = vmatpush1.bf16.msra.mxu1 %v5841_v47  ;;  %5844 = vmatprep.subr.bf16.mxu0 %v5843_v32  ;;  %v3036_v47 = vld [vmem:[%s12013_s11 + $0x5e0] sm:$0xff] }
 0x47a   :  { %6100 = vmatprep.subr.bf16.mxu1 %v5843_v32  ;;  %v3038_v32 = vld [vmem:[%s12013_s11 + $0x5f0] sm:$0xff] }
 0x47b   :  { %v5881_v27 = vpack.c.bf16 %v3038_v32, %v3036_v47  ;;  %v3076_v47 = vld [vmem:[%s12013_s11 + $0x720] sm:$0xff]  ;;  %v3078_v32 = vld [vmem:[%s12013_s11 + $0x730] sm:$0xff] }
 0x47c   :  { %5846 = vmatpush1.bf16.msra.mxu0 %v5845_v13 }
 0x47d   :  { %6102 = vmatpush1.bf16.msra.mxu1 %v5845_v13  ;;  %5848 = vmatprep.subr.bf16.mxu0 %v5847_v43  ;;  %v3040_v13 = vld [vmem:[%s12013_s11 + $0x600] sm:$0xff] }
 0x47e   :  { %6104 = vmatprep.subr.bf16.mxu1 %v5847_v43  ;;  %v3042_v43 = vld [vmem:[%s12013_s11 + $0x610] sm:$0xff] }
 0x47f   :  { %v5885_v41 = vpack.c.bf16 %v3042_v43, %v3040_v13  ;;  %v3080_v13 = vld [vmem:[%s12013_s11 + $0x740] sm:$0xff]  ;;  %v3082_v43 = vld [vmem:[%s12013_s11 + $0x750] sm:$0xff] }
 0x480   :  { %5850 = vmatpush1.bf16.msra.mxu0 %v5849_v52 }
 0x481   :  { %6106 = vmatpush1.bf16.msra.mxu1 %v5849_v52  ;;  %5852 = vmatprep.subr.bf16.mxu0 %v5851_v34  ;;  %v3046_v52 = vld [vmem:[%s12013_s11 + $0x630] sm:$0xff] }
 0x482   :  { %6108 = vmatprep.subr.bf16.mxu1 %v5851_v34  ;;  %v5887_v34 = vpack.c.bf16 %v3047_v61, %v3045_v46  ;;  %v5889_v38 = vpack.c.bf16 %v3046_v52, %v3044_v24  ;;  %v3085_v46 = vld [vmem:[%s12013_s11 + $0x768] sm:$0xff]  ;;  %v3087_v61 = vld [vmem:[%s12013_s11 + $0x778] sm:$0xff]  ;;  %v3084_v52 = vld [vmem:[%s12013_s11 + $0x760] sm:$0xff] }
 0x483   :  { %v5927_v24 = vpack.c.bf16 %v3087_v61, %v3085_v46 }
 0x484   :  { %5854 = vmatpush1.bf16.msra.mxu0 %v5853_v60 }
 0x485   :  { %6110 = vmatpush1.bf16.msra.mxu1 %v5853_v60  ;;  %5856 = vmatprep.subr.bf16.mxu0 %v5855_v8  ;;  %v3048_v60 = vld [vmem:[%s12013_s11 + $0x640] sm:$0xff] }
 0x486   :  { %6112 = vmatprep.subr.bf16.mxu1 %v5855_v8  ;;  %v3050_v8 = vld [vmem:[%s12013_s11 + $0x650] sm:$0xff] }
 0x488   :  { %5858 = vmatpush1.bf16.msra.mxu0 %v5857_v1 }
 0x489   :  { %6114 = vmatpush1.bf16.msra.mxu1 %v5857_v1  ;;  %5860 = vmatprep.subr.bf16.mxu0 %v5859_v39 }
 0x48a   :  { %6116 = vmatprep.subr.bf16.mxu1 %v5859_v39  ;;  %v5899_v39 = vpack.c.bf16 %v3059_v21, %v3057_v10  ;;  %v3097_v10 = vld [vmem:[%s12013_s11 + $0x7c8] sm:$0xff]  ;;  %v3099_v21 = vld [vmem:[%s12013_s11 + $0x7d8] sm:$0xff] }
 0x48c   :  { %5862 = vmatpush1.bf16.msra.mxu0 %v5861_v4 }
 0x48d   :  { %6118 = vmatpush1.bf16.msra.mxu1 %v5861_v4  ;;  %5864 = vmatprep.subr.bf16.mxu0 %v5863_v33  ;;  %v5901_v4 = vpack.c.bf16 %v3058_v22, %v3056_v45  ;;  %v3096_v45 = vld [vmem:[%s12013_s11 + $0x7c0] sm:$0xff]  ;;  %v3098_v22 = vld [vmem:[%s12013_s11 + $0x7d0] sm:$0xff] }
 0x48e   :  { %6120 = vmatprep.subr.bf16.mxu1 %v5863_v33  ;;  %v5903_v33 = vpack.c.bf16 %v3063_v7, %v3061_v59  ;;  %v3101_v59 = vld [vmem:[%s12013_s11 + $0x7e8] sm:$0xff]  ;;  %v3103_v7 = vld [vmem:[%s12013_s11 + $0x7f8] sm:$0xff] }
 0x490   :  { %5866 = vmatpush1.bf16.msra.mxu0 %v5865_v2 }
 0x491   :  { %6122 = vmatpush1.bf16.msra.mxu1 %v5865_v2  ;;  %5868 = vmatprep.subr.bf16.mxu0 %v5867_v55  ;;  %v5905_v2 = vpack.c.bf16 %v3062_v31, %v3060_v25  ;;  %v3100_v25 = vld [vmem:[%s12013_s11 + $0x7e0] sm:$0xff]  ;;  %v3102_v31 = vld [vmem:[%s12013_s11 + $0x7f0] sm:$0xff] }
 0x492   :  { %6124 = vmatprep.subr.bf16.mxu1 %v5867_v55  ;;  %v5907_v55 = vpack.c.bf16 %v3067_v49, %v3065_v29  ;;  %v5945_v29 = vpack.c.bf16 %v3102_v31, %v3100_v25 }
 0x494   :  { %5870 = vmatpush1.bf16.msra.mxu0 %v5869_v51 }
 0x495   :  { %6126 = vmatpush1.bf16.msra.mxu1 %v5869_v51  ;;  %5872 = vmatprep.subr.bf16.mxu0 %v5871_v58  ;;  %v5909_v51 = vpack.c.bf16 %v3066_v17, %v3064_v12 }
 0x496   :  { %6128 = vmatprep.subr.bf16.mxu1 %v5871_v58  ;;  %v5911_v58 = vpack.c.bf16 %v3071_v14, %v3069_v63  ;;  %v3775_v14 = vld [vmem:[%s12008_s6] sm:$0xff] }
 0x498   :  { %5874 = vmatpush1.bf16.msra.mxu0 %v5873_v3 }
 0x499   :  { %6130 = vmatpush1.bf16.msra.mxu1 %v5873_v3  ;;  %5876 = vmatprep.subr.bf16.mxu0 %v5875_v62  ;;  %v5913_v3 = vpack.c.bf16 %v3070_v37, %v3068_v50 }
 0x49a   :  { %6132 = vmatprep.subr.bf16.mxu1 %v5875_v62  ;;  %v5915_v62 = vpack.c.bf16 %v3075_v53, %v3073_v42 }
 0x49c   :  { %5878 = vmatpush1.bf16.msra.mxu0 %v5877_v20 }
 0x49d   :  { %6134 = vmatpush1.bf16.msra.mxu1 %v5877_v20  ;;  %5880 = vmatprep.subr.bf16.mxu0 %v5879_v9  ;;  %v5917_v20 = vpack.c.bf16 %v3074_v11, %v3072_v6 }
 0x49e   :  { %6136 = vmatprep.subr.bf16.mxu1 %v5879_v9  ;;  %v5919_v9 = vpack.c.bf16 %v3079_v18, %v3077_v15 }
 0x4a0   :  { %5882 = vmatpush1.bf16.msra.mxu0 %v5881_v27 }
 0x4a1   :  { %6138 = vmatpush1.bf16.msra.mxu1 %v5881_v27  ;;  %5884 = vmatprep.subr.bf16.mxu0 %v5883_v5  ;;  %v5921_v27 = vpack.c.bf16 %v3078_v32, %v3076_v47 }
 0x4a2   :  { %6140 = vmatprep.subr.bf16.mxu1 %v5883_v5  ;;  %v5923_v5 = vpack.c.bf16 %v3083_v57, %v3081_v30 }
 0x4a3   :  { %3311 = vmatmul.mubr.f32.vlgmr.msra.gmra.mrb[16].mxu0 %v10270_v19  ;;  %v3055_v19 = vld [vmem:[%s12013_s11 + $0x678] sm:$0xff] }
 0x4a4   :  { %3595 = vmatmul.mubr.f32.vlgmr.msra.gmra.mrb[16].mxu1 %v10249_v56  ;;  %5886 = vmatpush1.bf16.msra.mxu0 %v5885_v41  ;;  %v3053_v56 = vld [vmem:[%s12013_s11 + $0x668] sm:$0xff] }
 0x4a5   :  { %3381 = vmatprep.mubr.f32.mxu0 %v10342_v40  ;;  %6142 = vmatpush1.bf16.msra.mxu1 %v5885_v41  ;;  %v5893_v40 = vpack.c.bf16 %v3050_v8, %v3048_v60  ;;  %v5895_v0 = vpack.c.bf16 %v3055_v19, %v3053_v56  ;;  %v5925_v41 = vpack.c.bf16 %v3082_v43, %v3080_v13  ;;  %v3088_v60 = vld [vmem:[%s12013_s11 + $0x780] sm:$0xff]  ;;  %v3090_v8 = vld [vmem:[%s12013_s11 + $0x790] sm:$0xff]  ;;  %v3093_v56 = vld [vmem:[%s12013_s11 + $0x7a8] sm:$0xff] }
 0x4a6   :  { %3665 = vmatprep.mubr.f32.mxu1 %v10344_v28  ;;  %5888 = vmatprep.subr.bf16.mxu0 %v5887_v34  ;;  %v3054_v28 = vld [vmem:[%s12013_s11 + $0x670] sm:$0xff]  ;;  %v3095_v19 = vld [vmem:[%s12013_s11 + $0x7b8] sm:$0xff] }
 0x4a7   :  { %6144 = vmatprep.subr.bf16.mxu1 %v5887_v34  ;;  %v5897_v1 = vpack.c.bf16 %v3054_v28, %v3052_v44  ;;  %v3086_v34 = vld [vmem:[%s12013_s11 + $0x770] sm:$0xff]  ;;  %v3092_v44 = vld [vmem:[%s12013_s11 + $0x7a0] sm:$0xff] }
 0x4a8   :  { %5890 = vmatpush1.bf16.msra.mxu0 %v5889_v38  ;;  %v3094_v28 = vld [vmem:[%s12013_s11 + $0x7b0] sm:$0xff]  ;;  %s7375_s11 = smov 16  }
 0x4a9   :  { %6146 = vmatpush1.bf16.msra.mxu1 %v5889_v38  ;;  %5892 = vmatprep.subr.bf16.mxu0 %v5891_v36  ;;  %v5929_v38 = vpack.c.bf16 %v3086_v34, %v3084_v52 }
 0x4aa   :  { %6148 = vmatprep.subr.bf16.mxu1 %v5891_v36  ;;  %v5931_v36 = vpack.c.bf16 %v3091_v48, %v3089_v23 }
 0x4ac   :  { %5894 = vmatpush1.bf16.msra.mxu0 %v5893_v40 }
 0x4ad   :  { %6150 = vmatpush1.bf16.msra.mxu1 %v5893_v40  ;;  %5896 = vmatprep.subr.bf16.mxu0 %v5895_v0  ;;  %v5933_v40 = vpack.c.bf16 %v3090_v8, %v3088_v60 }
 0x4ae   :  { %6152 = vmatprep.subr.bf16.mxu1 %v5895_v0  ;;  %v5935_v0 = vpack.c.bf16 %v3095_v19, %v3093_v56 }
 0x4b0   :  { %5898 = vmatpush1.bf16.msra.mxu0 %v5897_v1 }
 0x4b1   :  { %6154 = vmatpush1.bf16.msra.mxu1 %v5897_v1  ;;  %5900 = vmatprep.subr.bf16.mxu0 %v5899_v39  ;;  %v5937_v1 = vpack.c.bf16 %v3094_v28, %v3092_v44 }
 0x4b2   :  { %6156 = vmatprep.subr.bf16.mxu1 %v5899_v39  ;;  %v5939_v39 = vpack.c.bf16 %v3099_v21, %v3097_v10 }
 0x4b4   :  { %5902 = vmatpush1.bf16.msra.mxu0 %v5901_v4 }
 0x4b5   :  { %6158 = vmatpush1.bf16.msra.mxu1 %v5901_v4  ;;  %5904 = vmatprep.subr.bf16.mxu0 %v5903_v33  ;;  %v5941_v4 = vpack.c.bf16 %v3098_v22, %v3096_v45 }
 0x4b6   :  { %6160 = vmatprep.subr.bf16.mxu1 %v5903_v33  ;;  %v5943_v33 = vpack.c.bf16 %v3103_v7, %v3101_v59 }
 0x4b8   :  { %5906 = vmatpush1.bf16.msra.mxu0 %v5905_v2 }
 0x4b9   :  { %6162 = vmatpush1.bf16.msra.mxu1 %v5905_v2  ;;  %5908 = vmatprep.subr.bf16.mxu0 %v5907_v55 }
 0x4ba   :  { %6164 = vmatprep.subr.bf16.mxu1 %v5907_v55 }
 0x4bc   :  { %5910 = vmatpush1.bf16.msra.mxu0 %v5909_v51 }
 0x4bd   :  { %6166 = vmatpush1.bf16.msra.mxu1 %v5909_v51  ;;  %5912 = vmatprep.subr.bf16.mxu0 %v5911_v58 }
 0x4be   :  { %6168 = vmatprep.subr.bf16.mxu1 %v5911_v58 }
 0x4c0   :  { %5914 = vmatpush1.bf16.msra.mxu0 %v5913_v3 }
 0x4c1   :  { %6170 = vmatpush1.bf16.msra.mxu1 %v5913_v3  ;;  %5916 = vmatprep.subr.bf16.mxu0 %v5915_v62 }
 0x4c2   :  { %6172 = vmatprep.subr.bf16.mxu1 %v5915_v62 }
 0x4c4   :  { %5918 = vmatpush1.bf16.msra.mxu0 %v5917_v20 }
 0x4c5   :  { %6174 = vmatpush1.bf16.msra.mxu1 %v5917_v20  ;;  %5920 = vmatprep.subr.bf16.mxu0 %v5919_v9 }
 0x4c6   :  { %6176 = vmatprep.subr.bf16.mxu1 %v5919_v9 }
 0x4c8   :  { %5922 = vmatpush1.bf16.msra.mxu0 %v5921_v27 }
 0x4c9   :  { %6178 = vmatpush1.bf16.msra.mxu1 %v5921_v27  ;;  %5924 = vmatprep.subr.bf16.mxu0 %v5923_v5 }
 0x4ca   :  { %6180 = vmatprep.subr.bf16.mxu1 %v5923_v5 }
 0x4cc   :  { %5926 = vmatpush1.bf16.msra.mxu0 %v5925_v41 }
 0x4cd   :  { %6182 = vmatpush1.bf16.msra.mxu1 %v5925_v41  ;;  %5928 = vmatprep.subr.bf16.mxu0 %v5927_v24 }
 0x4ce   :  { %6184 = vmatprep.subr.bf16.mxu1 %v5927_v24 }
 0x4d0   :  { %5930 = vmatpush1.bf16.msra.mxu0 %v5929_v38 }
 0x4d1   :  { %6186 = vmatpush1.bf16.msra.mxu1 %v5929_v38  ;;  %5932 = vmatprep.subr.bf16.mxu0 %v5931_v36 }
 0x4d2   :  { %6188 = vmatprep.subr.bf16.mxu1 %v5931_v36 }
 0x4d4   :  { %5934 = vmatpush1.bf16.msra.mxu0 %v5933_v40 }
 0x4d5   :  { %6190 = vmatpush1.bf16.msra.mxu1 %v5933_v40  ;;  %5936 = vmatprep.subr.bf16.mxu0 %v5935_v0 }
 0x4d6   :  { %6192 = vmatprep.subr.bf16.mxu1 %v5935_v0 }
 0x4d8   :  { %5938 = vmatpush1.bf16.msra.mxu0 %v5937_v1 }
 0x4d9   :  { %6194 = vmatpush1.bf16.msra.mxu1 %v5937_v1  ;;  %5940 = vmatprep.subr.bf16.mxu0 %v5939_v39 }
 0x4da   :  { %6196 = vmatprep.subr.bf16.mxu1 %v5939_v39 }
 0x4dc   :  { %5942 = vmatpush1.bf16.msra.mxu0 %v5941_v4 }
 0x4dd   :  { %6198 = vmatpush1.bf16.msra.mxu1 %v5941_v4  ;;  %5944 = vmatprep.subr.bf16.mxu0 %v5943_v33 }
 0x4de   :  { %6200 = vmatprep.subr.bf16.mxu1 %v5943_v33 }
 0x4e0   :  { %5946 = vmatpush1.bf16.msra.mxu0 %v5945_v29 }
 0x4e1   :  { %6202 = vmatpush1.bf16.msra.mxu1 %v5945_v29 }
 0x4e3   :  { %3382 = vmatmul.mubr.f32.vlgmr.msra.gmra.mrb[16].mxu0 %v10346_v35 }
 0x4e4   :  { %3666 = vmatmul.mubr.f32.vlgmr.msra.gmra.mrb[16].mxu1 %v10354_v16  ;;  %3848 = vmatprep.mubr.f32.mxu0 %v12195_v26 }
 0x4e5   :  { %3919 = vmatprep.mubr.f32.mxu1 %v12195_v26 }
 0x5b6   :  { %v10838_v49 = vpop.f32.mrb[16].mxu0 }
 0x5b7   :  { %v10840_v2 = vpop.f32.mrb[16].mxu1  ;;  %v10842_v55 = vpop.f32.mrb[17].mxu0 }
 0x5b8   :  { %v10844_v12 = vpop.f32.mrb[17].mxu1  ;;  %v7175_v17 = vpack.i.bf16 %v10842_v55, %v10838_v49  ;;  %v7195_v35 = vpack.i.bf16 %v10840_v2, %v10842_v55 }
 0x5b9   :  { %v7205_v16 = vpack.i.bf16 %v10844_v12, %v10840_v2  ;;  %v7225_v63 = vpack.i.bf16 %v10844_v12, %v10838_v49 }
 0x5ba   :  { %7176 = vrot.lane.b32.xlu1 %v7175_v17, %s7375_s11  ;;  %7171 = vrot.lane.b32.xlu0 %v7175_v17, %s7376_s23 }
 0x5be   :  { %7186 = vrot.lane.b32.xlu1 %v7175_v17, %s7367_s18  ;;  %7181 = vrot.lane.b32.xlu0 %v7175_v17, %s7377_s0 }
 0x5c2   :  { %7196 = vrot.lane.b32.xlu0 %v7195_v35, %s7378_s24  ;;  %7191 = vrot.lane.b32.xlu1 %v7195_v35, %s7368_s19 }
 0x5c6   :  { %7206 = vrot.lane.b32.xlu1 %v7205_v16, %s7375_s11  ;;  %7201 = vrot.lane.b32.xlu0 %v7205_v16, %s7376_s23 }
 0x5ca   :  { %7216 = vrot.lane.b32.xlu1 %v7205_v16, %s7367_s18  ;;  %7211 = vrot.lane.b32.xlu0 %v7205_v16, %s7377_s0 }
 0x5ce   :  { %7221 = vrot.lane.b32.xlu1 %v7195_v35, %s7379_s25  ;;  %7226 = vrot.lane.b32.xlu0 %v7225_v63, %s7368_s19 }
 0x5d2   :  { %7236 = vrot.lane.b32.xlu1 %v7225_v63, %s7379_s25  ;;  %7231 = vrot.lane.b32.xlu0 %v7225_v63, %s7378_s24 }
 0x5d6   :  { %3767 = vrot.lane.b32.xlu1 %v10844_v12, %s7380_s2  ;;  %3761 = vrot.lane.b32.xlu0 %v10838_v49, %s7380_s2 }
 0x5da   :  { %3765 = vrot.lane.b32.xlu1 %v10840_v2, %s7380_s2  ;;  %3763 = vrot.lane.b32.xlu0 %v10842_v55, %s7380_s2 }
 0x5de   :  { %3778 = vperm.xlu0 %6803, %v3775_v14  }
 0x62c   :  { %v7177_v51 = vpop.permute.xlu1 %7176  ;;  %v7172_v58 = vpop.permute.xlu0 %7171 }
 0x62d   :  { %v7179_v50 = vunpack.i.h.bf16 %v7177_v51  ;;  %v7178_v37 = vunpack.i.l.bf16 %v7177_v51  ;;  %v7174_v42 = vunpack.i.h.bf16 %v7172_v58  ;;  %v7173_v53 = vunpack.i.l.bf16 %v7172_v58 }
 0x62f   :  { %v3683_v3 = vsel %vm3680_vm6, %v7173_v53, %v7174_v42  ;;  %v3696_v62 = vsel %vm3693_vm0, %v7178_v37, %v7179_v50 }
 0x630   :  { %v7187_v6 = vpop.permute.xlu1 %7186  ;;  %v7182_v11 = vpop.permute.xlu0 %7181  ;;  %v6203_v15 = vpack.c.bf16 %v3696_v62, %v3683_v3 }
 0x631   :  { %v7189_v18 = vunpack.i.h.bf16 %v7187_v6  ;;  %v7188_v20 = vunpack.i.l.bf16 %v7187_v6  ;;  %v7184_v9 = vunpack.i.h.bf16 %v7182_v11  ;;  %v7183_v47 = vunpack.i.l.bf16 %v7182_v11 }
 0x632   :  { %6204 = vmatprep.subr.bf16.mxu0 %v6203_v15 }
 0x633   :  { %v3709_v5 = vsel %vm3706_vm15, %v7183_v47, %v7184_v9  ;;  %v3721_v13 = vsel %vm316_vm3, %v7188_v20, %v7189_v18 }
 0x634   :  { %v10885_v32 = vpop.permute.xlu0 %7196  ;;  %v7192_v30 = vpop.permute.xlu1 %7191  ;;  %v6207_v34 = vpack.c.bf16 %v3721_v13, %v3709_v5 }
 0x635   :  { %v7194_v57 = vunpack.i.h.bf16 %v7192_v30  ;;  %v7193_v27 = vunpack.i.l.bf16 %v7192_v30  ;;  %v7199_v39 = vunpack.i.h.bf16 %v10885_v32  ;;  %v7198_v45 = vunpack.i.l.bf16 %v10885_v32 }
 0x637   :  { %v3732_v23 = vsel %vm365_vm5, %v7193_v27, %v7194_v57 }
 0x638   :  { %v7207_v43 = vpop.permute.xlu1 %7206  ;;  %v7202_v46 = vpop.permute.xlu0 %7201  ;;  %v6211_v59 = vpack.c.bf16 %v3732_v23, %v10842_v55 }
 0x639   :  { %v7209_v61 = vunpack.i.h.bf16 %v7207_v43  ;;  %v7208_v41 = vunpack.i.l.bf16 %v7207_v43  ;;  %v7204_v24 = vunpack.i.h.bf16 %v7202_v46  ;;  %v7203_v52 = vunpack.i.l.bf16 %v7202_v46 }
 0x63b   :  { %v3697_v48 = vsel %vm3693_vm0, %v7209_v61, %v7178_v37  ;;  %v3695_v38 = vsel %vm3693_vm0, %v7179_v50, %v7208_v41  ;;  %v3684_v36 = vsel %vm3680_vm6, %v7204_v24, %v7173_v53  ;;  %v3682_v60 = vsel %vm3680_vm6, %v7174_v42, %v7203_v52 }
 0x63c   :  { %v6205_v8 = vpack.c.bf16 %v3697_v48, %v3684_v36  ;;  %v6221_v56 = vpack.c.bf16 %v3695_v38, %v3682_v60  ;;  %v7217_v19 = vpop.permute.xlu1 %7216  ;;  %v7212_v40 = vpop.permute.xlu0 %7211  ;;  %v3681_v0 = vsel %vm3680_vm6, %v7203_v52, %v7204_v24  ;;  %v3694_v44 = vsel %vm3693_vm0, %v7208_v41, %v7209_v61  ;;  %v3774_v36 = vld [vmem:[%s12007_s5] sm:$0xff] }
 0x63d   :  { %v7219_v28 = vunpack.i.h.bf16 %v7217_v19  ;;  %v7218_v10 = vunpack.i.l.bf16 %v7217_v19  ;;  %v7214_v21 = vunpack.i.h.bf16 %v7212_v40  ;;  %v7213_v1 = vunpack.i.l.bf16 %v7212_v40 }
 0x63e   :  { %6206 = vmatpush1.bf16.msra.mxu0 %v6205_v8  ;;  %v6219_v22 = vpack.c.bf16 %v3694_v44, %v3681_v0  ;;  %v3745_v37 = vsel %vm3743_vm1, %v7198_v45, %v7199_v39  ;;  %v50_v8 = vld [vmem:[%s12012_s10] sm:$0xf]  ;;  %v12506_v0 = vld [vmem:[#allocation14_spill] sm:$0xff] }
 0x63f   :  { %v3722_v7 = vsel %vm316_vm3, %v7219_v28, %v7188_v20  ;;  %v3720_v4 = vsel %vm316_vm3, %v7189_v18, %v7218_v10  ;;  %v3710_v33 = vsel %vm3706_vm15, %v7214_v21, %v7183_v47  ;;  %v3708_v25 = vsel %vm3706_vm15, %v7184_v9, %v7213_v1  ;;  %6208 = vmatprep.subr.bf16.mxu0 %v6207_v34 }
 0x640   :  { %v6209_v31 = vpack.c.bf16 %v3722_v7, %v3710_v33  ;;  %v6225_v29 = vpack.c.bf16 %v3720_v4, %v3708_v25  ;;  %6220 = vmatprep.subr.bf16.mxu1 %v6219_v22  ;;  %v7222_v17 = vpop.permute.xlu1 %7221  ;;  %v7227_v35 = vpop.permute.xlu0 %7226  ;;  %v3707_v55 = vsel %vm3706_vm15, %v7213_v1, %v7214_v21  ;;  %v3719_v16 = vsel %vm316_vm3, %v7218_v10, %v7219_v28  ;;  %v12507_v1 = vld [vmem:[#allocation7_spill] sm:$0xff]  ;;  %v12508_v33 = vld [vmem:[#allocation5_spill] sm:$0xff] }
 0x641   :  { %6222 = vmatpush1.bf16.msra.mxu1 %v6221_v56  ;;  %v7224_v63 = vunpack.i.h.bf16 %v7222_v17  ;;  %v7223_v14 = vunpack.i.l.bf16 %v7222_v17  ;;  %v7229_v51 = vunpack.i.h.bf16 %v7227_v35  ;;  %v7228_v58 = vunpack.i.l.bf16 %v7227_v35  ;;  %v12509_v35 = vld [vmem:[#allocation6_spill] sm:$0xff] }
 0x642   :  { %6210 = vmatpush1.bf16.msra.mxu0 %v6209_v31  ;;  %v6223_v50 = vpack.c.bf16 %v3719_v16, %v3707_v55  ;;  %v3934_v44 = vrot.slane %v50_v8, %v12506_v0  ;;  %v3942_v25 = vrot.slane %v50_v8, %v12508_v33  ;;  %v3946_v55 = vrot.slane %v50_v8, %v12509_v35 }
 0x643   :  { %v3731_v42 = vsel %vm365_vm5, %v7194_v57, %v7229_v51  ;;  %v3733_v53 = vsel %vm365_vm5, %v7228_v58, %v7193_v27  ;;  %6212 = vmatprep.subr.bf16.mxu0 %v6211_v59  ;;  %v3734_v3 = vsel %vm365_vm5, %v7229_v51, %v7228_v58  ;;  %v3758_v62 = vsel %vm3756_vm7, %v7223_v14, %v7224_v63 }
 0x644   :  { %v6229_v6 = vpack.c.bf16 %v3731_v42, %v10840_v2  ;;  %v6213_v11 = vpack.c.bf16 %v3733_v53, %v10838_v49  ;;  %6224 = vmatprep.subr.bf16.mxu1 %v6223_v50  ;;  %v7237_v15 = vpop.permute.xlu1 %7236  ;;  %v7232_v18 = vpop.permute.xlu0 %7231  ;;  %v6227_v20 = vpack.c.bf16 %v3734_v3, %v10844_v12  ;;  %v6215_v9 = vpack.c.bf16 %v3758_v62, %v3745_v37  ;;  %v4052_v37 = vld [vmem:[%s12010_s8] sm:$0xff] }
 0x645   :  { %6226 = vmatpush1.bf16.msra.mxu1 %v6225_v29  ;;  %v7239_v47 = vunpack.i.h.bf16 %v7237_v15  ;;  %v7238_v32 = vunpack.i.l.bf16 %v7237_v15  ;;  %v7234_v30 = vunpack.i.h.bf16 %v7232_v18  ;;  %v7233_v57 = vunpack.i.l.bf16 %v7232_v18 }
 0x646   :  { %6214 = vmatpush1.bf16.msra.mxu0 %v6213_v11  ;;  %6228 = vmatprep.subr.bf16.mxu1 %v6227_v20 }
 0x647   :  { %v3757_v27 = vsel %vm3756_vm7, %v7224_v63, %v7239_v47  ;;  %v3759_v2 = vsel %vm3756_vm7, %v7238_v32, %v7223_v14  ;;  %v3744_v49 = vsel %vm3743_vm1, %v7199_v39, %v7234_v30  ;;  %v3746_v12 = vsel %vm3743_vm1, %v7233_v57, %v7198_v45  ;;  %6216 = vmatprep.subr.bf16.mxu0 %v6215_v9 }
 0x648   :  { %v6217_v5 = vpack.c.bf16 %v3759_v2, %v3746_v12  ;;  %v3768_v13 = vpop.permute.xlu1 %3767  ;;  %v3762_v43 = vpop.permute.xlu0 %3761  ;;  %v3747_v46 = vsel %vm3743_vm1, %v7234_v30, %v7233_v57  ;;  %v3760_v61 = vsel %vm3756_vm7, %v7239_v47, %v7238_v32  ;;  %v6233_v41 = vpack.c.bf16 %v3757_v27, %v3744_v49 }
 0x649   :  { %6230 = vmatpush1.bf16.msra.mxu1 %v6229_v6  ;;  %v6231_v24 = vpack.c.bf16 %v3760_v61, %v3747_v46  ;;  %v3773_v48 = vsel %vm3769_vm13, %v3768_v13, %v3762_v43  ;;  %v3938_v39 = vrot.slane %v50_v8, %v12507_v1 }
 0x64a   :  { %6218 = vmatpush1.bf16.msra.mxu0 %v6217_v5 }
 0x64b   :  { %6232 = vmatprep.subr.bf16.mxu1 %v6231_v24 }
 0x64c   :  { %v3766_v52 = vpop.permute.xlu1 %3765  ;;  %v3764_v34 = vpop.permute.xlu0 %3763 }
 0x64d   :  { %6234 = vmatpush1.bf16.msra.mxu1 %v6233_v41  ;;  %v3772_v23 = vsel %vm3769_vm13, %v3762_v43, %v3764_v34  ;;  %v3771_v38 = vsel %vm3769_vm13, %v3764_v34, %v3766_v52  ;;  %v3770_v60 = vsel %vm3769_vm13, %v3766_v52, %v3768_v13 }
 0x64e   :  { %3871 = vmatprep.subr.mxu1 %v3773_v48  ;;  %3800 = vmatprep.subr.mxu0 %v3771_v38 }
 0x64f   :  { %3801 = vmatpush1.msra.mxu0 %v3772_v23 }
 0x650   :  { %5218 = vmatmul.mubr.msk.f32.vlgmr.msra.gmra.mrb[18].mxu0 %vm2068_vm14, %v3774_v36 }
 0x651   :  { %3872 = vmatpush1.msra.mxu1 %v3770_v60  ;;  %4125 = vmatprep.mubr.f32.mxu0 %v12195_v26 }
 0x652   :  { %5219 = vmatmul.mubr.msk.f32.vlgmr.msra.gmra.mrb[18].mxu1 %vm2068_vm14, %v3774_v36 }
 0x653   :  { %4196 = vmatprep.mubr.f32.mxu1 %v12195_v26 }
 0x65d   :  { %v3779_v56 = vpop.permute.xlu0 %3778 }
 0x723   :  { %v3850_v19 = vpop.f32.mrb[18].mxu0 }
 0x724   :  { %v3851_v40 = vadd.f32 %v3850_v19, %v3779_v56  ;;  %v3852_v28 = vpop.f32.mrb[19].mxu0 }
 0x725   :  { %v3921_v10 = vpop.f32.mrb[18].mxu1  ;;  %v3853_v21 = vadd.f32 %v3852_v28, %v3779_v56 }
 0x726   :  { %v3926_v45 = vmax.f32 %v3851_v40, 0.0  ;;  %v3923_v22 = vpop.f32.mrb[19].mxu1  ;;  %v3922_v59 = vadd.f32 %v3921_v10, %v3779_v56 }
 0x727   :  { %v3927_v7 = vmax.f32 %v3853_v21, 0.0  ;;  %v3924_v29 = vadd.f32 %v3923_v22, %v3779_v56 }
 0x728   :  { %v10969_v4 = vmul.f32 %v3934_v44, %v3926_v45  ;;  %v3928_v31 = vmax.f32 %v3922_v59, 0.0 }
 0x729   :  { %v10971_v26 = vmul.f32 %v3938_v39, %v3927_v7  ;;  %v3929_v63 = vmax.f32 %v3924_v29, 0.0 }
 0x72a   :  { %v10979_v16 = vmul.f32 %v3942_v25, %v3928_v31 }
 0x72b   :  { %v7245_v17 = vpack.i.bf16 %v10971_v26, %v10969_v4  ;;  %v10983_v14 = vmul.f32 %v3946_v55, %v3929_v63 }
 0x72c   :  { %v7265_v51 = vpack.i.bf16 %v10979_v16, %v10971_v26 }
 0x72d   :  { %7246 = vrot.lane.b32.xlu0 %v7245_v17, %s7375_s11  ;;  %7241 = vrot.lane.b32.xlu1 %v7245_v17, %s7376_s23  ;;  %v7270_v58 = vpack.i.bf16 %v10983_v14, %v10979_v16  ;;  %v7295_v50 = vpack.i.bf16 %v10983_v14, %v10969_v4 }
 0x731   :  { %7256 = vrot.lane.b32.xlu0 %v7245_v17, %s7367_s18  ;;  %7251 = vrot.lane.b32.xlu1 %v7245_v17, %s7377_s0 }
 0x735   :  { %7266 = vrot.lane.b32.xlu1 %v7265_v51, %s7378_s24  ;;  %7261 = vrot.lane.b32.xlu0 %v7265_v51, %s7368_s19 }
 0x739   :  { %7271 = vrot.lane.b32.xlu1 %v7270_v58, %s7376_s23  ;;  %7276 = vrot.lane.b32.xlu0 %v7270_v58, %s7375_s11 }
 0x73d   :  { %7281 = vrot.lane.b32.xlu1 %v7270_v58, %s7377_s0  ;;  %7286 = vrot.lane.b32.xlu0 %v7270_v58, %s7367_s18 }
 0x741   :  { %7296 = vrot.lane.b32.xlu1 %v7295_v50, %s7368_s19  ;;  %7291 = vrot.lane.b32.xlu0 %v7265_v51, %s7379_s25 }
 0x745   :  { %7301 = vrot.lane.b32.xlu1 %v7295_v50, %s7378_s24  ;;  %7306 = vrot.lane.b32.xlu0 %v7295_v50, %s7379_s25 }
 0x749   :  { %4039 = vrot.lane.b32.xlu1 %v10969_v4, %s7380_s2  ;;  %4045 = vrot.lane.b32.xlu0 %v10983_v14, %s7380_s2 }
 0x74d   :  { %4041 = vrot.lane.b32.xlu1 %v10971_v26, %s7380_s2  ;;  %4043 = vrot.lane.b32.xlu0 %v10979_v16, %s7380_s2 }
 0x751   :  { %4055 = vperm.xlu1 %7049, %v4052_v37  }
 0x79f   :  { %v7247_v42 = vpop.permute.xlu0 %7246  ;;  %v7242_v53 = vpop.permute.xlu1 %7241 }
 0x7a0   :  { %v7249_v3 = vunpack.i.h.bf16 %v7247_v42  ;;  %v7248_v62 = vunpack.i.l.bf16 %v7247_v42  ;;  %v7244_v6 = vunpack.i.h.bf16 %v7242_v53  ;;  %v7243_v11 = vunpack.i.l.bf16 %v7242_v53 }
 0x7a2   :  { %v3965_v15 = vsel %vm3680_vm6, %v7243_v11, %v7244_v6  ;;  %v3977_v18 = vsel %vm3693_vm0, %v7248_v62, %v7249_v3 }
 0x7a3   :  { %v7257_v20 = vpop.permute.xlu0 %7256  ;;  %v7252_v9 = vpop.permute.xlu1 %7251  ;;  %v6235_v47 = vpack.c.bf16 %v3977_v18, %v3965_v15 }
 0x7a4   :  { %v7259_v32 = vunpack.i.h.bf16 %v7257_v20  ;;  %v7258_v30 = vunpack.i.l.bf16 %v7257_v20  ;;  %v7254_v57 = vunpack.i.h.bf16 %v7252_v9  ;;  %v7253_v27 = vunpack.i.l.bf16 %v7252_v9 }
 0x7a5   :  { %6236 = vmatprep.subr.bf16.mxu0 %v6235_v47 }
 0x7a6   :  { %v3989_v13 = vsel %vm3706_vm15, %v7253_v27, %v7254_v57  ;;  %v4001_v43 = vsel %vm316_vm3, %v7258_v30, %v7259_v32 }
 0x7a7   :  { %v11016_v2 = vpop.permute.xlu1 %7266  ;;  %v7262_v49 = vpop.permute.xlu0 %7261  ;;  %v6239_v23 = vpack.c.bf16 %v4001_v43, %v3989_v13 }
 0x7a8   :  { %v7264_v12 = vunpack.i.h.bf16 %v7262_v49  ;;  %v7263_v5 = vunpack.i.l.bf16 %v7262_v49  ;;  %v7269_v45 = vunpack.i.h.bf16 %v11016_v2  ;;  %v7268_v22 = vunpack.i.l.bf16 %v11016_v2 }
 0x7aa   :  { %v4012_v48 = vsel %vm365_vm5, %v7263_v5, %v7264_v12 }
 0x7ab   :  { %v7272_v46 = vpop.permute.xlu1 %7271  ;;  %v7277_v61 = vpop.permute.xlu0 %7276  ;;  %v6243_v7 = vpack.c.bf16 %v4012_v48, %v10971_v26 }
 0x7ac   :  { %v7274_v41 = vunpack.i.h.bf16 %v7272_v46  ;;  %v7273_v24 = vunpack.i.l.bf16 %v7272_v46  ;;  %v7279_v52 = vunpack.i.h.bf16 %v7277_v61  ;;  %v7278_v34 = vunpack.i.l.bf16 %v7277_v61 }
 0x7ae   :  { %v3966_v38 = vsel %vm3680_vm6, %v7274_v41, %v7243_v11  ;;  %v3964_v36 = vsel %vm3680_vm6, %v7244_v6, %v7273_v24  ;;  %v3978_v60 = vsel %vm3693_vm0, %v7279_v52, %v7248_v62  ;;  %v3976_v8 = vsel %vm3693_vm0, %v7249_v3, %v7278_v34 }
 0x7af   :  { %v6237_v56 = vpack.c.bf16 %v3978_v60, %v3966_v38  ;;  %v6253_v19 = vpack.c.bf16 %v3976_v8, %v3964_v36  ;;  %v7282_v40 = vpop.permute.xlu1 %7281  ;;  %v7287_v0 = vpop.permute.xlu0 %7286  ;;  %v3963_v44 = vsel %vm3680_vm6, %v7273_v24, %v7274_v41  ;;  %v3975_v28 = vsel %vm3693_vm0, %v7278_v34, %v7279_v52  ;;  %v4051_v36 = vld [vmem:[%s12009_s7] sm:$0xff] }
 0x7b0   :  { %v7284_v10 = vunpack.i.h.bf16 %v7282_v40  ;;  %v7283_v21 = vunpack.i.l.bf16 %v7282_v40  ;;  %v7289_v1 = vunpack.i.h.bf16 %v7287_v0  ;;  %v7288_v39 = vunpack.i.l.bf16 %v7287_v0  ;;  %v4363_v8 = vld [vmem:[%s12014_s12 + $0x80] sm:$0xff]  ;;  %v4348_v0 = vld [vmem:[%s12014_s12 + $0x8] sm:$0xff] }
 0x7b1   :  { %6238 = vmatpush1.bf16.msra.mxu0 %v6237_v56  ;;  %v6251_v59 = vpack.c.bf16 %v3975_v28, %v3963_v44  ;;  %v4024_v3 = vsel %vm3743_vm1, %v7268_v22, %v7269_v45  ;;  %v4364_v56 = vld [vmem:[%s12014_s12 + $0x88] sm:$0xff]  ;;  %v4395_v44 = vld [vmem:[%s12014_s12 + $0x180] sm:$0xff] }
 0x7b2   :  { %v3990_v33 = vsel %vm3706_vm15, %v7284_v10, %v7253_v27  ;;  %v3988_v25 = vsel %vm3706_vm15, %v7254_v57, %v7283_v21  ;;  %v4002_v31 = vsel %vm316_vm3, %v7289_v1, %v7258_v30  ;;  %v4000_v29 = vsel %vm316_vm3, %v7259_v32, %v7288_v39  ;;  %6240 = vmatprep.subr.bf16.mxu0 %v6239_v23  ;;  %v4396_v28 = vld [vmem:[%s12014_s12 + $0x188] sm:$0xff] }
 0x7b3   :  { %v6241_v17 = vpack.c.bf16 %v4002_v31, %v3990_v33  ;;  %v6257_v35 = vpack.c.bf16 %v4000_v29, %v3988_v25  ;;  %6252 = vmatprep.subr.bf16.mxu1 %v6251_v59  ;;  %v7297_v55 = vpop.permute.xlu1 %7296  ;;  %v7292_v63 = vpop.permute.xlu0 %7291  ;;  %v3987_v26 = vsel %vm3706_vm15, %v7283_v21, %v7284_v10  ;;  %v3999_v51 = vsel %vm316_vm3, %v7288_v39, %v7289_v1  ;;  %v4379_v1 = vld [vmem:[%s12014_s12 + $0x100] sm:$0xff]  ;;  %v4380_v39 = vld [vmem:[%s12014_s12 + $0x108] sm:$0xff]  ;;  %v4366_v59 = vld [vmem:[%s12014_s12 + $0x98] sm:$0xff] }
 0x7b4   :  { %6254 = vmatpush1.bf16.msra.mxu1 %v6253_v19  ;;  %v7299_v58 = vunpack.i.h.bf16 %v7297_v55  ;;  %v7298_v50 = vunpack.i.l.bf16 %v7297_v55  ;;  %v7294_v37 = vunpack.i.h.bf16 %v7292_v63  ;;  %v7293_v42 = vunpack.i.l.bf16 %v7292_v63  ;;  %v4347_v19 = vld [vmem:[%s12014_s12] sm:$0xff]  ;;  %v4350_v33 = vld [vmem:[%s12014_s12 + $0x18] sm:$0xff]  ;;  %v4397_v29 = vld [vmem:[%s12014_s12 + $0x190] sm:$0xff] }
 0x7b5   :  { %6242 = vmatpush1.bf16.msra.mxu0 %v6241_v17  ;;  %v6255_v53 = vpack.c.bf16 %v3999_v51, %v3987_v26  ;;  %v6267_v40 = vpack.c.bf16 %v4364_v56, %v4363_v8  ;;  %v6269_v10 = vpack.c.bf16 %v4348_v0, %v4347_v19  ;;  %v6299_v21 = vpack.c.bf16 %v4396_v28, %v4395_v44  ;;  %v4398_v17 = vld [vmem:[%s12014_s12 + $0x198] sm:$0xff]  ;;  %v4367_v26 = vld [vmem:[%s12014_s12 + $0xa0] sm:$0xff]  ;;  %v4368_v51 = vld [vmem:[%s12014_s12 + $0xa8] sm:$0xff] }
 0x7b6   :  { %v4011_v62 = vsel %vm365_vm5, %v7264_v12, %v7299_v58  ;;  %v4013_v6 = vsel %vm365_vm5, %v7298_v50, %v7263_v5  ;;  %6244 = vmatprep.subr.bf16.mxu0 %v6243_v7  ;;  %v4014_v11 = vsel %vm365_vm5, %v7299_v58, %v7298_v50  ;;  %v4036_v15 = vsel %vm3756_vm7, %v7293_v42, %v7294_v37  ;;  %v4349_v7 = vld [vmem:[%s12014_s12 + $0x10] sm:$0xff]  ;;  %v4382_v63 = vld [vmem:[%s12014_s12 + $0x118] sm:$0xff] }
 0x7b7   :  { %v6245_v18 = vpack.c.bf16 %v4013_v6, %v10969_v4  ;;  %v6261_v20 = vpack.c.bf16 %v4011_v62, %v10979_v16  ;;  %6256 = vmatprep.subr.bf16.mxu1 %v6255_v53  ;;  %v7302_v9 = vpop.permute.xlu1 %7301  ;;  %v7307_v47 = vpop.permute.xlu0 %7306  ;;  %v6259_v32 = vpack.c.bf16 %v4014_v11, %v10983_v14  ;;  %v6247_v30 = vpack.c.bf16 %v4036_v15, %v4024_v3  ;;  %v4399_v53 = vld [vmem:[%s12014_s12 + $0x1a0] sm:$0xff]  ;;  %v4400_v3 = vld [vmem:[%s12014_s12 + $0x1a8] sm:$0xff]  ;;  %v4373_v56 = vld [vmem:[%s12014_s12 + $0xd0] sm:$0xff] }
 0x7b8   :  { %6258 = vmatpush1.bf16.msra.mxu1 %v6257_v35  ;;  %v7304_v57 = vunpack.i.h.bf16 %v7302_v9  ;;  %v7303_v27 = vunpack.i.l.bf16 %v7302_v9  ;;  %v7309_v2 = vunpack.i.h.bf16 %v7307_v47  ;;  %v7308_v49 = vunpack.i.l.bf16 %v7307_v47  ;;  %v4381_v35 = vld [vmem:[%s12014_s12 + $0x110] sm:$0xff]  ;;  %v4383_v62 = vld [vmem:[%s12014_s12 + $0x120] sm:$0xff]  ;;  %v4384_v6 = vld [vmem:[%s12014_s12 + $0x128] sm:$0xff] }
 0x7b9   :  { %6246 = vmatpush1.bf16.msra.mxu0 %v6245_v18  ;;  %6260 = vmatprep.subr.bf16.mxu1 %v6259_v32  ;;  %v6273_v31 = vpack.c.bf16 %v4350_v33, %v4349_v7  ;;  %v6303_v55 = vpack.c.bf16 %v4398_v17, %v4397_v29  ;;  %v6305_v58 = vpack.c.bf16 %v4382_v63, %v4381_v35  ;;  %v4369_v18 = vld [vmem:[%s12014_s12 + $0xb0] sm:$0xff]  ;;  %v4374_v19 = vld [vmem:[%s12014_s12 + $0xd8] sm:$0xff]  ;;  %v4376_v63 = vld [vmem:[%s12014_s12 + $0xe8] sm:$0xff]  ;;  %vm5170_vm3 = vcmask 74752  }
 0x7ba   :  { %v4023_v12 = vsel %vm3743_vm1, %v7269_v45, %v7304_v57  ;;  %v4025_v4 = vsel %vm3743_vm1, %v7303_v27, %v7268_v22  ;;  %v4035_v16 = vsel %vm3756_vm7, %v7294_v37, %v7309_v2  ;;  %v4037_v14 = vsel %vm3756_vm7, %v7308_v49, %v7293_v42  ;;  %6248 = vmatprep.subr.bf16.mxu0 %v6247_v30  ;;  %v4365_v45 = vld [vmem:[%s12014_s12 + $0x90] sm:$0xff]  ;;  %v4351_v37 = vld [vmem:[%s12014_s12 + $0x20] sm:$0xff]  ;;  %v4352_v42 = vld [vmem:[%s12014_s12 + $0x28] sm:$0xff] }
 0x7bb   :  { %v6249_v5 = vpack.c.bf16 %v4037_v14, %v4025_v4  ;;  %v4040_v13 = vpop.permute.xlu1 %4039  ;;  %v4046_v43 = vpop.permute.xlu0 %4045  ;;  %v4026_v46 = vsel %vm3743_vm1, %v7304_v57, %v7303_v27  ;;  %v4038_v61 = vsel %vm3756_vm7, %v7309_v2, %v7308_v49  ;;  %v6265_v41 = vpack.c.bf16 %v4035_v16, %v4023_v12  ;;  %v4353_v9 = vld [vmem:[%s12014_s12 + $0x30] sm:$0xff]  ;;  %v4354_v30 = vld [vmem:[%s12014_s12 + $0x38] sm:$0xff]  ;;  %v4371_v14 = vld [vmem:[%s12014_s12 + $0xc0] sm:$0xff] }
 0x7bc   :  { %6262 = vmatpush1.bf16.msra.mxu1 %v6261_v20  ;;  %v6263_v24 = vpack.c.bf16 %v4038_v61, %v4026_v46  ;;  %v4050_v48 = vsel %vm3769_vm13, %v4046_v43, %v4040_v13  ;;  %v6301_v22 = vpack.c.bf16 %v4380_v39, %v4379_v1  ;;  %v6271_v25 = vpack.c.bf16 %v4366_v59, %v4365_v45  ;;  %v4370_v20 = vld [vmem:[%s12014_s12 + $0xb8] sm:$0xff]  ;;  %v4401_v57 = vld [vmem:[%s12014_s12 + $0x1b0] sm:$0xff]  ;;  %v4356_v46 = vld [vmem:[%s12014_s12 + $0x48] sm:$0xff] }
 0x7bd   :  { %6250 = vmatpush1.bf16.msra.mxu0 %v6249_v5  ;;  %v6275_v50 = vpack.c.bf16 %v4368_v51, %v4367_v26  ;;  %v6277_v11 = vpack.c.bf16 %v4352_v42, %v4351_v37  ;;  %v6307_v15 = vpack.c.bf16 %v4400_v3, %v4399_v53  ;;  %v6309_v47 = vpack.c.bf16 %v4384_v6, %v4383_v62  ;;  %v4402_v27 = vld [vmem:[%s12014_s12 + $0x1b8] sm:$0xff]  ;;  %v4385_v49 = vld [vmem:[%s12014_s12 + $0x130] sm:$0xff]  ;;  %v4372_v5 = vld [vmem:[%s12014_s12 + $0xc8] sm:$0xff] }
 0x7be   :  { %6264 = vmatprep.subr.bf16.mxu1 %v6263_v24  ;;  %v6279_v32 = vpack.c.bf16 %v4370_v20, %v4369_v18  ;;  %v6311_v2 = vpack.c.bf16 %v4402_v27, %v4401_v57  ;;  %v4386_v12 = vld [vmem:[%s12014_s12 + $0x138] sm:$0xff]  ;;  %v6281_v4 = vpack.c.bf16 %v4354_v30, %v4353_v9  ;;  %v4403_v61 = vld [vmem:[%s12014_s12 + $0x1c0] sm:$0xff]  ;;  %v4404_v24 = vld [vmem:[%s12014_s12 + $0x1c8] sm:$0xff]  ;;  %v6287_v44 = vpack.c.bf16 %v4374_v19, %v4373_v56 }
 0x7bf   :  { %v4042_v52 = vpop.permute.xlu1 %4041  ;;  %v4044_v34 = vpop.permute.xlu0 %4043  ;;  %v6313_v16 = vpack.c.bf16 %v4386_v12, %v4385_v49  ;;  %v4357_v28 = vld [vmem:[%s12014_s12 + $0x50] sm:$0xff]  ;;  %v4406_v59 = vld [vmem:[%s12014_s12 + $0x1d8] sm:$0xff]  ;;  %v4407_v37 = vld [vmem:[%s12014_s12 + $0x1e0] sm:$0xff] }
 0x7c0   :  { %6266 = vmatpush1.bf16.msra.mxu1 %v6265_v41  ;;  %v4049_v23 = vsel %vm3769_vm13, %v4040_v13, %v4042_v52  ;;  %v4048_v38 = vsel %vm3769_vm13, %v4042_v52, %v4044_v34  ;;  %v4047_v60 = vsel %vm3769_vm13, %v4044_v34, %v4046_v43  ;;  %v6283_v13 = vpack.c.bf16 %v4372_v5, %v4371_v14  ;;  %v4355_v43 = vld [vmem:[%s12014_s12 + $0x40] sm:$0xff]  ;;  %v4388_v34 = vld [vmem:[%s12014_s12 + $0x148] sm:$0xff]  ;;  %v4389_v7 = vld [vmem:[%s12014_s12 + $0x150] sm:$0xff] }
 0x7c1   :  { %4148 = vmatprep.subr.mxu1 %v4050_v48  ;;  %4077 = vmatprep.subr.mxu0 %v4048_v38  ;;  %v6285_v41 = vpack.c.bf16 %v4356_v46, %v4355_v43  ;;  %v4387_v52 = vld [vmem:[%s12014_s12 + $0x140] sm:$0xff]  ;;  %v6315_v38 = vpack.c.bf16 %v4404_v24, %v4403_v61  ;;  %v4390_v33 = vld [vmem:[%s12014_s12 + $0x158] sm:$0xff]  ;;  %v4408_v3 = vld [vmem:[%s12014_s12 + $0x1e8] sm:$0xff] }
 0x7c2   :  { %4078 = vmatpush1.msra.mxu0 %v4049_v23  ;;  %v6321_v17 = vpack.c.bf16 %v4390_v33, %v4389_v7  ;;  %v4391_v62 = vld [vmem:[%s12014_s12 + $0x160] sm:$0xff]  ;;  %v4392_v6 = vld [vmem:[%s12014_s12 + $0x168] sm:$0xff]  ;;  %v4377_v20 = vld [vmem:[%s12014_s12 + $0xf0] sm:$0xff] }
 0x7c3   :  { %5220 = vmatmul.mubr.msk.f32.vlgmr.msra.gmra.mrb[20].mxu0 %vm2068_vm14, %v4051_v36  ;;  %6268 = vmatprep.subr.bf16.mxu0 %v6267_v40  ;;  %v6325_v18 = vpack.c.bf16 %v4392_v6, %v4391_v62  ;;  %v4378_v9 = vld [vmem:[%s12014_s12 + $0xf8] sm:$0xff]  ;;  %v4409_v57 = vld [vmem:[%s12014_s12 + $0x1f0] sm:$0xff]  ;;  %v4427_v14 = vld [vmem:[%s12014_s12 + $0x280] sm:$0xff] }
 0x7c4   :  { %4149 = vmatpush1.msra.mxu1 %v4047_v60  ;;  %6270 = vmatpush3.bf16.msra.mxu0 %v6269_v10  ;;  %v4358_v10 = vld [vmem:[%s12014_s12 + $0x58] sm:$0xff]  ;;  %v4393_v49 = vld [vmem:[%s12014_s12 + $0x170] sm:$0xff]  ;;  %v4428_v5 = vld [vmem:[%s12014_s12 + $0x288] sm:$0xff] }
 0x7c5   :  { %5221 = vmatmul.mubr.msk.f32.vlgmr.msra.gmra.mrb[20].mxu1 %vm2068_vm14, %v4051_v36  ;;  %6300 = vmatprep.subr.bf16.mxu1 %v6299_v21  ;;  %v6317_v36 = vpack.c.bf16 %v4388_v34, %v4387_v52  ;;  %v4405_v21 = vld [vmem:[%s12014_s12 + $0x1d0] sm:$0xff]  ;;  %v4362_v30 = vld [vmem:[%s12014_s12 + $0x78] sm:$0xff]  ;;  %v4459_v43 = vld [vmem:[%s12014_s12 + $0x380] sm:$0xff] }
 0x7c6   :  { %6302 = vmatpush3.bf16.msra.mxu1 %v6301_v22  ;;  %6272 = vmatprep.subr.bf16.mxu0 %v6271_v25  ;;  %v6289_v22 = vpack.c.bf16 %v4358_v10, %v4357_v28  ;;  %v6319_v29 = vpack.c.bf16 %v4406_v59, %v4405_v21  ;;  %v4394_v12 = vld [vmem:[%s12014_s12 + $0x178] sm:$0xff]  ;;  %v4460_v46 = vld [vmem:[%s12014_s12 + $0x388] sm:$0xff] }
 0x7c7   :  { %6304 = vmatprep.subr.bf16.mxu1 %v6303_v55  ;;  %v4375_v55 = vld [vmem:[%s12014_s12 + $0xe0] sm:$0xff]  ;;  %v6363_v61 = vpack.c.bf16 %v4460_v46, %v4459_v43 }
 0x7c8   :  { %6274 = vmatpush3.bf16.msra.mxu0 %v6273_v31  ;;  %v6291_v51 = vpack.c.bf16 %v4376_v63, %v4375_v55 }
 0x7c9   :  { %6276 = vmatprep.subr.bf16.mxu0 %v6275_v50  ;;  %v4360_v50 = vld [vmem:[%s12014_s12 + $0x68] sm:$0xff] }
 0x7ca   :  { %6306 = vmatpush3.bf16.msra.mxu1 %v6305_v58  ;;  %v4359_v58 = vld [vmem:[%s12014_s12 + $0x60] sm:$0xff] }
 0x7cb   :  { %6308 = vmatprep.subr.bf16.mxu1 %v6307_v15  ;;  %v6293_v53 = vpack.c.bf16 %v4360_v50, %v4359_v58  ;;  %v6323_v15 = vpack.c.bf16 %v4408_v3, %v4407_v37  ;;  %v4411_v3 = vld [vmem:[%s12014_s12 + $0x200] sm:$0xff] }
 0x7cc   :  { %6278 = vmatpush3.bf16.msra.mxu0 %v6277_v11 }
 0x7cd   :  { %6280 = vmatprep.subr.bf16.mxu0 %v6279_v32  ;;  %v4361_v32 = vld [vmem:[%s12014_s12 + $0x70] sm:$0xff] }
 0x7ce   :  { %6310 = vmatpush3.bf16.msra.mxu1 %v6309_v47  ;;  %v6295_v47 = vpack.c.bf16 %v4378_v9, %v4377_v20  ;;  %v6297_v27 = vpack.c.bf16 %v4362_v30, %v4361_v32  ;;  %v4429_v9 = vld [vmem:[%s12014_s12 + $0x290] sm:$0xff] }
 0x7cf   :  { %6312 = vmatprep.subr.bf16.mxu1 %v6311_v2  ;;  %v4410_v2 = vld [vmem:[%s12014_s12 + $0x1f8] sm:$0xff] }
 0x7d0   :  { %6282 = vmatpush3.bf16.msra.mxu0 %v6281_v4  ;;  %v4056_v23 = vpop.permute.xlu1 %4055  ;;  %v6327_v4 = vpack.c.bf16 %v4410_v2, %v4409_v57  ;;  %v4413_v57 = vld [vmem:[%s12014_s12 + $0x210] sm:$0xff] }
 0x7d1   :  { %6284 = vmatprep.subr.bf16.mxu0 %v6283_v13  ;;  %v6331_v13 = vpack.c.bf16 %v4428_v5, %v4427_v14  ;;  %v4461_v2 = vld [vmem:[%s12014_s12 + $0x390] sm:$0xff]  ;;  %v4462_v14 = vld [vmem:[%s12014_s12 + $0x398] sm:$0xff] }
 0x7d2   :  { %6314 = vmatpush3.bf16.msra.mxu1 %v6313_v16  ;;  %v6329_v16 = vpack.c.bf16 %v4394_v12, %v4393_v49  ;;  %v4445_v5 = vld [vmem:[%s12014_s12 + $0x310] sm:$0xff] }
 0x7d3   :  { %6316 = vmatprep.subr.bf16.mxu1 %v6315_v38 }
 0x7d4   :  { %6286 = vmatpush3.bf16.msra.mxu0 %v6285_v41 }
 0x7d5   :  { %6288 = vmatprep.subr.bf16.mxu0 %v6287_v44 }
 0x7d6   :  { %6318 = vmatpush3.bf16.msra.mxu1 %v6317_v36 }
 0x7d7   :  { %6320 = vmatprep.subr.bf16.mxu1 %v6319_v29 }
 0x7d8   :  { %6290 = vmatpush3.bf16.msra.mxu0 %v6289_v22 }
 0x7d9   :  { %6292 = vmatprep.subr.bf16.mxu0 %v6291_v51 }
 0x7da   :  { %6322 = vmatpush3.bf16.msra.mxu1 %v6321_v17 }
 0x7db   :  { %6324 = vmatprep.subr.bf16.mxu1 %v6323_v15  ;;  %v4443_v15 = vld [vmem:[%s12014_s12 + $0x300] sm:$0xff] }
 0x7dc   :  { %6294 = vmatpush3.bf16.msra.mxu0 %v6293_v53  ;;  %v6365_v30 = vpack.c.bf16 %v4444_v54, %v4443_v15 }
 0x7dd   :  { %6296 = vmatprep.subr.bf16.mxu0 %v6295_v47  ;;  %v4430_v47 = vld [vmem:[%s12014_s12 + $0x298] sm:$0xff] }
 0x7de   :  { %6326 = vmatpush3.bf16.msra.mxu1 %v6325_v18 }
 0x7df   :  { %6328 = vmatprep.subr.bf16.mxu1 %v6327_v4 }
 0x7e0   :  { %6298 = vmatpush3.bf16.msra.mxu0 %v6297_v27  ;;  %v4414_v27 = vld [vmem:[%s12014_s12 + $0x218] sm:$0xff] }
 0x7e1   :  { %6332 = vmatprep.subr.bf16.mxu0 %v6331_v13  ;;  %v4446_v13 = vld [vmem:[%s12014_s12 + $0x318] sm:$0xff] }
 0x7e2   :  { %6330 = vmatpush3.bf16.msra.mxu1 %v6329_v16 }
 0x7e3   :  { %6364 = vmatprep.subr.bf16.mxu1 %v6363_v61 }
 0x896   :  { %v4127_v48 = vpop.f32.mrb[20].mxu0 }
 0x897   :  { %v11209_v60 = vadd.f32 %v4127_v48, %v4056_v23  ;;  %v4129_v8 = vpop.f32.mrb[21].mxu0 }
 0x898   :  { %v4198_v40 = vpop.f32.mrb[20].mxu1  ;;  %v11217_v0 = vadd.f32 %v4129_v8, %v4056_v23 }
 0x899   :  { %v4203_v1 = vmax.f32 %v11209_v60, 0.0  ;;  %v11229_v39 = vadd.f32 %v4198_v40, %v4056_v23  ;;  %v4200_v45 = vpop.f32.mrb[21].mxu1 }
 0x89a   :  { %v4204_v25 = vmax.f32 %v11217_v0, 0.0  ;;  %v11241_v31 = vadd.f32 %v4200_v45, %v4056_v23 }
 0x89b   :  { %v4205_v35 = vmax.f32 %v11229_v39, 0.0 }
 0x89c   :  { %v4206_v26 = vmax.f32 %v11241_v31, 0.0 }
 0x89d   :  { %v7310_v42 = vpack.i.bf16 %v4204_v25, %v4205_v35 }
 0x89e   :  { %v7315_v11 = vpack.i.bf16 %v4206_v26, %v4203_v1 }
 0x89f   :  { %7311 = vrot.lane.b32.xlu1 %v7310_v42, %s7368_s19 }
 0x8a0   :  { %7316 = vrot.lane.b32.xlu0 %v7315_v11, %s7368_s19 }
 0x8a3   :  { %7321 = vrot.lane.b32.xlu1 %v7315_v11, %s7379_s25 }
 0x8a4   :  { %7326 = vrot.lane.b32.xlu0 %v7315_v11, %s7380_s2 }
 0x8a7   :  { %7336 = vrot.lane.b32.xlu1 %v7310_v42, %s7380_s2 }
 0x8a8   :  { %7331 = vrot.lane.b32.xlu0 %v7310_v42, %s7379_s25 }
 0x911   :  { %v7312_v41 = vpop.permute.xlu1 %7311 }
 0x912   :  { %v7317_v24 = vpop.permute.xlu0 %7316  ;;  %v7314_v23 = vunpack.i.h.bf16 %v7312_v41  ;;  %v7313_v48 = vunpack.i.l.bf16 %v7312_v41  ;;  %v6335_v41 = vpack.c.bf16 %v4430_v47, %v4429_v9  ;;  %v4417_v9 = vld [vmem:[%s12014_s12 + $0x230] sm:$0xff]  ;;  %v4418_v47 = vld [vmem:[%s12014_s12 + $0x238] sm:$0xff] }
 0x913   :  { %v7319_v52 = vunpack.i.h.bf16 %v7317_v24  ;;  %v7318_v34 = vunpack.i.l.bf16 %v7317_v24  ;;  %v4431_v24 = vld [vmem:[%s12014_s12 + $0x2a0] sm:$0xff] }
 0x914   :  { %v4216_v28 = vsel %vm365_vm5, %v7314_v23, %v7313_v48 }
 0x915   :  { %v7322_v38 = vpop.permute.xlu1 %7321  ;;  %v4218_v56 = vsel %vm365_vm5, %v7319_v52, %v7318_v34  ;;  %v4215_v10 = vsel %vm365_vm5, %v7313_v48, %v7319_v52  ;;  %v4220_v55 = vmax.f32 %v4204_v25, %v4216_v28  ;;  %v4217_v63 = vsel %vm365_vm5, %v7318_v34, %v7314_v23  ;;  %v4432_v52 = vld [vmem:[%s12014_s12 + $0x2a8] sm:$0xff] }
 0x916   :  { %v7324_v36 = vunpack.i.h.bf16 %v7322_v38  ;;  %v7327_v8 = vpop.permute.xlu0 %7326  ;;  %v7323_v19 = vunpack.i.l.bf16 %v7322_v38  ;;  %v4222_v59 = vmax.f32 %v4206_v26, %v4218_v56  ;;  %v4221_v0 = vmax.f32 %v4205_v35, %v4215_v10  ;;  %v4412_v35 = vld [vmem:[%s12014_s12 + $0x208] sm:$0xff] }
 0x917   :  { %v7329_v40 = vunpack.i.h.bf16 %v7327_v8  ;;  %v7328_v44 = vunpack.i.l.bf16 %v7327_v8  ;;  %v4219_v62 = vmax.f32 %v4203_v1, %v4217_v63  ;;  %v6333_v32 = vpack.c.bf16 %v4412_v35, %v4411_v3 }
 0x918   :  { %v4234_v21 = vsel %vm3756_vm7, %v7324_v36, %v7323_v19  ;;  %v6337_v38 = vpack.c.bf16 %v4414_v27, %v4413_v57  ;;  %v6367_v56 = vpack.c.bf16 %v4462_v14, %v4461_v2  ;;  %v6339_v28 = vpack.c.bf16 %v4432_v52, %v4431_v24  ;;  %v4450_v27 = vld [vmem:[%s12014_s12 + $0x338] sm:$0xff]  ;;  %v4435_v2 = vld [vmem:[%s12014_s12 + $0x2c0] sm:$0xff]  ;;  %v4452_v24 = vld [vmem:[%s12014_s12 + $0x348] sm:$0xff] }
 0x919   :  { %v4246_v45 = vsel %vm3769_vm13, %v7329_v40, %v7328_v44  ;;  %v7337_v22 = vpop.permute.xlu1 %7336  ;;  %v6345_v14 = vpack.c.bf16 %v4418_v47, %v4417_v9  ;;  %v4437_v52 = vld [vmem:[%s12014_s12 + $0x2d0] sm:$0xff]  ;;  %v4492_v9 = vld [vmem:[%s12014_s12 + $0x488] sm:$0xff]  ;;  %v4523_v47 = vld [vmem:[%s12014_s12 + $0x580] sm:$0xff] }
 0x91a   :  { %v4250_v7 = vmax.f32 %v4234_v21, %v4246_v45  ;;  %v7339_v33 = vunpack.i.h.bf16 %v7337_v22  ;;  %v7338_v29 = vunpack.i.l.bf16 %v7337_v22  ;;  %v7332_v17 = vpop.permute.xlu0 %7331 }
 0x91b   :  { %v7334_v51 = vunpack.i.h.bf16 %v7332_v17  ;;  %v7333_v58 = vunpack.i.l.bf16 %v7332_v17 }
 0x91c   :  { %v11335_v50 = vmax.f32 %v4222_v59, %v4250_v7  ;;  %v4243_v37 = vsel %vm3769_vm13, %v7338_v29, %v7329_v40  ;;  %v4244_v31 = vsel %vm3769_vm13, %v7339_v33, %v7338_v29  ;;  %v4245_v26 = vsel %vm3769_vm13, %v7328_v44, %v7339_v33  ;;  %v4463_v40 = vld [vmem:[%s12014_s12 + $0x3a0] sm:$0xff]  ;;  %v4464_v44 = vld [vmem:[%s12014_s12 + $0x3a8] sm:$0xff] }
 0x91d   :  { %v4233_v25 = vsel %vm3756_vm7, %v7323_v19, %v7334_v51  ;;  %v4231_v42 = vsel %vm3756_vm7, %v7333_v58, %v7324_v36  ;;  %v4232_v53 = vsel %vm3756_vm7, %v7334_v51, %v7333_v58  ;;  %v6369_v19 = vpack.c.bf16 %v4446_v13, %v4445_v5  ;;  %v4415_v59 = vld [vmem:[%s12014_s12 + $0x220] sm:$0xff]  ;;  %v4416_v7 = vld [vmem:[%s12014_s12 + $0x228] sm:$0xff]  ;;  %v4433_v58 = vld [vmem:[%s12014_s12 + $0x2b0] sm:$0xff] }
 0x91e   :  { %v4247_v6 = vmax.f32 %v4233_v25, %v4245_v26  ;;  %v4248_v11 = vmax.f32 %v4232_v53, %v4244_v31  ;;  %v4249_v39 = vmax.f32 %v4231_v42, %v4243_v37  ;;  %v4300_v1 = vrot.slane %v11335_v50, 7  ;;  %v4447_v33 = vld [vmem:[%s12014_s12 + $0x320] sm:$0xff]  ;;  %v4448_v51 = vld [vmem:[%s12014_s12 + $0x328] sm:$0xff]  ;;  %v4434_v37 = vld [vmem:[%s12014_s12 + $0x2b8] sm:$0xff] }
 0x91f   :  { %v5225_v46 = vrot.slane %v11335_v50, 9  ;;  %v5227_v8 = vrot.slane %v11335_v50, 10  ;;  %v5233_v45 = vrot.slane %v11335_v50, 13  ;;  %v6371_v63 = vpack.c.bf16 %v4464_v44, %v4463_v40  ;;  %v4465_v25 = vld [vmem:[%s12014_s12 + $0x3b0] sm:$0xff]  ;;  %v4466_v42 = vld [vmem:[%s12014_s12 + $0x3b8] sm:$0xff] }
 0x920   :  { %v11365_v18 = vmax.f32 %v4219_v62, %v4247_v6  ;;  %v11367_v20 = vmax.f32 %v4220_v55, %v4248_v11  ;;  %v11369_v60 = vmax.f32 %v4221_v0, %v4249_v39  ;;  %v4314_v0 = vrot.slane %v4300_v1, 7  ;;  %v4453_v40 = vld [vmem:[%s12014_s12 + $0x350] sm:$0xff] }
 0x921   :  { %v6341_v11 = vpack.c.bf16 %v4416_v7, %v4415_v59  ;;  %v6373_v54 = vpack.c.bf16 %v4448_v51, %v4447_v33  ;;  %v6375_v57 = vpack.c.bf16 %v4466_v42, %v4465_v25  ;;  %v4456_v51 = vld [vmem:[%s12014_s12 + $0x368] sm:$0xff] }
 0x922   :  { %v4332_v49 = vsel %vm817_vm4, %v11367_v20, %v4300_v1  ;;  %v4299_v12 = vrot.slane %v11369_v60, 7  ;;  %v4258_v4 = vrot.slane %v11367_v20, 1  ;;  %v4257_v16 = vrot.slane %v11365_v18, 1 }
 0x923   :  { %4674 = vmatprep.mubr.f32.mxu0 %v4332_v49  ;;  %v4262_v43 = vrot.slane %v11367_v20, 2  ;;  %v4266_v61 = vrot.slane %v11367_v20, 3  ;;  %v4269_v10 = vrot.slane %v11365_v18, 4  ;;  %v5228_v21 = vrot.slane %v11369_v60, 11  ;;  %v4436_v49 = vld [vmem:[%s12014_s12 + $0x2c8] sm:$0xff] }
 0x924   :  { %v4331_v34 = vsel %vm817_vm4, %v11365_v18, %v4299_v12  ;;  %v4334_v23 = vsel %vm817_vm4, %v4258_v4, %v11335_v50  ;;  %v4333_v48 = vsel %vm817_vm4, %v4257_v16, %v11369_v60  ;;  %v4273_v29 = vrot.slane %v11365_v18, 5  ;;  %v4467_v4 = vld [vmem:[%s12014_s12 + $0x3c0] sm:$0xff]  ;;  %v4468_v16 = vld [vmem:[%s12014_s12 + $0x3c8] sm:$0xff] }
 0x925   :  { %4675 = vmatmul.mubr.f32.vlgmr.msra.gmra.mrb[22].mxu0 %v4331_v34  ;;  %4744 = vmatprep.mubr.f32.mxu1 %v4334_v23  ;;  %v4336_v36 = vsel %vm817_vm4, %v4262_v43, %v5225_v46  ;;  %v4338_v22 = vsel %vm817_vm4, %v4266_v61, %v5227_v8  ;;  %v5230_v17 = vrot.slane %v11369_v60, 12  ;;  %v4278_v55 = vrot.slane %v11367_v20, 6  ;;  %v4419_v43 = vld [vmem:[%s12014_s12 + $0x240] sm:$0xff]  ;;  %v4420_v46 = vld [vmem:[%s12014_s12 + $0x248] sm:$0xff]  ;;  %v4438_v34 = vld [vmem:[%s12014_s12 + $0x2d8] sm:$0xff] }
 0x926   :  { %6334 = vmatpush3.bf16.msra.mxu0 %v6333_v32  ;;  %4745 = vmatmul.mubr.f32.vlgmr.msra.gmra.mrb[22].mxu1 %v4333_v48  ;;  %v11450_v31 = vsel %vm817_vm4, %v4269_v10, %v5228_v21  ;;  %v4282_v26 = vrot.slane %v11367_v20, 7  ;;  %v4277_v62 = vrot.slane %v11365_v18, 6  ;;  %v5232_v6 = vrot.slane %v11369_v60, 13  ;;  %v4449_v32 = vld [vmem:[%s12014_s12 + $0x330] sm:$0xff]  ;;  %v4451_v61 = vld [vmem:[%s12014_s12 + $0x340] sm:$0xff]  ;;  %v4470_v48 = vld [vmem:[%s12014_s12 + $0x3d8] sm:$0xff] }
 0x927   :  { %4814 = vmatprep.mubr.f32.mxu0 %v4336_v36  ;;  %6366 = vmatpush3.bf16.msra.mxu1 %v6365_v30  ;;  %v11460_v53 = vsel %vm817_vm4, %v4273_v29, %v5230_v17  ;;  %v11463_v3 = vsel %vm817_vm4, %v4278_v55, %v5233_v45  ;;  %v4281_v35 = vrot.slane %v11365_v18, 7  ;;  %v4313_v15 = vrot.slane %v4299_v12, 7  ;;  %v4469_v23 = vld [vmem:[%s12014_s12 + $0x3d0] sm:$0xff]  ;;  %v4439_v10 = vld [vmem:[%s12014_s12 + $0x2e0] sm:$0xff]  ;;  %v4440_v21 = vld [vmem:[%s12014_s12 + $0x2e8] sm:$0xff] }
 0x928   :  { %4884 = vmatprep.mubr.f32.mxu1 %v4338_v22  ;;  %6336 = vmatprep.subr.bf16.mxu0 %v6335_v41  ;;  %v11468_v39 = vsel %vm817_vm4, %v4282_v26, %v4314_v0  ;;  %v6343_v1 = vpack.c.bf16 %v4434_v37, %v4433_v58  ;;  %v11481_v30 = vsel %vm817_vm4, %v4277_v62, %v5232_v6  ;;  %v4471_v45 = vld [vmem:[%s12014_s12 + $0x3e0] sm:$0xff]  ;;  %v4472_v22 = vld [vmem:[%s12014_s12 + $0x3e8] sm:$0xff]  ;;  %v4441_v58 = vld [vmem:[%s12014_s12 + $0x2f0] sm:$0xff] }
 0x929   :  { %6368 = vmatprep.subr.bf16.mxu1 %v6367_v56  ;;  %v11493_v12 = vsel %vm817_vm4, %v4281_v35, %v4313_v15  ;;  %v6377_v5 = vpack.c.bf16 %v4450_v27, %v4449_v32  ;;  %v6347_v13 = vpack.c.bf16 %v4436_v49, %v4435_v2  ;;  %v6379_v41 = vpack.c.bf16 %v4468_v16, %v4467_v4  ;;  %v4421_v56 = vld [vmem:[%s12014_s12 + $0x250] sm:$0xff]  ;;  %v4423_v29 = vld [vmem:[%s12014_s12 + $0x260] sm:$0xff]  ;;  %v4424_v17 = vld [vmem:[%s12014_s12 + $0x268] sm:$0xff] }
 0x92a   :  { %6338 = vmatpush3.bf16.msra.mxu0 %v6337_v38  ;;  %v6349_v38 = vpack.c.bf16 %v4420_v46, %v4419_v43  ;;  %v6381_v36 = vpack.c.bf16 %v4452_v24, %v4451_v61  ;;  %v6351_v8 = vpack.c.bf16 %v4438_v34, %v4437_v52  ;;  %v6383_v44 = vpack.c.bf16 %v4470_v48, %v4469_v23  ;;  %v4455_v55 = vld [vmem:[%s12014_s12 + $0x360] sm:$0xff]  ;;  %v4442_v37 = vld [vmem:[%s12014_s12 + $0x2f8] sm:$0xff]  ;;  %v4473_v26 = vld [vmem:[%s12014_s12 + $0x3f0] sm:$0xff] }
 0x92b   :  { %6370 = vmatpush3.bf16.msra.mxu1 %v6369_v19  ;;  %6340 = vmatprep.subr.bf16.mxu0 %v6339_v28  ;;  %v4422_v19 = vld [vmem:[%s12014_s12 + $0x258] sm:$0xff]  ;;  %v6355_v33 = vpack.c.bf16 %v4440_v21, %v4439_v10  ;;  %v6357_v25 = vpack.c.bf16 %v4424_v17, %v4423_v29  ;;  %v6389_v42 = vpack.c.bf16 %v4456_v51, %v4455_v55  ;;  %v4425_v6 = vld [vmem:[%s12014_s12 + $0x270] sm:$0xff]  ;;  %v4524_v32 = vld [vmem:[%s12014_s12 + $0x588] sm:$0xff]  ;;  %v4261_v16 = vrot.slane %v11365_v18, 2 }
 0x92c   :  { %6372 = vmatprep.subr.bf16.mxu1 %v6371_v63  ;;  %v4454_v28 = vld [vmem:[%s12014_s12 + $0x358] sm:$0xff]  ;;  %v6353_v59 = vpack.c.bf16 %v4422_v19, %v4421_v56  ;;  %v6387_v63 = vpack.c.bf16 %v4472_v22, %v4471_v45  ;;  %v6359_v62 = vpack.c.bf16 %v4442_v37, %v4441_v58  ;;  %v4457_v35 = vld [vmem:[%s12014_s12 + $0x370] sm:$0xff]  ;;  %v4475_v49 = vld [vmem:[%s12014_s12 + $0x400] sm:$0xff]  ;;  %v4265_v46 = vrot.slane %v11365_v18, 3 }
 0x92d   :  { %v6385_v7 = vpack.c.bf16 %v4454_v28, %v4453_v40  ;;  %v4474_v0 = vld [vmem:[%s12014_s12 + $0x3f8] sm:$0xff]  ;;  %v4476_v4 = vld [vmem:[%s12014_s12 + $0x408] sm:$0xff]  ;;  %v5226_v61 = vrot.slane %v11369_v60, 10  ;;  %v4270_v34 = vrot.slane %v11367_v20, 4  ;;  %v4525_v23 = vld [vmem:[%s12014_s12 + $0x590] sm:$0xff]  ;;  %v4274_v48 = vrot.slane %v11367_v20, 5 }
 0x92e   :  { %6342 = vmatpush3.bf16.msra.mxu0 %v6341_v11  ;;  %v4426_v11 = vld [vmem:[%s12014_s12 + $0x278] sm:$0xff]  ;;  %v6391_v15 = vpack.c.bf16 %v4474_v0, %v4473_v26  ;;  %v4508_v43 = vld [vmem:[%s12014_s12 + $0x508] sm:$0xff]  ;;  %v6397_v52 = vpack.c.bf16 %v4476_v4, %v4475_v49  ;;  %v5229_v19 = vrot.slane %v11335_v50, 11  ;;  %v5231_v21 = vrot.slane %v11335_v50, 12  ;;  %v4527_v22 = vld [vmem:[%s12014_s12 + $0x5a0] sm:$0xff] }
 0x92f   :  { %6374 = vmatpush3.bf16.msra.mxu1 %v6373_v54  ;;  %6344 = vmatprep.subr.bf16.mxu0 %v6343_v1  ;;  %v4458_v54 = vld [vmem:[%s12014_s12 + $0x378] sm:$0xff]  ;;  %v4491_v1 = vld [vmem:[%s12014_s12 + $0x480] sm:$0xff]  ;;  %v4496_v28 = vld [vmem:[%s12014_s12 + $0x4a8] sm:$0xff]  ;;  %v4337_v10 = vsel %vm817_vm4, %v4265_v46, %v5226_v61 }
 0x930   :  { %6376 = vmatprep.subr.bf16.mxu1 %v6375_v57  ;;  %v6361_v57 = vpack.c.bf16 %v4426_v11, %v4425_v6  ;;  %v6393_v27 = vpack.c.bf16 %v4458_v54, %v4457_v35  ;;  %v6395_v2 = vpack.c.bf16 %v4492_v9, %v4491_v1  ;;  %v4494_v24 = vld [vmem:[%s12014_s12 + $0x498] sm:$0xff]  ;;  %v4342_v29 = vsel %vm817_vm4, %v4274_v48, %v5231_v21  ;;  %v4479_v55 = vld [vmem:[%s12014_s12 + $0x420] sm:$0xff]  ;;  %v4512_v37 = vld [vmem:[%s12014_s12 + $0x528] sm:$0xff] }
 0x931   :  { %v4526_v18 = vld [vmem:[%s12014_s12 + $0x598] sm:$0xff]  ;;  %v4511_v51 = vld [vmem:[%s12014_s12 + $0x520] sm:$0xff]  ;;  %v4497_v26 = vld [vmem:[%s12014_s12 + $0x4b0] sm:$0xff] }
 0x932   :  { %6346 = vmatpush3.bf16.msra.mxu0 %v6345_v14  ;;  %v5224_v14 = vrot.slane %v11369_v60, 9  ;;  %v4510_v20 = vld [vmem:[%s12014_s12 + $0x518] sm:$0xff]  ;;  %v6431_v45 = vpack.c.bf16 %v4526_v18, %v4525_v23  ;;  %v6437_v6 = vpack.c.bf16 %v4512_v37, %v4511_v51  ;;  %v4481_v35 = vld [vmem:[%s12014_s12 + $0x430] sm:$0xff]  ;;  %v4488_v21 = vld [vmem:[%s12014_s12 + $0x468] sm:$0xff] }
 0x933   :  { %6378 = vmatpush3.bf16.msra.mxu1 %v6377_v5  ;;  %6348 = vmatprep.subr.bf16.mxu0 %v6347_v13  ;;  %v6427_v5 = vpack.c.bf16 %v4524_v32, %v4523_v47  ;;  %v4507_v13 = vld [vmem:[%s12014_s12 + $0x500] sm:$0xff]  ;;  %v4498_v0 = vld [vmem:[%s12014_s12 + $0x4b8] sm:$0xff]  ;;  %v4513_v54 = vld [vmem:[%s12014_s12 + $0x530] sm:$0xff] }
 0x934   :  { %6380 = vmatprep.subr.bf16.mxu1 %v6379_v41  ;;  %v4493_v41 = vld [vmem:[%s12014_s12 + $0x490] sm:$0xff]  ;;  %v6429_v60 = vpack.c.bf16 %v4508_v43, %v4507_v13  ;;  %v4335_v56 = vsel %vm817_vm4, %v4261_v16, %v5224_v14  ;;  %v6407_v11 = vpack.c.bf16 %v4498_v0, %v4497_v26  ;;  %v4514_v9 = vld [vmem:[%s12014_s12 + $0x538] sm:$0xff]  ;;  %v4499_v47 = vld [vmem:[%s12014_s12 + $0x4c0] sm:$0xff] }
 0x935   :  { %v6399_v40 = vpack.c.bf16 %v4494_v24, %v4493_v41  ;;  %v4500_v32 = vld [vmem:[%s12014_s12 + $0x4c8] sm:$0xff]  ;;  %v6441_v49 = vpack.c.bf16 %v4514_v9, %v4513_v54  ;;  %v4483_v16 = vld [vmem:[%s12014_s12 + $0x440] sm:$0xff]  ;;  %v4501_v46 = vld [vmem:[%s12014_s12 + $0x4d0] sm:$0xff] }
 0x936   :  { %6350 = vmatpush3.bf16.msra.mxu0 %v6349_v38  ;;  %v4477_v38 = vld [vmem:[%s12014_s12 + $0x410] sm:$0xff]  ;;  %v6411_v4 = vpack.c.bf16 %v4500_v32, %v4499_v47  ;;  %v4484_v14 = vld [vmem:[%s12014_s12 + $0x448] sm:$0xff]  ;;  %v4502_v61 = vld [vmem:[%s12014_s12 + $0x4d8] sm:$0xff] }
 0x937   :  { %6382 = vmatpush3.bf16.msra.mxu1 %v6381_v36  ;;  %6352 = vmatprep.subr.bf16.mxu0 %v6351_v8  ;;  %v4478_v36 = vld [vmem:[%s12014_s12 + $0x418] sm:$0xff]  ;;  %v4509_v8 = vld [vmem:[%s12014_s12 + $0x510] sm:$0xff]  ;;  %v4516_v43 = vld [vmem:[%s12014_s12 + $0x548] sm:$0xff]  ;;  %v6415_v23 = vpack.c.bf16 %v4502_v61, %v4501_v46 }
 0x938   :  { %6384 = vmatprep.subr.bf16.mxu1 %v6383_v44  ;;  %v4495_v44 = vld [vmem:[%s12014_s12 + $0x4a0] sm:$0xff]  ;;  %v6433_v17 = vpack.c.bf16 %v4510_v20, %v4509_v8  ;;  %v4533_v41 = vld [vmem:[%s12014_s12 + $0x5d0] sm:$0xff]  ;;  %v4534_v24 = vld [vmem:[%s12014_s12 + $0x5d8] sm:$0xff] }
 0x939   :  { %v6403_v50 = vpack.c.bf16 %v4496_v28, %v4495_v44  ;;  %v4485_v18 = vld [vmem:[%s12014_s12 + $0x450] sm:$0xff]  ;;  %v4503_v8 = vld [vmem:[%s12014_s12 + $0x4e0] sm:$0xff]  ;;  %v4522_v0 = vld [vmem:[%s12014_s12 + $0x578] sm:$0xff] }
 0x93a   :  { %6354 = vmatpush3.bf16.msra.mxu0 %v6353_v59  ;;  %v4528_v59 = vld [vmem:[%s12014_s12 + $0x5a8] sm:$0xff]  ;;  %v4517_v48 = vld [vmem:[%s12014_s12 + $0x550] sm:$0xff]  ;;  %v4539_v54 = vld [vmem:[%s12014_s12 + $0x600] sm:$0xff] }
 0x93b   :  { %6386 = vmatpush3.bf16.msra.mxu1 %v6385_v7  ;;  %6356 = vmatprep.subr.bf16.mxu0 %v6355_v33  ;;  %v4340_v7 = vsel %vm817_vm4, %v4270_v34, %v5229_v19  ;;  %v6401_v33 = vpack.c.bf16 %v4478_v36, %v4477_v38  ;;  %v6435_v58 = vpack.c.bf16 %v4528_v59, %v4527_v22  ;;  %v4518_v36 = vld [vmem:[%s12014_s12 + $0x558] sm:$0xff]  ;;  %v4535_v19 = vld [vmem:[%s12014_s12 + $0x5e0] sm:$0xff]  ;;  %v4520_v59 = vld [vmem:[%s12014_s12 + $0x568] sm:$0xff] }
 0x93c   :  { %6388 = vmatprep.subr.bf16.mxu1 %v6387_v63  ;;  %v4480_v63 = vld [vmem:[%s12014_s12 + $0x428] sm:$0xff]  ;;  %v6447_v38 = vpack.c.bf16 %v4534_v24, %v4533_v41  ;;  %v6449_v44 = vpack.c.bf16 %v4518_v36, %v4517_v48  ;;  %v4489_v51 = vld [vmem:[%s12014_s12 + $0x470] sm:$0xff]  ;;  %v4571_v47 = vld [vmem:[%s12014_s12 + $0x700] sm:$0xff] }
 0x93d   :  { %v4521_v37 = vld [vmem:[%s12014_s12 + $0x570] sm:$0xff]  ;;  %v4572_v32 = vld [vmem:[%s12014_s12 + $0x708] sm:$0xff]  ;;  %v4574_v46 = vld [vmem:[%s12014_s12 + $0x718] sm:$0xff] }
 0x93e   :  { %6358 = vmatpush3.bf16.msra.mxu0 %v6357_v25  ;;  %v4529_v25 = vld [vmem:[%s12014_s12 + $0x5b0] sm:$0xff]  ;;  %v4559_v61 = vld [vmem:[%s12014_s12 + $0x6a0] sm:$0xff]  ;;  %v4560_v41 = vld [vmem:[%s12014_s12 + $0x6a8] sm:$0xff] }
 0x93f   :  { %6390 = vmatpush3.bf16.msra.mxu1 %v6389_v42  ;;  %6360 = vmatprep.subr.bf16.mxu0 %v6359_v62  ;;  %v4530_v42 = vld [vmem:[%s12014_s12 + $0x5b8] sm:$0xff]  ;;  %v6405_v62 = vpack.c.bf16 %v4480_v63, %v4479_v55  ;;  %v4544_v48 = vld [vmem:[%s12014_s12 + $0x628] sm:$0xff]  ;;  %v4561_v36 = vld [vmem:[%s12014_s12 + $0x6b0] sm:$0xff] }
 0x940   :  { %6392 = vmatprep.subr.bf16.mxu1 %v6391_v15  ;;  %v4482_v15 = vld [vmem:[%s12014_s12 + $0x438] sm:$0xff]  ;;  %v6439_v1 = vpack.c.bf16 %v4530_v42, %v4529_v25  ;;  %v4555_v25 = vld [vmem:[%s12014_s12 + $0x680] sm:$0xff]  ;;  %v4556_v42 = vld [vmem:[%s12014_s12 + $0x688] sm:$0xff] }
 0x942   :  { %6362 = vmatpush3.bf16.msra.mxu0 %v6361_v57  ;;  %v4531_v57 = vld [vmem:[%s12014_s12 + $0x5c0] sm:$0xff] }
 0x943   :  { %6394 = vmatpush3.bf16.msra.mxu1 %v6393_v27  ;;  %6396 = vmatprep.subr.bf16.mxu0 %v6395_v2  ;;  %v4532_v27 = vld [vmem:[%s12014_s12 + $0x5c8] sm:$0xff]  ;;  %v6409_v2 = vpack.c.bf16 %v4482_v15, %v4481_v35  ;;  %v6457_v35 = vpack.c.bf16 %v4522_v0, %v4521_v37  ;;  %v6459_v15 = vpack.c.bf16 %v4556_v42, %v4555_v25  ;;  %v4566_v0 = vld [vmem:[%s12014_s12 + $0x6d8] sm:$0xff]  ;;  %v4597_v25 = vld [vmem:[%s12014_s12 + $0x7d0] sm:$0xff] }
 0x944   :  { %6428 = vmatprep.subr.bf16.mxu1 %v6427_v5  ;;  %v4515_v5 = vld [vmem:[%s12014_s12 + $0x540] sm:$0xff]  ;;  %v6443_v13 = vpack.c.bf16 %v4532_v27, %v4531_v57  ;;  %v4557_v57 = vld [vmem:[%s12014_s12 + $0x690] sm:$0xff]  ;;  %v4558_v27 = vld [vmem:[%s12014_s12 + $0x698] sm:$0xff] }
 0x945   :  { %4815 = vmatmul.mubr.f32.vlgmr.msra.gmra.mrb[24].mxu0 %v4335_v56  ;;  %v6445_v34 = vpack.c.bf16 %v4516_v43, %v4515_v5  ;;  %v4504_v56 = vld [vmem:[%s12014_s12 + $0x4e8] sm:$0xff]  ;;  %v4542_v5 = vld [vmem:[%s12014_s12 + $0x618] sm:$0xff]  ;;  %v6463_v43 = vpack.c.bf16 %v4558_v27, %v4557_v57  ;;  %v4599_v57 = vld [vmem:[%s12014_s12 + $0x7e0] sm:$0xff] }
 0x946   :  { %4885 = vmatmul.mubr.f32.vlgmr.msra.gmra.mrb[24].mxu1 %v4337_v10  ;;  %6398 = vmatpush3.bf16.msra.mxu0 %v6397_v52  ;;  %v6413_v52 = vpack.c.bf16 %v4484_v14, %v4483_v16  ;;  %v6419_v28 = vpack.c.bf16 %v4504_v56, %v4503_v8  ;;  %v4487_v10 = vld [vmem:[%s12014_s12 + $0x460] sm:$0xff]  ;;  %v6493_v16 = vpack.c.bf16 %v4572_v32, %v4571_v47  ;;  %v4541_v14 = vld [vmem:[%s12014_s12 + $0x610] sm:$0xff]  ;;  %v4562_v8 = vld [vmem:[%s12014_s12 + $0x6b8] sm:$0xff] }
 0x947   :  { %4954 = vmatprep.mubr.f32.mxu0 %v4340_v7  ;;  %6430 = vmatpush3.bf16.msra.mxu1 %v6429_v60  ;;  %v4486_v60 = vld [vmem:[%s12014_s12 + $0x458] sm:$0xff]  ;;  %v4505_v7 = vld [vmem:[%s12014_s12 + $0x4f0] sm:$0xff]  ;;  %v4580_v37 = vld [vmem:[%s12014_s12 + $0x748] sm:$0xff] }
 0x948   :  { %5024 = vmatprep.mubr.f32.mxu1 %v4342_v29  ;;  %6400 = vmatprep.subr.bf16.mxu0 %v6399_v40  ;;  %v4536_v40 = vld [vmem:[%s12014_s12 + $0x5e8] sm:$0xff]  ;;  %v6417_v20 = vpack.c.bf16 %v4486_v60, %v4485_v18  ;;  %v4537_v29 = vld [vmem:[%s12014_s12 + $0x5f0] sm:$0xff]  ;;  %v6467_v60 = vpack.c.bf16 %v4560_v41, %v4559_v61  ;;  %v4598_v42 = vld [vmem:[%s12014_s12 + $0x7d8] sm:$0xff] }
 0x949   :  { %6432 = vmatprep.subr.bf16.mxu1 %v6431_v45  ;;  %v4519_v45 = vld [vmem:[%s12014_s12 + $0x560] sm:$0xff]  ;;  %v6451_v22 = vpack.c.bf16 %v4536_v40, %v4535_v19  ;;  %v4593_v56 = vld [vmem:[%s12014_s12 + $0x7b0] sm:$0xff]  ;;  %v4568_v32 = vld [vmem:[%s12014_s12 + $0x6e8] sm:$0xff] }
 0x94a   :  { %6402 = vmatpush3.bf16.msra.mxu0 %v6401_v33  ;;  %v4506_v33 = vld [vmem:[%s12014_s12 + $0x4f8] sm:$0xff]  ;;  %v6453_v55 = vpack.c.bf16 %v4520_v59, %v4519_v45  ;;  %v4564_v59 = vld [vmem:[%s12014_s12 + $0x6c8] sm:$0xff]  ;;  %v4567_v47 = vld [vmem:[%s12014_s12 + $0x6e0] sm:$0xff] }
 0x94b   :  { %6434 = vmatpush3.bf16.msra.mxu1 %v6433_v17  ;;  %6404 = vmatprep.subr.bf16.mxu0 %v6403_v50  ;;  %v4538_v17 = vld [vmem:[%s12014_s12 + $0x5f8] sm:$0xff]  ;;  %v6421_v50 = vpack.c.bf16 %v4488_v21, %v4487_v10  ;;  %v6423_v63 = vpack.c.bf16 %v4506_v33, %v4505_v7  ;;  %v4577_v10 = vld [vmem:[%s12014_s12 + $0x730] sm:$0xff]  ;;  %v4595_v7 = vld [vmem:[%s12014_s12 + $0x7c0] sm:$0xff] }
 0x94c   :  { %6436 = vmatprep.subr.bf16.mxu1 %v6435_v58  ;;  %v4490_v58 = vld [vmem:[%s12014_s12 + $0x478] sm:$0xff]  ;;  %v6455_v26 = vpack.c.bf16 %v4538_v17, %v4537_v29  ;;  %v4596_v33 = vld [vmem:[%s12014_s12 + $0x7c8] sm:$0xff]  ;;  %v4601_v41 = vld [vmem:[%s12014_s12 + $0x7f0] sm:$0xff] }
 0x94d   :  { %v4578_v45 = vld [vmem:[%s12014_s12 + $0x738] sm:$0xff]  ;;  %v4600_v27 = vld [vmem:[%s12014_s12 + $0x7e8] sm:$0xff] }
 0x94e   :  { %6406 = vmatpush3.bf16.msra.mxu0 %v6405_v62  ;;  %v4587_v62 = vld [vmem:[%s12014_s12 + $0x780] sm:$0xff]  ;;  %v6505_v17 = vpack.c.bf16 %v4578_v45, %v4577_v10  ;;  %v4570_v61 = vld [vmem:[%s12014_s12 + $0x6f8] sm:$0xff] }
 0x94f   :  { %6438 = vmatpush3.bf16.msra.mxu1 %v6437_v6  ;;  %6408 = vmatprep.subr.bf16.mxu0 %v6407_v11  ;;  %v4588_v6 = vld [vmem:[%s12014_s12 + $0x788] sm:$0xff]  ;;  %v6425_v11 = vpack.c.bf16 %v4490_v58, %v4489_v51  ;;  %v4579_v51 = vld [vmem:[%s12014_s12 + $0x740] sm:$0xff]  ;;  %v6507_v58 = vpack.c.bf16 %v4596_v33, %v4595_v7 }
 0x950   :  { %6440 = vmatprep.subr.bf16.mxu1 %v6439_v1  ;;  %v4540_v1 = vld [vmem:[%s12014_s12 + $0x608] sm:$0xff]  ;;  %v6491_v9 = vpack.c.bf16 %v4588_v6, %v4587_v62  ;;  %v6509_v6 = vpack.c.bf16 %v4580_v37, %v4579_v51 }
 0x952   :  { %6410 = vmatpush3.bf16.msra.mxu0 %v6409_v2  ;;  %v6461_v2 = vpack.c.bf16 %v4540_v1, %v4539_v54  ;;  %v4581_v54 = vld [vmem:[%s12014_s12 + $0x750] sm:$0xff]  ;;  %v6511_v1 = vpack.c.bf16 %v4598_v42, %v4597_v25 }
 0x953   :  { %6442 = vmatpush3.bf16.msra.mxu1 %v6441_v49  ;;  %6412 = vmatprep.subr.bf16.mxu0 %v6411_v4  ;;  %v4589_v49 = vld [vmem:[%s12014_s12 + $0x790] sm:$0xff]  ;;  %v4590_v4 = vld [vmem:[%s12014_s12 + $0x798] sm:$0xff] }
 0x954   :  { %6444 = vmatprep.subr.bf16.mxu1 %v6443_v13  ;;  %v4573_v13 = vld [vmem:[%s12014_s12 + $0x710] sm:$0xff]  ;;  %v6495_v24 = vpack.c.bf16 %v4590_v4, %v4589_v49  ;;  %v6483_v4 = vpack.c.bf16 %v4568_v32, %v4567_v47 }
 0x955   :  { %v6497_v18 = vpack.c.bf16 %v4574_v46, %v4573_v13  ;;  %v6515_v13 = vpack.c.bf16 %v4600_v27, %v4599_v57  ;;  %v4569_v46 = vld [vmem:[%s12014_s12 + $0x6f0] sm:$0xff] }
 0x956   :  { %6414 = vmatpush3.bf16.msra.mxu0 %v6413_v52  ;;  %v4591_v52 = vld [vmem:[%s12014_s12 + $0x7a0] sm:$0xff] }
 0x957   :  { %6446 = vmatpush3.bf16.msra.mxu1 %v6445_v34  ;;  %6416 = vmatprep.subr.bf16.mxu0 %v6415_v23  ;;  %v4592_v34 = vld [vmem:[%s12014_s12 + $0x7a8] sm:$0xff]  ;;  %v6465_v23 = vpack.c.bf16 %v4542_v5, %v4541_v14  ;;  %v4583_v5 = vld [vmem:[%s12014_s12 + $0x760] sm:$0xff] }
 0x958   :  { %6448 = vmatprep.subr.bf16.mxu1 %v6447_v38  ;;  %v4575_v38 = vld [vmem:[%s12014_s12 + $0x720] sm:$0xff]  ;;  %v4552_v14 = vld [vmem:[%s12014_s12 + $0x668] sm:$0xff] }
 0x95a   :  { %6418 = vmatpush3.bf16.msra.mxu0 %v6417_v20  ;;  %v6471_v20 = vpack.c.bf16 %v4562_v8, %v4561_v36  ;;  %v5234_v8 = vld [vmem:[%s12015_s13] ss:$0 sm:$0xff] }
 0x95b   :  { %6450 = vmatpush3.bf16.msra.mxu1 %v6449_v44  ;;  %6420 = vmatprep.subr.bf16.mxu0 %v6419_v28  ;;  %v4545_v44 = vld [vmem:[%s12014_s12 + $0x630] sm:$0xff]  ;;  %v4546_v28 = vld [vmem:[%s12014_s12 + $0x638] sm:$0xff] }
 0x95c   :  { %6452 = vmatprep.subr.bf16.mxu1 %v6451_v22  ;;  %v4563_v22 = vld [vmem:[%s12014_s12 + $0x6c0] sm:$0xff]  ;;  %v6473_v29 = vpack.c.bf16 %v4546_v28, %v4545_v44 }
 0x95e   :  { %6422 = vmatpush3.bf16.msra.mxu0 %v6421_v50  ;;  %v6475_v50 = vpack.c.bf16 %v4564_v59, %v4563_v22 }
 0x95f   :  { %6454 = vmatpush3.bf16.msra.mxu1 %v6453_v55  ;;  %6424 = vmatprep.subr.bf16.mxu0 %v6423_v63  ;;  %v4547_v55 = vld [vmem:[%s12014_s12 + $0x640] sm:$0xff]  ;;  %v4548_v63 = vld [vmem:[%s12014_s12 + $0x648] sm:$0xff] }
 0x960   :  { %6456 = vmatprep.subr.bf16.mxu1 %v6455_v26  ;;  %v4565_v26 = vld [vmem:[%s12014_s12 + $0x6d0] sm:$0xff]  ;;  %v6477_v62 = vpack.c.bf16 %v4548_v63, %v4547_v55 }
 0x962   :  { %6426 = vmatpush3.bf16.msra.mxu0 %v6425_v11  ;;  %v6479_v11 = vpack.c.bf16 %v4566_v0, %v4565_v26 }
 0x963   :  { %6458 = vmatpush3.bf16.msra.mxu1 %v6457_v35  ;;  %6460 = vmatprep.subr.bf16.mxu0 %v6459_v15  ;;  %v4549_v35 = vld [vmem:[%s12014_s12 + $0x650] sm:$0xff]  ;;  %v4550_v15 = vld [vmem:[%s12014_s12 + $0x658] sm:$0xff] }
 0x964   :  { %6492 = vmatprep.subr.bf16.mxu1 %v6491_v9  ;;  %v4582_v9 = vld [vmem:[%s12014_s12 + $0x758] sm:$0xff] }
 0x965   :  { %4955 = vmatmul.mubr.f32.vlgmr.msra.gmra.mrb[26].mxu0 %v11450_v31  ;;  %v4543_v31 = vld [vmem:[%s12014_s12 + $0x620] sm:$0xff]  ;;  %v6513_v49 = vpack.c.bf16 %v4582_v9, %v4581_v54 }
 0x966   :  { %5025 = vmatmul.mubr.f32.vlgmr.msra.gmra.mrb[26].mxu1 %v11460_v53  ;;  %6462 = vmatpush3.bf16.msra.mxu0 %v6461_v2  ;;  %v6499_v53 = vpack.c.bf16 %v4592_v34, %v4591_v52  ;;  %v6469_v19 = vpack.c.bf16 %v4544_v48, %v4543_v31  ;;  %v6481_v2 = vpack.c.bf16 %v4550_v15, %v4549_v35  ;;  %v4585_v48 = vld [vmem:[%s12014_s12 + $0x770] sm:$0xff] }
 0x967   :  { %5094 = vmatprep.mubr.f32.mxu0 %v11463_v3  ;;  %6494 = vmatpush3.bf16.msra.mxu1 %v6493_v16  ;;  %v4576_v3 = vld [vmem:[%s12014_s12 + $0x728] sm:$0xff]  ;;  %v4551_v16 = vld [vmem:[%s12014_s12 + $0x660] sm:$0xff] }
 0x968   :  { %5164 = vmatprep.mubr.f32.mxu1 %v11468_v39  ;;  %6464 = vmatprep.subr.bf16.mxu0 %v6463_v43  ;;  %v4594_v39 = vld [vmem:[%s12014_s12 + $0x7b8] sm:$0xff]  ;;  %v6501_v40 = vpack.c.bf16 %v4576_v3, %v4575_v38  ;;  %v4584_v43 = vld [vmem:[%s12014_s12 + $0x768] sm:$0xff]  ;;  %v6485_v52 = vpack.c.bf16 %v4552_v14, %v4551_v16 }
 0x969   :  { %6496 = vmatprep.subr.bf16.mxu1 %v6495_v24  ;;  %v6503_v21 = vpack.c.bf16 %v4594_v39, %v4593_v56  ;;  %v4602_v24 = vld [vmem:[%s12014_s12 + $0x7f8] sm:$0xff]  ;;  %v6517_v34 = vpack.c.bf16 %v4584_v43, %v4583_v5 }
 0x96a   :  { %6466 = vmatpush3.bf16.msra.mxu0 %v6465_v23  ;;  %v6487_v23 = vpack.c.bf16 %v4570_v61, %v4569_v46  ;;  %v6519_v31 = vpack.c.bf16 %v4602_v24, %v4601_v41  ;;  %v4586_v38 = vld [vmem:[%s12014_s12 + $0x778] sm:$0xff] }
 0x96b   :  { %6498 = vmatpush3.bf16.msra.mxu1 %v6497_v18  ;;  %6468 = vmatprep.subr.bf16.mxu0 %v6467_v60  ;;  %v4553_v18 = vld [vmem:[%s12014_s12 + $0x670] sm:$0xff]  ;;  %v4554_v60 = vld [vmem:[%s12014_s12 + $0x678] sm:$0xff]  ;;  %v6521_v3 = vpack.c.bf16 %v4586_v38, %v4585_v48  ;;  %s7381_s12 = smov [#allocation2]  }
 0x96c   :  { %6500 = vmatprep.subr.bf16.mxu1 %v6499_v53  ;;  %v6489_v53 = vpack.c.bf16 %v4554_v60, %v4553_v18  ;;  %s5178_s13 = sshll.u32 %s7381_s12, 4  ;;  %s5179_s13 = int_to_ptr.vmem [resolvable:$true] %s5178_s13 }
 0x96d   :  { %s7340_s10 = scalar_lea.vmem %s5179_s13, 32  ;;  %p7345_p1 = scmp.lt.s32.totalorder %s5179_s13, %s5179_s13 }
 0x96e   :  { %6470 = vmatpush3.bf16.msra.mxu0 %v6469_v19  ;;  %p7341_p0 = scmp.ne.s32.totalorder %s5179_s13, %s7340_s10  ;;  %p7346_p2 = scmp.lt.s32.totalorder %s7340_s10, %s7340_s10 }
 0x96f   :  { %6502 = vmatpush3.bf16.msra.mxu1 %v6501_v40  ;;  %6472 = vmatprep.subr.bf16.mxu0 %v6471_v20 }
 0x970   :  { %6504 = vmatprep.subr.bf16.mxu1 %v6503_v21  ;;  %p7347_p3 = por %p7346_p2, %p7345_p1 }
 0x972   :  { %6474 = vmatpush3.bf16.msra.mxu0 %v6473_v29  ;;  %p7348_p4 = pnand %p7347_p3, %p7341_p0 }
 0x973   :  { %6506 = vmatpush3.bf16.msra.mxu1 %v6505_v17  ;;  %6476 = vmatprep.subr.bf16.mxu0 %v6475_v50 }
 0x974   :  { %6508 = vmatprep.subr.bf16.mxu1 %v6507_v58 }
 0x976   :  { %6478 = vmatpush3.bf16.msra.mxu0 %v6477_v62 }
 0x977   :  { %6510 = vmatpush3.bf16.msra.mxu1 %v6509_v6  ;;  %6480 = vmatprep.subr.bf16.mxu0 %v6479_v11 }
 0x978   :  { %6512 = vmatprep.subr.bf16.mxu1 %v6511_v1 }
 0x97a   :  { %6482 = vmatpush3.bf16.msra.mxu0 %v6481_v2 }
 0x97b   :  { %6514 = vmatpush3.bf16.msra.mxu1 %v6513_v49  ;;  %6484 = vmatprep.subr.bf16.mxu0 %v6483_v4 }
 0x97c   :  { %6516 = vmatprep.subr.bf16.mxu1 %v6515_v13 }
 0x97e   :  { %6486 = vmatpush3.bf16.msra.mxu0 %v6485_v52 }
 0x97f   :  { %6518 = vmatpush3.bf16.msra.mxu1 %v6517_v34  ;;  %6488 = vmatprep.subr.bf16.mxu0 %v6487_v23 }
 0x980   :  { %6520 = vmatprep.subr.bf16.mxu1 %v6519_v31 }
 0x982   :  { %6490 = vmatpush3.bf16.msra.mxu0 %v6489_v53 }
 0x983   :  { %6522 = vmatpush3.bf16.msra.mxu1 %v6521_v3 }
 0x985   :  { %5095 = vmatmul.mubr.f32.vlgmr.msra.gmra.mrb[28].mxu0 %v11481_v30 }
 0x986   :  { %5165 = vmatmul.mubr.f32.vlgmr.msra.gmra.mrb[28].mxu1 %v11493_v12 }
 0x9f8   :  { %v5267_v36 = vpop.f32.mrb[22].mxu0 }
 0x9f9   :  { %v5268_v56 = vpop.f32.mrb[23].mxu0  ;;  %v5302_v39 = vpop.f32.mrb[22].mxu1 }
 0x9fa   :  { %v5269_v19 = vadd.f32 %v5268_v56, %v5267_v36  ;;  %v5303_v40 = vpop.f32.mrb[23].mxu1 }
 0x9fb   :  { %v5304_v20 = vadd.f32 %v5303_v40, %v5302_v39 }
 0x9fc   :  { %v4677_v44 = vadd.f32 %v5269_v19, %v5234_v8 }
 0x9fe   :  { %v4747_v28 = vadd.f32 %v5304_v20, %v4677_v44 }
 0xa18   :  { %v5337_v10 = vpop.f32.mrb[24].mxu0 }
 0xa19   :  { %v5338_v21 = vpop.f32.mrb[25].mxu0  ;;  %v5372_v45 = vpop.f32.mrb[24].mxu1 }
 0xa1a   :  { %v5339_v22 = vadd.f32 %v5338_v21, %v5337_v10  ;;  %v5373_v59 = vpop.f32.mrb[25].mxu1 }
 0xa1b   :  { %v5374_v30 = vadd.f32 %v5373_v59, %v5372_v45 }
 0xa1c   :  { %v4817_v7 = vadd.f32 %v5339_v22, %v4747_v28 }
 0xa1e   :  { %v4887_v12 = vadd.f32 %v5374_v30, %v4817_v7 }
 0xa38   :  { %v5407_v33 = vpop.f32.mrb[26].mxu0 }
 0xa39   :  { %v5408_v29 = vpop.f32.mrb[27].mxu0  ;;  %v5442_v17 = vpop.f32.mrb[26].mxu1 }
 0xa3a   :  { %v5409_v50 = vadd.f32 %v5408_v29, %v5407_v33  ;;  %v5443_v55 = vpop.f32.mrb[27].mxu1 }
 0xa3b   :  { %v5444_v63 = vadd.f32 %v5443_v55, %v5442_v17 }
 0xa3c   :  { %v4957_v51 = vadd.f32 %v5409_v50, %v4887_v12 }
 0xa3e   :  { %v5027_v58 = vadd.f32 %v5444_v63, %v4957_v51 }
 0xa58   :  { %v5477_v37 = vpop.f32.mrb[28].mxu0 }
 0xa59   :  { %v5478_v26 = vpop.f32.mrb[29].mxu0  ;;  %v5512_v0 = vpop.f32.mrb[28].mxu1 }
 0xa5a   :  { %v5479_v25 = vadd.f32 %v5478_v26, %v5477_v37  ;;  %v5513_v42 = vpop.f32.mrb[29].mxu1 }
 0xa5b   :  { %v5514_v62 = vadd.f32 %v5513_v42, %v5512_v0 }
 0xa5c   :  { %v5097_v6 = vadd.f32 %v5479_v25, %v5027_v58 }
 0xa5e   :  { %v5167_v11 = vadd.f32 %v5514_v62, %v5097_v6 }
 0xa60   :  { %5171 = vst.msk [vmem:[#allocation2] sm:$0x3] %vm5170_vm3, %v5167_v11 }
 0xa61   :  { %7351 = shalt.err (!%p7348_p4)
}
 0xa62   :  { %s7352_s18 = scalar_lea.hbm %s12016_s14, 32 }
 0xa63   :  { %p7353_p5 = scmp.ne.s32.totalorder %s12016_s14, %s7352_s18  ;;  %p7356_p6 = scmp.lt.u32.totalorder %s7352_s18, %s12016_s14 }
 0xa65   :  { %p7358_p7 = pnand %p7356_p6, %p7353_p5 }
 0xa67   :  { %7361 = shalt.err (!%p7358_p7)
}
 0xa68   :  { %5181 = dma.vmem_to_hbm [thread:$0]  %s5179_s13, 32, %s12016_s14, [#allocation3]  }
 0xa69   :  { %7362 = dma.done.wait [#allocation3], 32  }
 0xa6a   :  { %7363 = vsyncadd [#allocation3], 4294967264 }
 0xa6b   :  { %5185 = vsyncpa [#allocation3], 1 }

</bundles_post_ra>
